<compile_context>
chip_gen: v7x
topology: tpu7x:2x2x1
jax: 0.10.0
libtpu: 0.0.40
codegen_flags: <defaults>
</compile_context>

<pallas_src>
import jax
import jax.numpy as jnp
from jax.experimental import pallas as pl
from jax.experimental.pallas import tpu as pltpu


def _round_up(x, m):
    return ((x + m - 1) // m) * m


def ffn_kernel(x_ref, w1_ref, b1_ref, w2_ref, b2_ref, o_ref):
    """One (tm, E) row-block: out += relu(x @ W1[:, k] + b1[k]) @ W2[k, :].

    x_ref:  (tm, E)        bf16
    w1_ref: (E, tile_ff)   bf16
    b1_ref: (1, tile_ff)   f32
    w2_ref: (tile_ff, E)   bf16
    b2_ref: (1, E)         f32
    o_ref:  (tm, E)        f32  -- resident accumulator across the ff axis.
    """
    k = pl.program_id(1)

    @pl.when(k == 0)
    def _():
        # Initialize the resident output block with the second bias; the
        # k-loop accumulates partial second-matmul products on top of it.
        o_ref[...] = jnp.broadcast_to(b2_ref[...], o_ref.shape)

    # h = relu(x @ W1_tile + b1_tile): bf16 MXU matmul with f32 accumulation,
    # bias add + relu on the VPU in f32.
    h = jnp.dot(x_ref[...], w1_ref[...], preferred_element_type=jnp.float32)
    h = jnp.maximum(h + b1_ref[...], 0.0)

    # Dropout: eval-mode identity (see TODO at top of file).

    # Second matmul: bf16 operands on the MXU, accumulate in f32 directly
    # into the output block.
    o_ref[...] += jnp.dot(h.astype(jnp.bfloat16), w2_ref[...],
                          preferred_element_type=jnp.float32)


def feed_forward(x, w1, b1, w2, b2, *, tm=256, tile_ff=2048):
    """x: (B, S, E); w1: (E, F); b1: (F,); w2: (F, E); b2: (E,).

    Weights are stored (in_features, out_features), i.e. transposed from
    PyTorch's nn.Linear (out, in), so the kernel computes x @ W + b directly.
    Streaming operands are cast to bf16; accumulation/output are f32.
    """
    B, S, E = x.shape
    F = w1.shape[1]
    M = B * S

    tile_ff = min(tile_ff, F)
    assert F % tile_ff == 0, "ff_dim must be divisible by tile_ff"

    # Row-tile size: whole (padded) M for small inputs, else tm rows.
    tm_eff = min(tm, _round_up(M, 32))
    M_pad = _round_up(M, tm_eff)

    x2d = x.reshape(M, E)
    if M_pad != M:
        x2d = jnp.pad(x2d, ((0, M_pad - M), (0, 0)))

    # bf16 streaming operands; f32 biases.
    x_bf = x2d.astype(jnp.bfloat16)
    w1_bf = w1.astype(jnp.bfloat16)
    w2_bf = w2.astype(jnp.bfloat16)
    b1_2d = b1.reshape(1, F).astype(jnp.float32)
    b2_2d = b2.reshape(1, E).astype(jnp.float32)

    grid = (M_pad // tm_eff, F // tile_ff)

    cost = pl.CostEstimate(
        flops=4 * M_pad * E * F,                  # two matmuls
        transcendentals=0,
        bytes_accessed=(2 * E * F * 2             # W1 + W2 (bf16)
                        + M_pad * E * 2           # x (bf16)
                        + M_pad * E * 4           # out (f32)
                        + (F + E) * 4),           # biases (f32)
    )

    out2d = pl.pallas_call(
        ffn_kernel,
        out_shape=jax.ShapeDtypeStruct((M_pad, E), jnp.float32),
        grid_spec=pltpu.PrefetchScalarGridSpec(
            num_scalar_prefetch=0,
            grid=grid,
            in_specs=[
                pl.BlockSpec((tm_eff, E), lambda i, k: (i, 0)),    # x row tile
                pl.BlockSpec((E, tile_ff), lambda i, k: (0, k)),   # W1 tile
                pl.BlockSpec((1, tile_ff), lambda i, k: (0, k)),   # b1 tile
                pl.BlockSpec((tile_ff, E), lambda i, k: (k, 0)),   # W2 tile
                pl.BlockSpec((1, E), lambda i, k: (0, 0)),         # b2
            ],
            out_specs=pl.BlockSpec((tm_eff, E), lambda i, k: (i, 0)),
        ),
        compiler_params=pltpu.CompilerParams(
            dimension_semantics=("parallel", "arbitrary"),
            vmem_limit_bytes=64 * 1024 * 1024,
        ),
        cost_estimate=cost,
    )(x_bf, w1_bf, b1_2d, w2_bf, b2_2d)

    return out2d[:M].reshape(B, S, E).astype(x.dtype)


def feed_forward_ref(x, w1, b1, w2, b2):
    h = jnp.maximum(x @ w1 + b1, 0.0)
    return h @ w2 + b2


if __name__ == "__main__":
    batch_size = 2
    seq_len = 10
    embedding_dim = 512
    ff_dim = 2048

    key = jax.random.PRNGKey(0)
    kx, kw1, kb1, kw2, kb2 = jax.random.split(key, 5)

    x = jax.random.normal(kx, (batch_size, seq_len, embedding_dim),
                          dtype=jnp.float32)

    # Deterministic init mimicking nn.Linear: U(-1/sqrt(fan_in), 1/sqrt(fan_in)).
    lim1 = 1.0 / (embedding_dim ** 0.5)
    w1 = jax.random.uniform(kw1, (embedding_dim, ff_dim),
                            minval=-lim1, maxval=lim1, dtype=jnp.float32)
    b1 = jax.random.uniform(kb1, (ff_dim,),
                            minval=-lim1, maxval=lim1, dtype=jnp.float32)

    lim2 = 1.0 / (ff_dim ** 0.5)
    w2 = jax.random.uniform(kw2, (ff_dim, embedding_dim),
                            minval=-lim2, maxval=lim2, dtype=jnp.float32)
    b2 = jax.random.uniform(kb2, (embedding_dim,),
                            minval=-lim2, maxval=lim2, dtype=jnp.float32)

    y = feed_forward(x, w1, b1, w2, b2)
    y = jax.block_until_ready(y)

    y_ref = feed_forward_ref(x, w1, b1, w2, b2)
    assert y.shape == (batch_size, seq_len, embedding_dim)
    # Tolerance loosened for bf16 weight/activation streaming (f32 accumulation).
    assert jnp.allclose(y, y_ref, atol=2e-2, rtol=2e-2), "mismatch vs reference"

    print("KERNEL_OK")
</pallas_src>

<mosaic_0001>
module attributes {stable_mosaic.version = 11 : i64} {
  func.func @ffn_kernel(%arg0: i32, %arg1: i32, %arg2: memref<32x512xbf16, #tpu.memory_space<vmem>>, %arg3: memref<512x2048xbf16, #tpu.memory_space<vmem>>, %arg4: memref<1x2048xf32, #tpu.memory_space<vmem>>, %arg5: memref<2048x512xbf16, #tpu.memory_space<vmem>>, %arg6: memref<1x512xf32, #tpu.memory_space<vmem>>, %arg7: memref<32x512xf32, #tpu.memory_space<vmem>>) attributes {dimension_semantics = [#tpu.dimension_semantics<parallel>, #tpu.dimension_semantics<arbitrary>], iteration_bounds = array<i64: 1, 1>, scalar_prefetch = 0 : i64, scratch_operands = 0 : i64, tpu.core_type = #tpu.core_type<tc>, window_params = [{transform_indices = @transform_0, window_bounds = array<i64: 32, 512>}, {transform_indices = @transform_1, window_bounds = array<i64: 512, 2048>}, {transform_indices = @transform_2, window_bounds = array<i64: 1, 2048>}, {transform_indices = @transform_3, window_bounds = array<i64: 2048, 512>}, {pipeline_mode = #tpu.pipeline_mode<synchronous>, transform_indices = @transform_4, window_bounds = array<i64: 1, 512>}, {transform_indices = @transform_5, window_bounds = array<i64: 32, 512>}]} {
    %c0_i32 = arith.constant 0 : i32
    %0 = arith.cmpi eq, %arg1, %c0_i32 : i32
    %1 = arith.extui %0 : i1 to i32
    %c0_i32_0 = arith.constant 0 : i32
    %2 = arith.cmpi ne, %1, %c0_i32_0 : i32
    scf.if %2 {
      %c0_14 = arith.constant 0 : index
      %c0_15 = arith.constant 0 : index
      %17 = vector.load %arg6[%c0_14, %c0_15] : memref<1x512xf32, #tpu.memory_space<vmem>>, vector<1x512xf32>
      %18 = vector.shape_cast %17 : vector<1x512xf32> to vector<1x512xf32>
      %19 = vector.broadcast %18 : vector<1x512xf32> to vector<32x512xf32>
      %c0_16 = arith.constant 0 : index
      %c0_17 = arith.constant 0 : index
      %20 = vector.load %arg7[%c0_16, %c0_17] : memref<32x512xf32, #tpu.memory_space<vmem>>, vector<32x512xf32>
      tpu.vector_store %arg7[%c0_16, %c0_17], %19 {strides = array<i32>} : memref<32x512xf32, #tpu.memory_space<vmem>>, vector<32x512xf32>,
    } else {
    }
    %c0 = arith.constant 0 : index
    %c0_1 = arith.constant 0 : index
    %3 = vector.load %arg2[%c0, %c0_1] : memref<32x512xbf16, #tpu.memory_space<vmem>>, vector<32x512xbf16>
    %c0_2 = arith.constant 0 : index
    %c0_3 = arith.constant 0 : index
    %4 = vector.load %arg3[%c0_2, %c0_3] : memref<512x2048xbf16, #tpu.memory_space<vmem>>, vector<512x2048xbf16>
    %cst = arith.constant dense<0.000000e+00> : vector<32x2048xf32>
    %5 = tpu.matmul %3, %4, %cst {dimension_numbers = #tpu.dot_dimension_numbers<[1], [0], [0], [1], [0, 0, 1, 1], [], []>} : vector<32x512xbf16>, vector<512x2048xbf16>, vector<32x2048xf32> -> vector<32x2048xf32>
    %c0_4 = arith.constant 0 : index
    %c0_5 = arith.constant 0 : index
    %6 = vector.load %arg4[%c0_4, %c0_5] : memref<1x2048xf32, #tpu.memory_space<vmem>>, vector<1x2048xf32>
    %7 = vector.broadcast %6 : vector<1x2048xf32> to vector<32x2048xf32>
    %8 = arith.addf %5, %7 : vector<32x2048xf32>
    %cst_6 = arith.constant 0.000000e+00 : f32
    %9 = vector.broadcast %cst_6 : f32 to vector<32x2048xf32>
    %10 = arith.maximumf %8, %9 : vector<32x2048xf32>
    %c0_7 = arith.constant 0 : index
    %c0_8 = arith.constant 0 : index
    %11 = vector.load %arg7[%c0_7, %c0_8] : memref<32x512xf32, #tpu.memory_space<vmem>>, vector<32x512xf32>
    %12 = arith.truncf %10 : vector<32x2048xf32> to vector<32x2048xbf16>
    %c0_9 = arith.constant 0 : index
    %c0_10 = arith.constant 0 : index
    %13 = vector.load %arg5[%c0_9, %c0_10] : memref<2048x512xbf16, #tpu.memory_space<vmem>>, vector<2048x512xbf16>
    %cst_11 = arith.constant dense<0.000000e+00> : vector<32x512xf32>
    %14 = tpu.matmul %12, %13, %cst_11 {dimension_numbers = #tpu.dot_dimension_numbers<[1], [0], [0], [1], [0, 0, 1, 1], [], []>} : vector<32x2048xbf16>, vector<2048x512xbf16>, vector<32x512xf32> -> vector<32x512xf32>
    %15 = arith.addf %11, %14 : vector<32x512xf32>
    %c0_12 = arith.constant 0 : index
    %c0_13 = arith.constant 0 : index
    %16 = vector.load %arg7[%c0_12, %c0_13] : memref<32x512xf32, #tpu.memory_space<vmem>>, vector<32x512xf32>
    tpu.vector_store %arg7[%c0_12, %c0_13], %15 {strides = array<i32>} : memref<32x512xf32, #tpu.memory_space<vmem>>, vector<32x512xf32>,
    return
  }
  func.func @transform_0(%arg0: i32, %arg1: i32) -> (i32, i32) {
    %c0_i32 = arith.constant 0 : i32
    %c0_i32_0 = arith.constant 0 : i32
    return %arg0, %c0_i32 : i32, i32
  }
  func.func @transform_1(%arg0: i32, %arg1: i32) -> (i32, i32) {
    %c0_i32 = arith.constant 0 : i32
    %c0_i32_0 = arith.constant 0 : i32
    return %c0_i32, %arg1 : i32, i32
  }
  func.func @transform_2(%arg0: i32, %arg1: i32) -> (i32, i32) {
    %c0_i32 = arith.constant 0 : i32
    %c0_i32_0 = arith.constant 0 : i32
    return %c0_i32, %arg1 : i32, i32
  }
  func.func @transform_3(%arg0: i32, %arg1: i32) -> (i32, i32) {
    %c0_i32 = arith.constant 0 : i32
    %c0_i32_0 = arith.constant 0 : i32
    return %arg1, %c0_i32 : i32, i32
  }
  func.func @transform_4(%arg0: i32, %arg1: i32) -> (i32, i32) {
    %c0_i32 = arith.constant 0 : i32
    %c0_i32_0 = arith.constant 0 : i32
    %c0_i32_1 = arith.constant 0 : i32
    return %c0_i32, %c0_i32_0 : i32, i32
  }
  func.func @transform_5(%arg0: i32, %arg1: i32) -> (i32, i32) {
    %c0_i32 = arith.constant 0 : i32
    %c0_i32_0 = arith.constant 0 : i32
    return %arg0, %c0_i32 : i32, i32
  }
}

</mosaic_0001>

<bundles_post_ra>
// kernel: tpu_custom_call.1
= control target key start
LH: loop header
LB: loop body
LE: loop exit
PB: predicated region body
PF: predicated region fallthrough
CT: control target
= control target key end

     0   :  { %10 = vsyncpa [#allocation3], 0  ;;  %s10969_s0 = inlined_call_operand.hbm [shape: bf16[32,512], index: 0, kind: input, shape index: {}]   ;;  %s10970_s1 = inlined_call_operand.hbm [shape: bf16[512,2048], index: 1, kind: input, shape index: {}]   ;;  %s10971_s2 = inlined_call_operand.hbm [shape: f32[1,2048], index: 2, kind: input, shape index: {}]   ;;  %s10972_s3 = inlined_call_operand.hbm [shape: bf16[2048,512], index: 3, kind: input, shape index: {}]   ;;  %s10973_s4 = inlined_call_operand.hbm [shape: f32[1,512], index: 4, kind: input, shape index: {}]   ;;  %s10974_s5 = inlined_call_operand.hbm [shape: f32[32,512], index: 5, kind: output, shape index: {}]  }
   0x1   :  { %11 = vsyncpa [#allocation6], 0 }
   0x2   :  { %12 = vsyncpa [#allocation9], 0 }
   0x3   :  { %13 = vsyncpa [#allocation4], 0  ;;  %s10483_s18 = smov [#allocation5]   ;;  %s10343_s22 = scalar_lea.hbm %s10970_s1, 65536 }
   0x4   :  { %s31_s19 = sshll.u32 %s10483_s18, 4  ;;  %p10344_p0 = scmp.ne.s32.totalorder %s10970_s1, %s10343_s22  ;;  %s32_s19 = int_to_ptr.vmem [resolvable:$true] %s31_s19 }
   0x5   :  { %p10347_p1 = scmp.lt.u32.totalorder %s10343_s22, %s10970_s1 }
   0x7   :  { %p10349_p2 = pnand %p10347_p1, %p10344_p0 }
   0x9   :  { %10352 = shalt.err (!%p10349_p2)
}
   0xa   :  { %s10353_s27 = scalar_lea.vmem %s32_s19, 65536  ;;  %p10358_p4 = scmp.lt.s32.totalorder %s32_s19, %s32_s19 }
   0xb   :  { %p10354_p3 = scmp.ne.s32.totalorder %s32_s19, %s10353_s27  ;;  %p10359_p5 = scmp.lt.s32.totalorder %s10353_s27, %s10353_s27 }
   0xd   :  { %p10360_p6 = por %p10359_p5, %p10358_p4 }
   0xf   :  { %p10361_p7 = pnand %p10360_p6, %p10354_p3 }
  0x11   :  { %10364 = shalt.err (!%p10361_p7)
}
  0x12   :  { %s10484_s28 = smov 1024   ;;  %s10485_s29 = smov 64  }
  0x13   :  { %37 = dma.hbm_to_vmem [thread:$0]  %s10970_s1, 65536, %s32_s19, [#allocation6], %s10484_s28, %s10484_s28, %s10485_s29  }
  0x14   :  { %s10486_s7 = smov [#allocation8]   ;;  %s10487_s9 = smov [#allocation2]  }
  0x15   :  { %s53_s8 = sshll.u32 %s10486_s7, 4  ;;  %s19_s10 = sshll.u32 %s10487_s9, 4  ;;  %s54_s8 = int_to_ptr.vmem [resolvable:$true] %s53_s8  ;;  %s20_s10 = int_to_ptr.vmem [resolvable:$true] %s19_s10 }
  0x16   :  { %s10365_s13 = scalar_lea.hbm %s10972_s3, 65536 }
  0x17   :  { %p10366_p8 = scmp.ne.s32.totalorder %s10972_s3, %s10365_s13  ;;  %p10369_p9 = scmp.lt.u32.totalorder %s10365_s13, %s10972_s3 }
  0x19   :  { %p10371_p10 = pnand %p10369_p9, %p10366_p8 }
  0x1b   :  { %10374 = shalt.err (!%p10371_p10)
}
  0x1c   :  { %s10375_s1 = scalar_lea.vmem %s54_s8, 65536  ;;  %p10380_p12 = scmp.lt.s32.totalorder %s54_s8, %s54_s8 }
  0x1d   :  { %p10376_p11 = scmp.ne.s32.totalorder %s54_s8, %s10375_s1  ;;  %p10381_p13 = scmp.lt.s32.totalorder %s10375_s1, %s10375_s1 }
  0x1f   :  { %p10382_p0 = por %p10381_p13, %p10380_p12 }
  0x21   :  { %p10383_p1 = pnand %p10382_p0, %p10376_p11 }
  0x23   :  { %10386 = shalt.err (!%p10383_p1)
}
  0x24   :  { %s10488_s18 = smov 256   ;;  %s10489_s19 = smov 16  }
  0x25   :  { %59 = dma.hbm_to_vmem [thread:$0]  %s10972_s3, 65536, %s54_s8, [#allocation9], %s10488_s18, %s10488_s18, %s10489_s19  }
  0x26   :  { %s10387_s24 = scalar_lea.hbm %s10969_s0, 1024 }
  0x27   :  { %p10388_p2 = scmp.ne.s32.totalorder %s10969_s0, %s10387_s24  ;;  %p10391_p3 = scmp.lt.u32.totalorder %s10387_s24, %s10969_s0 }
  0x29   :  { %p10393_p4 = pnand %p10391_p3, %p10388_p2 }
  0x2b   :  { %10396 = shalt.err (!%p10393_p4)
}
  0x2c   :  { %s10397_s29 = scalar_lea.vmem %s20_s10, 1024  ;;  %p10402_p6 = scmp.lt.s32.totalorder %s20_s10, %s20_s10 }
  0x2d   :  { %p10398_p5 = scmp.ne.s32.totalorder %s20_s10, %s10397_s29  ;;  %p10403_p7 = scmp.lt.s32.totalorder %s10397_s29, %s10397_s29 }
  0x2f   :  { %p10404_p8 = por %p10403_p7, %p10402_p6 }
  0x31   :  { %p10405_p9 = pnand %p10404_p8, %p10398_p5 }
  0x33   :  { %10408 = shalt.err (!%p10405_p9)
}
  0x34   :  { %25 = dma.hbm_to_vmem [thread:$0]  %s10969_s0, 1024, %s20_s10, [#allocation3], %s10488_s18, %s10488_s18, %s10489_s19  }
  0x35   :  { %s10490_s6 = smov [#allocation7]   ;;  %s10491_s8 = smov [#allocation10]  }
  0x36   :  { %s44_s7 = sshll.u32 %s10490_s6, 4  ;;  %s66_s9 = sshll.u32 %s10491_s8, 4  ;;  %s45_s7 = int_to_ptr.vmem [resolvable:$true] %s44_s7  ;;  %s67_s9 = int_to_ptr.vmem [resolvable:$true] %s66_s9 }
  0x37   :  { %s10409_s13 = scalar_lea.hbm %s10971_s2, 256 }
  0x38   :  { %p10410_p10 = scmp.ne.s32.totalorder %s10971_s2, %s10409_s13  ;;  %p10413_p11 = scmp.lt.u32.totalorder %s10409_s13, %s10971_s2 }
  0x3a   :  { %p10415_p12 = pnand %p10413_p11, %p10410_p10 }
  0x3c   :  { %10418 = shalt.err (!%p10415_p12)
}
  0x3d   :  { %s10419_s0 = scalar_lea.vmem %s45_s7, 256  ;;  %p10424_p0 = scmp.lt.s32.totalorder %s45_s7, %s45_s7 }
  0x3e   :  { %p10420_p13 = scmp.ne.s32.totalorder %s45_s7, %s10419_s0  ;;  %p10425_p1 = scmp.lt.s32.totalorder %s10419_s0, %s10419_s0 }
  0x40   :  { %p10426_p2 = por %p10425_p1, %p10424_p0 }
  0x42   :  { %p10427_p3 = pnand %p10426_p2, %p10420_p13 }
  0x44   :  { %10430 = shalt.err (!%p10427_p3)
}
  0x45   :  { %47 = dma.hbm_to_vmem [thread:$0]  %s10971_s2, 256, %s45_s7, [#allocation6]  }
  0x46   :  { %s10431_s20 = scalar_lea.hbm %s10973_s4, 64 }
  0x47   :  { %p10432_p4 = scmp.ne.s32.totalorder %s10973_s4, %s10431_s20  ;;  %p10435_p5 = scmp.lt.u32.totalorder %s10431_s20, %s10973_s4 }
  0x49   :  { %p10437_p6 = pnand %p10435_p5, %p10432_p4 }
  0x4b   :  { %10440 = shalt.err (!%p10437_p6)
}
  0x4c   :  { %s10441_s25 = scalar_lea.vmem %s67_s9, 64  ;;  %p10446_p8 = scmp.lt.s32.totalorder %s67_s9, %s67_s9 }
  0x4d   :  { %p10442_p7 = scmp.ne.s32.totalorder %s67_s9, %s10441_s25  ;;  %p10447_p9 = scmp.lt.s32.totalorder %s10441_s25, %s10441_s25 }
  0x4f   :  { %p10448_p10 = por %p10447_p9, %p10446_p8 }
  0x51   :  { %p10449_p11 = pnand %p10448_p10, %p10442_p7 }
  0x53   :  { %10452 = shalt.err (!%p10449_p11)
}
  0x54   :  { %69 = dma.hbm_to_vmem [thread:$0]  %s10973_s4, 64, %s67_s9, [#allocation9]  }
  0x55   :  { %10475 = dma.done.wait [#allocation3], 1024  }
  0x56   :  { %10476 = vsyncadd [#allocation3], 4294966272 }
  0x57   :  { %10477 = dma.done.wait [#allocation6], 65792  }
  0x58   :  { %10478 = vsyncadd [#allocation6], 4294901504 }
  0x59   :  { %10479 = dma.done.wait [#allocation9], 65600  }
  0x5a   :  { %10480 = vsyncadd [#allocation9], 4294901696  ;;  %v135_v0 = vld [vmem:[#allocation5] sm:$0xff]  ;;  %v136_v2 = vld [vmem:[#allocation5 + $0x8] sm:$0xff]  ;;  %s10492_s4 = smov [#allocation11]  }
  0x5b   :  { %v143_v1 = vld [vmem:[#allocation5 + $0x40] sm:$0xff]  ;;  %v144_v4 = vld [vmem:[#allocation5 + $0x48] sm:$0xff]  ;;  %s8248_s27 = sshll.u32 %s10492_s4, 4  ;;  %s8249_s27 = int_to_ptr.vmem [resolvable:$true] %s8248_s27 }
  0x5c   :  { %v8271_v3 = vcombine.high %v135_v0, %v143_v1  ;;  %v8270_v5 = vcombine.low %v135_v0, %v143_v1  ;;  %v151_v6 = vld [vmem:[#allocation5 + $0x80] sm:$0xff]  ;;  %v8273_v8 = vcombine.high %v136_v2, %v144_v4  ;;  %v8272_v9 = vcombine.low %v136_v2, %v144_v4  ;;  %v152_v11 = vld [vmem:[#allocation5 + $0x88] sm:$0xff]  ;;  %s10453_s28 = scalar_lea.vmem %s8249_s27, 2048  ;;  %p10458_p13 = scmp.lt.s32.totalorder %s8249_s27, %s8249_s27 }
  0x5d   :  { %v159_v7 = vld [vmem:[#allocation5 + $0xc0] sm:$0xff]  ;;  %v160_v12 = vld [vmem:[#allocation5 + $0xc8] sm:$0xff]  ;;  %p10454_p12 = scmp.ne.s32.totalorder %s8249_s27, %s10453_s28  ;;  %p10459_p0 = scmp.lt.s32.totalorder %s10453_s28, %s10453_s28 }
  0x5e   :  { %v8287_v10 = vcombine.high %v151_v6, %v159_v7  ;;  %v167_v13 = vld [vmem:[#allocation5 + $0x100] sm:$0xff]  ;;  %3331 = vmatprep.subr.bf16.mxu0 %v8271_v3  ;;  %v8289_v14 = vcombine.high %v152_v11, %v160_v12  ;;  %v168_v16 = vld [vmem:[#allocation5 + $0x108] sm:$0xff]  ;;  %3437 = vmatprep.subr.bf16.mxu1 %v8273_v8  ;;  %v8286_v18 = vcombine.low %v151_v6, %v159_v7 }
  0x5f   :  { %v175_v15 = vld [vmem:[#allocation5 + $0x140] sm:$0xff]  ;;  %v176_v17 = vld [vmem:[#allocation5 + $0x148] sm:$0xff]  ;;  %3332 = vmatpush1.bf16.msra.mxu0 %v8270_v5  ;;  %3438 = vmatpush1.bf16.msra.mxu1 %v8272_v9  ;;  %v8288_v19 = vcombine.low %v152_v11, %v160_v12  ;;  %p10460_p1 = por %p10459_p0, %p10458_p13 }
  0x60   :  { %3333 = vmatprep.subr.bf16.mxu0 %v8287_v10  ;;  %v8303_v20 = vcombine.high %v167_v13, %v175_v15  ;;  %3439 = vmatprep.subr.bf16.mxu1 %v8289_v14  ;;  %v8305_v21 = vcombine.high %v168_v16, %v176_v17  ;;  %v183_v22 = vld [vmem:[#allocation5 + $0x180] sm:$0xff]  ;;  %v184_v24 = vld [vmem:[#allocation5 + $0x188] sm:$0xff]  ;;  %v8302_v26 = vcombine.low %v167_v13, %v175_v15 }
  0x61   :  { %v191_v23 = vld [vmem:[#allocation5 + $0x1c0] sm:$0xff]  ;;  %v192_v25 = vld [vmem:[#allocation5 + $0x1c8] sm:$0xff]  ;;  %v8304_v27 = vcombine.low %v168_v16, %v176_v17  ;;  %p10461_p2 = pnand %p10460_p1, %p10454_p12 }
  0x62   :  { %v8319_v28 = vcombine.high %v183_v22, %v191_v23  ;;  %v8321_v29 = vcombine.high %v184_v24, %v192_v25  ;;  %v199_v30 = vld [vmem:[#allocation5 + $0x200] sm:$0xff]  ;;  %v200_v32 = vld [vmem:[#allocation5 + $0x208] sm:$0xff]  ;;  %v8318_v34 = vcombine.low %v183_v22, %v191_v23  ;;  %v8320_v35 = vcombine.low %v184_v24, %v192_v25 }
  0x63   :  { %3334 = vmatpush1.bf16.msra.mxu0 %v8286_v18  ;;  %3440 = vmatpush1.bf16.msra.mxu1 %v8288_v19  ;;  %v207_v31 = vld [vmem:[#allocation5 + $0x240] sm:$0xff]  ;;  %v208_v33 = vld [vmem:[#allocation5 + $0x248] sm:$0xff] }
  0x64   :  { %3335 = vmatprep.subr.bf16.mxu0 %v8303_v20  ;;  %3441 = vmatprep.subr.bf16.mxu1 %v8305_v21  ;;  %v8335_v36 = vcombine.high %v199_v30, %v207_v31  ;;  %v8337_v37 = vcombine.high %v200_v32, %v208_v33  ;;  %v215_v38 = vld [vmem:[#allocation5 + $0x280] sm:$0xff]  ;;  %v216_v40 = vld [vmem:[#allocation5 + $0x288] sm:$0xff]  ;;  %v8334_v42 = vcombine.low %v199_v30, %v207_v31 }
  0x65   :  { %v223_v39 = vld [vmem:[#allocation5 + $0x2c0] sm:$0xff]  ;;  %v224_v41 = vld [vmem:[#allocation5 + $0x2c8] sm:$0xff]  ;;  %v8336_v43 = vcombine.low %v200_v32, %v208_v33 }
  0x66   :  { %v8351_v44 = vcombine.high %v215_v38, %v223_v39  ;;  %v8353_v45 = vcombine.high %v216_v40, %v224_v41  ;;  %v231_v46 = vld [vmem:[#allocation5 + $0x300] sm:$0xff]  ;;  %v232_v48 = vld [vmem:[#allocation5 + $0x308] sm:$0xff]  ;;  %v8350_v50 = vcombine.low %v215_v38, %v223_v39  ;;  %v8352_v51 = vcombine.low %v216_v40, %v224_v41 }
  0x67   :  { %3336 = vmatpush1.bf16.msra.mxu0 %v8302_v26  ;;  %3442 = vmatpush1.bf16.msra.mxu1 %v8304_v27  ;;  %v239_v47 = vld [vmem:[#allocation5 + $0x340] sm:$0xff]  ;;  %v240_v49 = vld [vmem:[#allocation5 + $0x348] sm:$0xff] }
  0x68   :  { %3337 = vmatprep.subr.bf16.mxu0 %v8319_v28  ;;  %3443 = vmatprep.subr.bf16.mxu1 %v8321_v29  ;;  %v8367_v52 = vcombine.high %v231_v46, %v239_v47  ;;  %v8369_v53 = vcombine.high %v232_v48, %v240_v49  ;;  %v247_v54 = vld [vmem:[#allocation5 + $0x380] sm:$0xff]  ;;  %v248_v57 = vld [vmem:[#allocation5 + $0x388] sm:$0xff]  ;;  %v8366_v59 = vcombine.low %v231_v46, %v239_v47 }
  0x69   :  { %v255_v55 = vld [vmem:[#allocation5 + $0x3c0] sm:$0xff]  ;;  %v256_v58 = vld [vmem:[#allocation5 + $0x3c8] sm:$0xff]  ;;  %v8368_v60 = vcombine.low %v232_v48, %v240_v49 }
  0x6a   :  { %v9546_v56 = vld [vmem:[#allocation2 + $0x4] ss:$16 sps:$4 sm:$0xff]   ;;  %v8383_v61 = vcombine.high %v247_v54, %v255_v55  ;;  %v8385_v62 = vcombine.high %v248_v57, %v256_v58  ;;  %v264_v1 = vld [vmem:[#allocation5 + $0x408] sm:$0xff]  ;;  %v8382_v3 = vcombine.low %v247_v54, %v255_v55  ;;  %v8384_v4 = vcombine.low %v248_v57, %v256_v58 }
  0x6b   :  { %3338 = vmatpush1.bf16.msra.mxu0 %v8318_v34  ;;  %3444 = vmatpush1.bf16.msra.mxu1 %v8320_v35  ;;  %v263_v63 = vld [vmem:[#allocation5 + $0x400] sm:$0xff]  ;;  %v272_v2 = vld [vmem:[#allocation5 + $0x448] sm:$0xff] }
  0x6c   :  { %3339 = vmatprep.subr.bf16.mxu0 %v8335_v36  ;;  %3445 = vmatprep.subr.bf16.mxu1 %v8337_v37  ;;  %v271_v0 = vld [vmem:[#allocation5 + $0x440] sm:$0xff]  ;;  %v8401_v6 = vcombine.high %v264_v1, %v272_v2  ;;  %v280_v9 = vld [vmem:[#allocation5 + $0x488] sm:$0xff]  ;;  %v8400_v12 = vcombine.low %v264_v1, %v272_v2 }
  0x6d   :  { %3363 = vmatprep.mubr.bf16.mxu0 %v9546_v56  ;;  %3469 = vmatprep.mubr.bf16.mxu1 %v9546_v56  ;;  %v8399_v5 = vcombine.high %v263_v63, %v271_v0  ;;  %v279_v7 = vld [vmem:[#allocation5 + $0x480] sm:$0xff]  ;;  %v288_v10 = vld [vmem:[#allocation5 + $0x4c8] sm:$0xff]  ;;  %v8398_v11 = vcombine.low %v263_v63, %v271_v0 }
  0x6e   :  { %v287_v8 = vld [vmem:[#allocation5 + $0x4c0] sm:$0xff]  ;;  %v8417_v14 = vcombine.high %v280_v9, %v288_v10  ;;  %v296_v17 = vld [vmem:[#allocation5 + $0x508] sm:$0xff]  ;;  %v8416_v20 = vcombine.low %v280_v9, %v288_v10 }
  0x6f   :  { %3340 = vmatpush1.bf16.msra.mxu0 %v8334_v42  ;;  %3446 = vmatpush1.bf16.msra.mxu1 %v8336_v43  ;;  %v8415_v13 = vcombine.high %v279_v7, %v287_v8  ;;  %v295_v15 = vld [vmem:[#allocation5 + $0x500] sm:$0xff]  ;;  %v304_v18 = vld [vmem:[#allocation5 + $0x548] sm:$0xff]  ;;  %v8414_v19 = vcombine.low %v279_v7, %v287_v8 }
  0x70   :  { %3341 = vmatprep.subr.bf16.mxu0 %v8351_v44  ;;  %3447 = vmatprep.subr.bf16.mxu1 %v8353_v45  ;;  %v303_v16 = vld [vmem:[#allocation5 + $0x540] sm:$0xff]  ;;  %v8433_v22 = vcombine.high %v296_v17, %v304_v18  ;;  %v312_v25 = vld [vmem:[#allocation5 + $0x588] sm:$0xff]  ;;  %v8432_v28 = vcombine.low %v296_v17, %v304_v18 }
  0x71   :  { %v8431_v21 = vcombine.high %v295_v15, %v303_v16  ;;  %v311_v23 = vld [vmem:[#allocation5 + $0x580] sm:$0xff]  ;;  %v320_v26 = vld [vmem:[#allocation5 + $0x5c8] sm:$0xff]  ;;  %v8430_v27 = vcombine.low %v295_v15, %v303_v16 }
  0x72   :  { %v319_v24 = vld [vmem:[#allocation5 + $0x5c0] sm:$0xff]  ;;  %v8449_v30 = vcombine.high %v312_v25, %v320_v26  ;;  %v328_v33 = vld [vmem:[#allocation5 + $0x608] sm:$0xff]  ;;  %v8448_v36 = vcombine.low %v312_v25, %v320_v26 }
  0x73   :  { %3342 = vmatpush1.bf16.msra.mxu0 %v8350_v50  ;;  %3448 = vmatpush1.bf16.msra.mxu1 %v8352_v51  ;;  %v8447_v29 = vcombine.high %v311_v23, %v319_v24  ;;  %v327_v31 = vld [vmem:[#allocation5 + $0x600] sm:$0xff]  ;;  %v336_v34 = vld [vmem:[#allocation5 + $0x648] sm:$0xff]  ;;  %v8446_v35 = vcombine.low %v311_v23, %v319_v24 }
  0x74   :  { %3343 = vmatprep.subr.bf16.mxu0 %v8367_v52  ;;  %3449 = vmatprep.subr.bf16.mxu1 %v8369_v53  ;;  %v335_v32 = vld [vmem:[#allocation5 + $0x640] sm:$0xff]  ;;  %v8465_v38 = vcombine.high %v328_v33, %v336_v34  ;;  %v344_v41 = vld [vmem:[#allocation5 + $0x688] sm:$0xff]  ;;  %v8464_v44 = vcombine.low %v328_v33, %v336_v34 }
  0x75   :  { %v8463_v37 = vcombine.high %v327_v31, %v335_v32  ;;  %v343_v39 = vld [vmem:[#allocation5 + $0x680] sm:$0xff]  ;;  %v352_v42 = vld [vmem:[#allocation5 + $0x6c8] sm:$0xff]  ;;  %v8462_v43 = vcombine.low %v327_v31, %v335_v32 }
  0x76   :  { %v351_v40 = vld [vmem:[#allocation5 + $0x6c0] sm:$0xff]  ;;  %v8481_v46 = vcombine.high %v344_v41, %v352_v42  ;;  %v360_v49 = vld [vmem:[#allocation5 + $0x708] sm:$0xff]  ;;  %v8480_v52 = vcombine.low %v344_v41, %v352_v42 }
  0x77   :  { %3344 = vmatpush1.bf16.msra.mxu0 %v8366_v59  ;;  %3450 = vmatpush1.bf16.msra.mxu1 %v8368_v60  ;;  %v8479_v45 = vcombine.high %v343_v39, %v351_v40  ;;  %v359_v47 = vld [vmem:[#allocation5 + $0x700] sm:$0xff]  ;;  %v368_v50 = vld [vmem:[#allocation5 + $0x748] sm:$0xff]  ;;  %v8478_v51 = vcombine.low %v343_v39, %v351_v40 }
  0x78   :  { %3345 = vmatprep.subr.bf16.mxu0 %v8383_v61  ;;  %3451 = vmatprep.subr.bf16.mxu1 %v8385_v62  ;;  %v367_v48 = vld [vmem:[#allocation5 + $0x740] sm:$0xff]  ;;  %v8497_v54 = vcombine.high %v360_v49, %v368_v50  ;;  %v376_v57 = vld [vmem:[#allocation5 + $0x788] sm:$0xff]  ;;  %v8496_v60 = vcombine.low %v360_v49, %v368_v50 }
  0x79   :  { %v8495_v53 = vcombine.high %v359_v47, %v367_v48  ;;  %v375_v55 = vld [vmem:[#allocation5 + $0x780] sm:$0xff]  ;;  %v384_v58 = vld [vmem:[#allocation5 + $0x7c8] sm:$0xff]  ;;  %v8494_v59 = vcombine.low %v359_v47, %v367_v48 }
  0x7a   :  { %v383_v56 = vld [vmem:[#allocation5 + $0x7c0] sm:$0xff]  ;;  %v8513_v62 = vcombine.high %v376_v57, %v384_v58  ;;  %v392_v1 = vld [vmem:[#allocation5 + $0x808] sm:$0xff] }
  0x7b   :  { %3346 = vmatpush1.bf16.msra.mxu0 %v8382_v3  ;;  %3452 = vmatpush1.bf16.msra.mxu1 %v8384_v4  ;;  %v8511_v61 = vcombine.high %v375_v55, %v383_v56  ;;  %v391_v63 = vld [vmem:[#allocation5 + $0x800] sm:$0xff]  ;;  %v400_v2 = vld [vmem:[#allocation5 + $0x848] sm:$0xff]  ;;  %v8510_v3 = vcombine.low %v375_v55, %v383_v56  ;;  %v8512_v4 = vcombine.low %v376_v57, %v384_v58 }
  0x7c   :  { %3347 = vmatprep.subr.bf16.mxu0 %v8399_v5  ;;  %3453 = vmatprep.subr.bf16.mxu1 %v8401_v6  ;;  %v399_v0 = vld [vmem:[#allocation5 + $0x840] sm:$0xff]  ;;  %v8529_v6 = vcombine.high %v392_v1, %v400_v2  ;;  %v408_v10 = vld [vmem:[#allocation5 + $0x888] sm:$0xff] }
  0x7d   :  { %v8527_v5 = vcombine.high %v391_v63, %v399_v0  ;;  %v407_v7 = vld [vmem:[#allocation5 + $0x880] sm:$0xff] }
  0x7e   :  { %v415_v8 = vld [vmem:[#allocation5 + $0x8c0] sm:$0xff] }
  0x7f   :  { %3348 = vmatpush1.bf16.msra.mxu0 %v8398_v11  ;;  %3454 = vmatpush1.bf16.msra.mxu1 %v8400_v12  ;;  %v9548_v9 = vld [vmem:[#allocation2] ss:$16 sps:$4 sm:$0xff]   ;;  %v416_v11 = vld [vmem:[#allocation5 + $0x8c8] sm:$0xff]  ;;  %v8526_v12 = vcombine.low %v391_v63, %v399_v0  ;;  %v9549_v18 = vld [vmem:[#allocation2 + $0x24] ss:$16 sps:$4 sm:$0xff]  }
  0x80   :  { %3349 = vmatprep.subr.bf16.mxu0 %v8415_v13  ;;  %3455 = vmatprep.subr.bf16.mxu1 %v8417_v14  ;;  %v8528_v13 = vcombine.low %v392_v1, %v400_v2  ;;  %v8543_v14 = vcombine.high %v407_v7, %v415_v8  ;;  %v8545_v15 = vcombine.high %v408_v10, %v416_v11  ;;  %v423_v16 = vld [vmem:[#allocation5 + $0x900] sm:$0xff] }
  0x81   :  { %v431_v17 = vld [vmem:[#allocation5 + $0x940] sm:$0xff] }
  0x82   :  { %v8559_v23 = vcombine.high %v423_v16, %v431_v17  ;;  %v439_v25 = vld [vmem:[#allocation5 + $0x980] sm:$0xff] }
  0x83   :  { %3350 = vmatpush1.bf16.msra.mxu0 %v8414_v19  ;;  %3456 = vmatpush1.bf16.msra.mxu1 %v8416_v20  ;;  %v424_v19 = vld [vmem:[#allocation5 + $0x908] sm:$0xff]  ;;  %v447_v26 = vld [vmem:[#allocation5 + $0x9c0] sm:$0xff] }
  0x84   :  { %3351 = vmatprep.subr.bf16.mxu0 %v8431_v21  ;;  %3457 = vmatprep.subr.bf16.mxu1 %v8433_v22  ;;  %v432_v20 = vld [vmem:[#allocation5 + $0x948] sm:$0xff]  ;;  %v8542_v21 = vcombine.low %v407_v7, %v415_v8  ;;  %v8544_v22 = vcombine.low %v408_v10, %v416_v11  ;;  %v455_v31 = vld [vmem:[#allocation5 + $0xa00] sm:$0xff]  ;;  %v8575_v33 = vcombine.high %v439_v25, %v447_v26 }
  0x85   :  { %v8561_v24 = vcombine.high %v424_v19, %v432_v20  ;;  %v8560_v32 = vcombine.low %v424_v19, %v432_v20  ;;  %v463_v34 = vld [vmem:[#allocation5 + $0xa40] sm:$0xff]  ;;  %v8574_v39 = vcombine.low %v439_v25, %v447_v26  ;;  %v552_v20 = vld [vmem:[#allocation5 + $0xd08] sm:$0xff] }
  0x86   :  { %v8591_v41 = vcombine.high %v455_v31, %v463_v34  ;;  %v471_v42 = vld [vmem:[#allocation5 + $0xa80] sm:$0xff]  ;;  %v8590_v47 = vcombine.low %v455_v31, %v463_v34 }
  0x87   :  { %3352 = vmatpush1.bf16.msra.mxu0 %v8430_v27  ;;  %3458 = vmatpush1.bf16.msra.mxu1 %v8432_v28  ;;  %v440_v27 = vld [vmem:[#allocation5 + $0x988] sm:$0xff]  ;;  %v487_v50 = vld [vmem:[#allocation5 + $0xb00] sm:$0xff] }
  0x88   :  { %3353 = vmatprep.subr.bf16.mxu0 %v8447_v29  ;;  %3459 = vmatprep.subr.bf16.mxu1 %v8449_v30  ;;  %v448_v28 = vld [vmem:[#allocation5 + $0x9c8] sm:$0xff]  ;;  %v9551_v29 = vld [vmem:[#allocation2 + $0x20] ss:$16 sps:$4 sm:$0xff]   ;;  %v8558_v30 = vcombine.low %v423_v16, %v431_v17 }
  0x89   :  { %v8576_v40 = vcombine.low %v440_v27, %v448_v28  ;;  %v503_v58 = vld [vmem:[#allocation5 + $0xb80] sm:$0xff] }
  0x8a   :  { %v519_v2 = vld [vmem:[#allocation5 + $0xc00] sm:$0xff] }
  0x8b   :  { %3354 = vmatpush1.bf16.msra.mxu0 %v8446_v35  ;;  %3460 = vmatpush1.bf16.msra.mxu1 %v8448_v36  ;;  %v456_v35 = vld [vmem:[#allocation5 + $0xa08] sm:$0xff]  ;;  %v535_v10 = vld [vmem:[#allocation5 + $0xc80] sm:$0xff] }
  0x8c   :  { %3355 = vmatprep.subr.bf16.mxu0 %v8463_v37  ;;  %3461 = vmatprep.subr.bf16.mxu1 %v8465_v38  ;;  %v464_v36 = vld [vmem:[#allocation5 + $0xa48] sm:$0xff]  ;;  %v8577_v37 = vcombine.high %v440_v27, %v448_v28  ;;  %v543_v11 = vld [vmem:[#allocation5 + $0xcc0] sm:$0xff] }
  0x8d   :  { %v9552_v38 = vld [vmem:[#allocation2 + $0xc] ss:$16 sps:$4 sm:$0xff]   ;;  %v8592_v48 = vcombine.low %v456_v35, %v464_v36  ;;  %v8671_v17 = vcombine.high %v535_v10, %v543_v11  ;;  %v559_v19 = vld [vmem:[#allocation5 + $0xd40] sm:$0xff] }
  0x8e   :  { %v567_v26 = vld [vmem:[#allocation5 + $0xd80] sm:$0xff]  ;;  %v568_v28 = vld [vmem:[#allocation5 + $0xd88] sm:$0xff] }
  0x8f   :  { %3356 = vmatpush1.bf16.msra.mxu0 %v8462_v43  ;;  %3462 = vmatpush1.bf16.msra.mxu1 %v8464_v44  ;;  %v479_v43 = vld [vmem:[#allocation5 + $0xac0] sm:$0xff]  ;;  %v472_v44 = vld [vmem:[#allocation5 + $0xa88] sm:$0xff] }
  0x90   :  { %3357 = vmatprep.subr.bf16.mxu0 %v8479_v45  ;;  %3463 = vmatprep.subr.bf16.mxu1 %v8481_v46  ;;  %v8593_v45 = vcombine.high %v456_v35, %v464_v36  ;;  %v480_v46 = vld [vmem:[#allocation5 + $0xac8] sm:$0xff]  ;;  %v8607_v49 = vcombine.high %v471_v42, %v479_v43  ;;  %v8606_v55 = vcombine.low %v471_v42, %v479_v43  ;;  %v575_v27 = vld [vmem:[#allocation5 + $0xdc0] sm:$0xff] }
  0x91   :  { %v8608_v56 = vcombine.low %v472_v44, %v480_v46  ;;  %v583_v34 = vld [vmem:[#allocation5 + $0xe00] sm:$0xff]  ;;  %v584_v36 = vld [vmem:[#allocation5 + $0xe08] sm:$0xff] }
  0x92   :  { %v591_v35 = vld [vmem:[#allocation5 + $0xe40] sm:$0xff] }
  0x93   :  { %3358 = vmatpush1.bf16.msra.mxu0 %v8478_v51  ;;  %3464 = vmatpush1.bf16.msra.mxu1 %v8480_v52  ;;  %v495_v51 = vld [vmem:[#allocation5 + $0xb40] sm:$0xff]  ;;  %v488_v52 = vld [vmem:[#allocation5 + $0xb08] sm:$0xff] }
  0x94   :  { %3359 = vmatprep.subr.bf16.mxu0 %v8495_v53  ;;  %3465 = vmatprep.subr.bf16.mxu1 %v8497_v54  ;;  %v8609_v53 = vcombine.high %v472_v44, %v480_v46  ;;  %v496_v54 = vld [vmem:[#allocation5 + $0xb48] sm:$0xff]  ;;  %v8623_v57 = vcombine.high %v487_v50, %v495_v51  ;;  %v8622_v63 = vcombine.low %v487_v50, %v495_v51  ;;  %v599_v42 = vld [vmem:[#allocation5 + $0xe80] sm:$0xff] }
  0x95   :  { %v8624_v0 = vcombine.low %v488_v52, %v496_v54  ;;  %v607_v43 = vld [vmem:[#allocation5 + $0xec0] sm:$0xff]  ;;  %v600_v44 = vld [vmem:[#allocation5 + $0xe88] sm:$0xff] }
  0x96   :  { %v608_v46 = vld [vmem:[#allocation5 + $0xec8] sm:$0xff]  ;;  %v615_v50 = vld [vmem:[#allocation5 + $0xf00] sm:$0xff] }
  0x97   :  { %3360 = vmatpush1.bf16.msra.mxu0 %v8494_v59  ;;  %3466 = vmatpush1.bf16.msra.mxu1 %v8496_v60  ;;  %v511_v59 = vld [vmem:[#allocation5 + $0xbc0] sm:$0xff]  ;;  %v504_v60 = vld [vmem:[#allocation5 + $0xb88] sm:$0xff] }
  0x98   :  { %3361 = vmatprep.subr.bf16.mxu0 %v8511_v61  ;;  %3467 = vmatprep.subr.bf16.mxu1 %v8513_v62  ;;  %v8625_v61 = vcombine.high %v488_v52, %v496_v54  ;;  %v512_v62 = vld [vmem:[#allocation5 + $0xbc8] sm:$0xff]  ;;  %v8639_v1 = vcombine.high %v503_v58, %v511_v59  ;;  %v8638_v7 = vcombine.low %v503_v58, %v511_v59  ;;  %v623_v51 = vld [vmem:[#allocation5 + $0xf40] sm:$0xff] }
  0x99   :  { %v8640_v8 = vcombine.low %v504_v60, %v512_v62  ;;  %v616_v52 = vld [vmem:[#allocation5 + $0xf08] sm:$0xff]  ;;  %v631_v58 = vld [vmem:[#allocation5 + $0xf80] sm:$0xff] }
  0x9a   :  { %v624_v54 = vld [vmem:[#allocation5 + $0xf48] sm:$0xff]  ;;  %v639_v59 = vld [vmem:[#allocation5 + $0xfc0] sm:$0xff] }
  0x9b   :  { %3362 = vmatpush1.bf16.msra.mxu0 %v8510_v3  ;;  %3468 = vmatpush1.bf16.msra.mxu1 %v8512_v4  ;;  %v527_v3 = vld [vmem:[#allocation5 + $0xc40] sm:$0xff]  ;;  %v520_v4 = vld [vmem:[#allocation5 + $0xc08] sm:$0xff] }
  0x9c   :  { %3384 = vmatprep.subr.bf16.mxu0 %v8527_v5  ;;  %3490 = vmatprep.subr.bf16.mxu1 %v8529_v6  ;;  %v8641_v5 = vcombine.high %v504_v60, %v512_v62  ;;  %v528_v6 = vld [vmem:[#allocation5 + $0xc48] sm:$0xff] }
  0x9d   :  { %v8656_v16 = vcombine.low %v520_v4, %v528_v6  ;;  %v632_v60 = vld [vmem:[#allocation5 + $0xf88] sm:$0xff] }
  0x9e   :  { %3364 = vmatmul.mubr.bf16.vlgmr.msra.gmra.mrb[0].mxu0 %v9548_v9  ;;  %3470 = vmatmul.mubr.bf16.vlgmr.msra.gmra.mrb[0].mxu1 %v9548_v9  ;;  %v8655_v9 = vcombine.high %v519_v2, %v527_v3  ;;  %v640_v62 = vld [vmem:[#allocation5 + $0xfc8] sm:$0xff] }
  0x9f   :  { %3385 = vmatpush1.bf16.msra.mxu0 %v8526_v12  ;;  %3491 = vmatpush1.bf16.msra.mxu1 %v8528_v13  ;;  %v536_v12 = vld [vmem:[#allocation5 + $0xc88] sm:$0xff]  ;;  %v8657_v13 = vcombine.high %v520_v4, %v528_v6  ;;  %v138_v4 = vld [vmem:[#allocation5 + $0x18] sm:$0xff] }
  0xa0   :  { %3386 = vmatprep.subr.bf16.mxu0 %v8543_v14  ;;  %3492 = vmatprep.subr.bf16.mxu1 %v8545_v15  ;;  %v544_v14 = vld [vmem:[#allocation5 + $0xcc8] sm:$0xff]  ;;  %v8654_v15 = vcombine.low %v519_v2, %v527_v3  ;;  %v137_v2 = vld [vmem:[#allocation5 + $0x10] sm:$0xff]  ;;  %v146_v6 = vld [vmem:[#allocation5 + $0x58] sm:$0xff] }
  0xa1   :  { %3373 = vmatprep.mubr.bf16.mxu0 %v9549_v18  ;;  %3479 = vmatprep.mubr.bf16.mxu1 %v9549_v18  ;;  %v551_v18 = vld [vmem:[#allocation5 + $0xd00] sm:$0xff]  ;;  %v145_v3 = vld [vmem:[#allocation5 + $0x50] sm:$0xff] }
  0xa2   :  { %v8687_v25 = vcombine.high %v551_v18, %v559_v19  ;;  %v8686_v31 = vcombine.low %v551_v18, %v559_v19  ;;  %v8276_v18 = vcombine.low %v138_v4, %v146_v6 }
  0xa3   :  { %3387 = vmatpush1.bf16.msra.mxu0 %v8542_v21  ;;  %3493 = vmatpush1.bf16.msra.mxu1 %v8544_v22  ;;  %v8673_v21 = vcombine.high %v536_v12, %v544_v14  ;;  %v560_v22 = vld [vmem:[#allocation5 + $0xd48] sm:$0xff] }
  0xa4   :  { %3388 = vmatprep.subr.bf16.mxu0 %v8559_v23  ;;  %3494 = vmatprep.subr.bf16.mxu1 %v8561_v24  ;;  %v8670_v23 = vcombine.low %v535_v10, %v543_v11  ;;  %v8672_v24 = vcombine.low %v536_v12, %v544_v14  ;;  %v8275_v10 = vcombine.high %v137_v2, %v145_v3  ;;  %v153_v11 = vld [vmem:[#allocation5 + $0x90] sm:$0xff] }
  0xa5   :  { %v161_v12 = vld [vmem:[#allocation5 + $0xd0] sm:$0xff]  ;;  %v8277_v14 = vcombine.high %v138_v4, %v146_v6 }
  0xa6   :  { %3374 = vmatmul.mubr.bf16.gmra.mrb[4].mxu0 %v9551_v29  ;;  %3480 = vmatmul.mubr.bf16.gmra.mrb[4].mxu1 %v9551_v29  ;;  %v8689_v29 = vcombine.high %v552_v20, %v560_v22  ;;  %v8291_v19 = vcombine.high %v153_v11, %v161_v12  ;;  %v265_v6 = vld [vmem:[#allocation5 + $0x410] sm:$0xff] }
  0xa7   :  { %3389 = vmatpush1.bf16.msra.mxu0 %v8558_v30  ;;  %3495 = vmatpush1.bf16.msra.mxu1 %v8560_v32  ;;  %v576_v30 = vld [vmem:[#allocation5 + $0xdc8] sm:$0xff]  ;;  %v8688_v32 = vcombine.low %v552_v20, %v560_v22  ;;  %v169_v20 = vld [vmem:[#allocation5 + $0x110] sm:$0xff]  ;;  %v170_v22 = vld [vmem:[#allocation5 + $0x118] sm:$0xff] }
  0xa8   :  { %3390 = vmatprep.subr.bf16.mxu0 %v8575_v33  ;;  %3496 = vmatprep.subr.bf16.mxu1 %v8577_v37  ;;  %v8703_v33 = vcombine.high %v567_v26, %v575_v27  ;;  %v8705_v37 = vcombine.high %v568_v28, %v576_v30 }
  0xa9   :  { %3416 = vmatprep.mubr.bf16.mxu0 %v9552_v38  ;;  %3522 = vmatprep.mubr.bf16.mxu1 %v9552_v38  ;;  %v592_v38 = vld [vmem:[#allocation5 + $0xe48] sm:$0xff] }
  0xab   :  { %3391 = vmatpush1.bf16.msra.mxu0 %v8574_v39  ;;  %3497 = vmatpush1.bf16.msra.mxu1 %v8576_v40  ;;  %v8702_v39 = vcombine.low %v567_v26, %v575_v27  ;;  %v8704_v40 = vcombine.low %v568_v28, %v576_v30  ;;  %v9557_v27 = vld [vmem:[#allocation2 + $0x28] ss:$16 sps:$4 sm:$0xff]   ;;  %v193_v30 = vld [vmem:[#allocation5 + $0x1d0] sm:$0xff] }
  0xac   :  { %3392 = vmatprep.subr.bf16.mxu0 %v8591_v41  ;;  %3498 = vmatprep.subr.bf16.mxu1 %v8593_v45  ;;  %v8719_v41 = vcombine.high %v583_v34, %v591_v35  ;;  %v8721_v45 = vcombine.high %v584_v36, %v592_v38 }
  0xaf   :  { %3393 = vmatpush1.bf16.msra.mxu0 %v8590_v47  ;;  %3499 = vmatpush1.bf16.msra.mxu1 %v8592_v48  ;;  %v8718_v47 = vcombine.low %v583_v34, %v591_v35  ;;  %v8720_v48 = vcombine.low %v584_v36, %v592_v38  ;;  %v209_v38 = vld [vmem:[#allocation5 + $0x250] sm:$0xff] }
  0xb0   :  { %3394 = vmatprep.subr.bf16.mxu0 %v8607_v49  ;;  %3500 = vmatprep.subr.bf16.mxu1 %v8609_v53  ;;  %v8735_v49 = vcombine.high %v599_v42, %v607_v43  ;;  %v8737_v53 = vcombine.high %v600_v44, %v608_v46 }
  0xb3   :  { %3395 = vmatpush1.bf16.msra.mxu0 %v8606_v55  ;;  %3501 = vmatpush1.bf16.msra.mxu1 %v8608_v56  ;;  %v8734_v55 = vcombine.low %v599_v42, %v607_v43  ;;  %v8736_v56 = vcombine.low %v600_v44, %v608_v46  ;;  %v225_v46 = vld [vmem:[#allocation5 + $0x2d0] sm:$0xff] }
  0xb4   :  { %3396 = vmatprep.subr.bf16.mxu0 %v8623_v57  ;;  %3502 = vmatprep.subr.bf16.mxu1 %v8625_v61  ;;  %v8751_v57 = vcombine.high %v615_v50, %v623_v51  ;;  %v8753_v61 = vcombine.high %v616_v52, %v624_v54 }
  0xb7   :  { %3397 = vmatpush1.bf16.msra.mxu0 %v8622_v63  ;;  %3503 = vmatpush1.bf16.msra.mxu1 %v8624_v0  ;;  %v8750_v63 = vcombine.low %v615_v50, %v623_v51  ;;  %v8752_v0 = vcombine.low %v616_v52, %v624_v54  ;;  %v10326_v50 = vld [vmem:[#allocation2 + $0x4] ss:$16 sps:$4 sm:$0xff]  }
  0xb8   :  { %3398 = vmatprep.subr.bf16.mxu0 %v8639_v1  ;;  %3504 = vmatprep.subr.bf16.mxu1 %v8641_v5  ;;  %v8767_v1 = vcombine.high %v631_v58, %v639_v59  ;;  %v8769_v5 = vcombine.high %v632_v60, %v640_v62  ;;  %v233_v54 = vld [vmem:[#allocation5 + $0x310] sm:$0xff] }
  0xbb   :  { %3399 = vmatpush1.bf16.msra.mxu0 %v8638_v7  ;;  %3505 = vmatpush1.bf16.msra.mxu1 %v8640_v8  ;;  %v8766_v7 = vcombine.low %v631_v58, %v639_v59  ;;  %v8768_v8 = vcombine.low %v632_v60, %v640_v62  ;;  %v242_v58 = vld [vmem:[#allocation5 + $0x358] sm:$0xff]  ;;  %v249_v62 = vld [vmem:[#allocation5 + $0x390] sm:$0xff] }
  0xbc   :  { %3400 = vmatprep.subr.bf16.mxu0 %v8655_v9  ;;  %3506 = vmatprep.subr.bf16.mxu1 %v8657_v13  ;;  %v9554_v9 = vld [vmem:[#allocation2 + $0x8] ss:$16 sps:$4 sm:$0xff]  }
  0xbd   :  { %v154_v13 = vld [vmem:[#allocation5 + $0x98] sm:$0xff] }
  0xbf   :  { %3401 = vmatpush1.bf16.msra.mxu0 %v8654_v15  ;;  %3507 = vmatpush1.bf16.msra.mxu1 %v8656_v16  ;;  %v162_v15 = vld [vmem:[#allocation5 + $0xd8] sm:$0xff]  ;;  %v8274_v16 = vcombine.low %v137_v2, %v145_v3 }
  0xc0   :  { %3402 = vmatprep.subr.bf16.mxu0 %v8671_v17  ;;  %3508 = vmatprep.subr.bf16.mxu1 %v8673_v21  ;;  %v9555_v17 = vld [vmem:[#allocation2 + $0x2c] ss:$16 sps:$4 sm:$0xff]   ;;  %v177_v21 = vld [vmem:[#allocation5 + $0x150] sm:$0xff]  ;;  %v8292_v26 = vcombine.low %v154_v13, %v162_v15 }
  0xc1   :  { %v8307_v28 = vcombine.high %v169_v20, %v177_v21  ;;  %v8306_v34 = vcombine.low %v169_v20, %v177_v21  ;;  %v258_v2 = vld [vmem:[#allocation5 + $0x3d8] sm:$0xff] }
  0xc3   :  { %3403 = vmatpush1.bf16.msra.mxu0 %v8670_v23  ;;  %3509 = vmatpush1.bf16.msra.mxu1 %v8672_v24  ;;  %v8293_v23 = vcombine.high %v154_v13, %v162_v15  ;;  %v178_v24 = vld [vmem:[#allocation5 + $0x158] sm:$0xff]  ;;  %v289_v15 = vld [vmem:[#allocation5 + $0x4d0] sm:$0xff] }
  0xc4   :  { %3404 = vmatprep.subr.bf16.mxu0 %v8687_v25  ;;  %3510 = vmatprep.subr.bf16.mxu1 %v8689_v29  ;;  %v8290_v25 = vcombine.low %v153_v11, %v161_v12  ;;  %v185_v29 = vld [vmem:[#allocation5 + $0x190] sm:$0xff]  ;;  %v8308_v35 = vcombine.low %v170_v22, %v178_v24 }
  0xc5   :  { %v8323_v36 = vcombine.high %v185_v29, %v193_v30  ;;  %v8322_v42 = vcombine.low %v185_v29, %v193_v30  ;;  %v313_v30 = vld [vmem:[#allocation5 + $0x590] sm:$0xff] }
  0xc7   :  { %3405 = vmatpush1.bf16.msra.mxu0 %v8686_v31  ;;  %3511 = vmatpush1.bf16.msra.mxu1 %v8688_v32  ;;  %v186_v31 = vld [vmem:[#allocation5 + $0x198] sm:$0xff]  ;;  %v8309_v32 = vcombine.high %v170_v22, %v178_v24  ;;  %v297_v22 = vld [vmem:[#allocation5 + $0x510] sm:$0xff] }
  0xc8   :  { %3406 = vmatprep.subr.bf16.mxu0 %v8703_v33  ;;  %3512 = vmatprep.subr.bf16.mxu1 %v8705_v37  ;;  %v194_v33 = vld [vmem:[#allocation5 + $0x1d8] sm:$0xff]  ;;  %v201_v37 = vld [vmem:[#allocation5 + $0x210] sm:$0xff] }
  0xc9   :  { %v8324_v43 = vcombine.low %v186_v31, %v194_v33  ;;  %v8339_v44 = vcombine.high %v201_v37, %v209_v38  ;;  %v8338_v51 = vcombine.low %v201_v37, %v209_v38  ;;  %v298_v24 = vld [vmem:[#allocation5 + $0x518] sm:$0xff]  ;;  %v329_v38 = vld [vmem:[#allocation5 + $0x610] sm:$0xff] }
  0xcb   :  { %3407 = vmatpush1.bf16.msra.mxu0 %v8702_v39  ;;  %3513 = vmatpush1.bf16.msra.mxu1 %v8704_v40  ;;  %v202_v39 = vld [vmem:[#allocation5 + $0x218] sm:$0xff]  ;;  %v8325_v40 = vcombine.high %v186_v31, %v194_v33  ;;  %v321_v31 = vld [vmem:[#allocation5 + $0x5d0] sm:$0xff] }
  0xcc   :  { %3408 = vmatprep.subr.bf16.mxu0 %v8719_v41  ;;  %3514 = vmatprep.subr.bf16.mxu1 %v8721_v45  ;;  %v210_v41 = vld [vmem:[#allocation5 + $0x258] sm:$0xff]  ;;  %v217_v45 = vld [vmem:[#allocation5 + $0x290] sm:$0xff]  ;;  %v8451_v37 = vcombine.high %v313_v30, %v321_v31 }
  0xcd   :  { %v8340_v52 = vcombine.low %v202_v39, %v210_v41  ;;  %v8354_v59 = vcombine.low %v217_v45, %v225_v46 }
  0xcf   :  { %3409 = vmatpush1.bf16.msra.mxu0 %v8718_v47  ;;  %3515 = vmatpush1.bf16.msra.mxu1 %v8720_v48  ;;  %v218_v47 = vld [vmem:[#allocation5 + $0x298] sm:$0xff]  ;;  %v8341_v48 = vcombine.high %v202_v39, %v210_v41  ;;  %v337_v39 = vld [vmem:[#allocation5 + $0x650] sm:$0xff] }
  0xd0   :  { %3410 = vmatprep.subr.bf16.mxu0 %v8735_v49  ;;  %3516 = vmatprep.subr.bf16.mxu1 %v8737_v53  ;;  %v226_v49 = vld [vmem:[#allocation5 + $0x2d8] sm:$0xff]  ;;  %v8355_v53 = vcombine.high %v217_v45, %v225_v46  ;;  %v8467_v45 = vcombine.high %v329_v38, %v337_v39  ;;  %v345_v46 = vld [vmem:[#allocation5 + $0x690] sm:$0xff] }
  0xd1   :  { %v8356_v60 = vcombine.low %v218_v47, %v226_v49 }
  0xd3   :  { %3411 = vmatpush1.bf16.msra.mxu0 %v8734_v55  ;;  %3517 = vmatpush1.bf16.msra.mxu1 %v8736_v56  ;;  %v241_v55 = vld [vmem:[#allocation5 + $0x350] sm:$0xff]  ;;  %v234_v56 = vld [vmem:[#allocation5 + $0x318] sm:$0xff] }
  0xd4   :  { %3412 = vmatprep.subr.bf16.mxu0 %v8751_v57  ;;  %3518 = vmatprep.subr.bf16.mxu1 %v8753_v61  ;;  %v8357_v57 = vcombine.high %v218_v47, %v226_v49  ;;  %v8371_v61 = vcombine.high %v233_v54, %v241_v55  ;;  %v8370_v3 = vcombine.low %v233_v54, %v241_v55  ;;  %v353_v47 = vld [vmem:[#allocation5 + $0x6d0] sm:$0xff] }
  0xd5   :  { %v8372_v4 = vcombine.low %v234_v56, %v242_v58  ;;  %v361_v54 = vld [vmem:[#allocation5 + $0x710] sm:$0xff] }
  0xd6   :  { %v369_v55 = vld [vmem:[#allocation5 + $0x750] sm:$0xff] }
  0xd7   :  { %3413 = vmatpush1.bf16.msra.mxu0 %v8750_v63  ;;  %3519 = vmatpush1.bf16.msra.mxu1 %v8752_v0  ;;  %v257_v63 = vld [vmem:[#allocation5 + $0x3d0] sm:$0xff]  ;;  %v250_v0 = vld [vmem:[#allocation5 + $0x398] sm:$0xff] }
  0xd8   :  { %3414 = vmatprep.subr.bf16.mxu0 %v8767_v1  ;;  %3520 = vmatprep.subr.bf16.mxu1 %v8769_v5  ;;  %v8373_v1 = vcombine.high %v234_v56, %v242_v58  ;;  %v8387_v5 = vcombine.high %v249_v62, %v257_v63  ;;  %v8386_v11 = vcombine.low %v249_v62, %v257_v63  ;;  %v362_v56 = vld [vmem:[#allocation5 + $0x718] sm:$0xff]  ;;  %v377_v62 = vld [vmem:[#allocation5 + $0x790] sm:$0xff] }
  0xd9   :  { %v8388_v12 = vcombine.low %v250_v0, %v258_v2  ;;  %v370_v58 = vld [vmem:[#allocation5 + $0x758] sm:$0xff]  ;;  %v385_v63 = vld [vmem:[#allocation5 + $0x7d0] sm:$0xff] }
  0xdb   :  { %3415 = vmatpush1.bf16.msra.mxu0 %v8766_v7  ;;  %3521 = vmatpush1.bf16.msra.mxu1 %v8768_v8  ;;  %v273_v7 = vld [vmem:[#allocation5 + $0x450] sm:$0xff]  ;;  %v266_v8 = vld [vmem:[#allocation5 + $0x418] sm:$0xff] }
  0xdc   :  { %3543 = vmatprep.subr.bf16.mxu0 %v8275_v10  ;;  %3649 = vmatprep.subr.bf16.mxu1 %v8277_v14  ;;  %v274_v10 = vld [vmem:[#allocation5 + $0x458] sm:$0xff]  ;;  %v8403_v13 = vcombine.high %v265_v6, %v273_v7  ;;  %v281_v14 = vld [vmem:[#allocation5 + $0x490] sm:$0xff] }
  0xdd   :  { %v8404_v20 = vcombine.low %v266_v8, %v274_v10  ;;  %v8419_v21 = vcombine.high %v281_v14, %v289_v15 }
  0xde   :  { %3417 = vmatmul.mubr.bf16.vlgmr.msra.gmra.mrb[0].mxu0 %v9554_v9  ;;  %3523 = vmatmul.mubr.bf16.vlgmr.msra.gmra.mrb[0].mxu1 %v9554_v9  ;;  %v8389_v9 = vcombine.high %v250_v0, %v258_v2  ;;  %v378_v0 = vld [vmem:[#allocation5 + $0x798] sm:$0xff] }
  0xdf   :  { %3544 = vmatpush1.bf16.msra.mxu0 %v8274_v16  ;;  %3650 = vmatpush1.bf16.msra.mxu1 %v8276_v18  ;;  %v282_v16 = vld [vmem:[#allocation5 + $0x498] sm:$0xff] }
  0xe0   :  { %3545 = vmatprep.subr.bf16.mxu0 %v8291_v19  ;;  %3651 = vmatprep.subr.bf16.mxu1 %v8293_v23  ;;  %v290_v18 = vld [vmem:[#allocation5 + $0x4d8] sm:$0xff]  ;;  %v8402_v19 = vcombine.low %v265_v6, %v273_v7  ;;  %v305_v23 = vld [vmem:[#allocation5 + $0x550] sm:$0xff] }
  0xe1   :  { %3426 = vmatprep.mubr.bf16.mxu0 %v9555_v17  ;;  %3532 = vmatprep.mubr.bf16.mxu1 %v9555_v17  ;;  %v8405_v17 = vcombine.high %v266_v8, %v274_v10  ;;  %v8435_v29 = vcombine.high %v297_v22, %v305_v23  ;;  %v386_v2 = vld [vmem:[#allocation5 + $0x7d8] sm:$0xff]  ;;  %v393_v6 = vld [vmem:[#allocation5 + $0x810] sm:$0xff] }
  0xe2   :  { %v401_v7 = vld [vmem:[#allocation5 + $0x850] sm:$0xff]  ;;  %v394_v8 = vld [vmem:[#allocation5 + $0x818] sm:$0xff] }
  0xe3   :  { %3546 = vmatpush1.bf16.msra.mxu0 %v8290_v25  ;;  %3652 = vmatpush1.bf16.msra.mxu1 %v8292_v26  ;;  %v8421_v25 = vcombine.high %v282_v16, %v290_v18  ;;  %v306_v26 = vld [vmem:[#allocation5 + $0x558] sm:$0xff] }
  0xe4   :  { %3547 = vmatprep.subr.bf16.mxu0 %v8307_v28  ;;  %3653 = vmatprep.subr.bf16.mxu1 %v8309_v32  ;;  %v8420_v28 = vcombine.low %v282_v16, %v290_v18  ;;  %v314_v32 = vld [vmem:[#allocation5 + $0x598] sm:$0xff]  ;;  %v8437_v33 = vcombine.high %v298_v24, %v306_v26 }
  0xe5   :  { %v402_v10 = vld [vmem:[#allocation5 + $0x858] sm:$0xff] }
  0xe6   :  { %3427 = vmatmul.mubr.bf16.gmra.mrb[4].mxu0 %v9557_v27  ;;  %3533 = vmatmul.mubr.bf16.gmra.mrb[4].mxu1 %v9557_v27  ;;  %v8418_v27 = vcombine.low %v281_v14, %v289_v15  ;;  %v409_v14 = vld [vmem:[#allocation5 + $0x890] sm:$0xff]  ;;  %v410_v16 = vld [vmem:[#allocation5 + $0x898] sm:$0xff] }
  0xe7   :  { %3548 = vmatpush1.bf16.msra.mxu0 %v8306_v34  ;;  %3654 = vmatpush1.bf16.msra.mxu1 %v8308_v35  ;;  %v322_v34 = vld [vmem:[#allocation5 + $0x5d8] sm:$0xff]  ;;  %v8434_v35 = vcombine.low %v297_v22, %v305_v23  ;;  %v417_v15 = vld [vmem:[#allocation5 + $0x8d0] sm:$0xff] }
  0xe8   :  { %3549 = vmatprep.subr.bf16.mxu0 %v8323_v36  ;;  %3655 = vmatprep.subr.bf16.mxu1 %v8325_v40  ;;  %v8436_v36 = vcombine.low %v298_v24, %v306_v26  ;;  %v330_v40 = vld [vmem:[#allocation5 + $0x618] sm:$0xff]  ;;  %v8453_v41 = vcombine.high %v314_v32, %v322_v34  ;;  %v425_v22 = vld [vmem:[#allocation5 + $0x910] sm:$0xff] }
  0xe9   :  { %3575 = vmatprep.mubr.bf16.mxu0 %v10326_v50  ;;  %3681 = vmatprep.mubr.bf16.mxu1 %v10326_v50  ;;  %v354_v50 = vld [vmem:[#allocation5 + $0x6d8] sm:$0xff]  ;;  %v433_v23 = vld [vmem:[#allocation5 + $0x950] sm:$0xff] }
  0xea   :  { %v418_v18 = vld [vmem:[#allocation5 + $0x8d8] sm:$0xff] }
  0xeb   :  { %3550 = vmatpush1.bf16.msra.mxu0 %v8322_v42  ;;  %3656 = vmatpush1.bf16.msra.mxu1 %v8324_v43  ;;  %v338_v42 = vld [vmem:[#allocation5 + $0x658] sm:$0xff]  ;;  %v8450_v43 = vcombine.low %v313_v30, %v321_v31  ;;  %v8563_v30 = vcombine.high %v425_v22, %v433_v23  ;;  %v441_v31 = vld [vmem:[#allocation5 + $0x990] sm:$0xff] }
  0xec   :  { %3551 = vmatprep.subr.bf16.mxu0 %v8339_v44  ;;  %3657 = vmatprep.subr.bf16.mxu1 %v8341_v48  ;;  %v8452_v44 = vcombine.low %v314_v32, %v322_v34  ;;  %v346_v48 = vld [vmem:[#allocation5 + $0x698] sm:$0xff]  ;;  %v8469_v49 = vcombine.high %v330_v40, %v338_v42  ;;  %v449_v32 = vld [vmem:[#allocation5 + $0x9d0] sm:$0xff] }
  0xed   :  { %v426_v24 = vld [vmem:[#allocation5 + $0x918] sm:$0xff] }
  0xee   :  { %v434_v26 = vld [vmem:[#allocation5 + $0x958] sm:$0xff] }
  0xef   :  { %3552 = vmatpush1.bf16.msra.mxu0 %v8338_v51  ;;  %3658 = vmatpush1.bf16.msra.mxu1 %v8340_v52  ;;  %v8466_v51 = vcombine.low %v329_v38, %v337_v39  ;;  %v8468_v52 = vcombine.low %v330_v40, %v338_v42  ;;  %v8565_v34 = vcombine.high %v426_v24, %v434_v26  ;;  %v457_v40 = vld [vmem:[#allocation5 + $0xa10] sm:$0xff]  ;;  %v458_v42 = vld [vmem:[#allocation5 + $0xa18] sm:$0xff] }
  0xf0   :  { %3553 = vmatprep.subr.bf16.mxu0 %v8355_v53  ;;  %3659 = vmatprep.subr.bf16.mxu1 %v8357_v57  ;;  %v8483_v53 = vcombine.high %v345_v46, %v353_v47  ;;  %v8485_v57 = vcombine.high %v346_v48, %v354_v50  ;;  %v8564_v38 = vcombine.low %v426_v24, %v434_v26  ;;  %v553_v26 = vld [vmem:[#allocation5 + $0xd10] sm:$0xff] }
  0xf1   :  { %v8579_v39 = vcombine.high %v441_v31, %v449_v32 }
  0xf3   :  { %3554 = vmatpush1.bf16.msra.mxu0 %v8354_v59  ;;  %3660 = vmatpush1.bf16.msra.mxu1 %v8356_v60  ;;  %v8482_v59 = vcombine.low %v345_v46, %v353_v47  ;;  %v8484_v60 = vcombine.low %v346_v48, %v354_v50  ;;  %v8578_v46 = vcombine.low %v441_v31, %v449_v32  ;;  %v481_v50 = vld [vmem:[#allocation5 + $0xad0] sm:$0xff] }
  0xf4   :  { %3555 = vmatprep.subr.bf16.mxu0 %v8371_v61  ;;  %3661 = vmatprep.subr.bf16.mxu1 %v8373_v1  ;;  %v8499_v61 = vcombine.high %v361_v54, %v369_v55  ;;  %v8501_v1 = vcombine.high %v362_v56, %v370_v58 }
  0xf7   :  { %3556 = vmatpush1.bf16.msra.mxu0 %v8370_v3  ;;  %3662 = vmatpush1.bf16.msra.mxu1 %v8372_v4  ;;  %v8498_v3 = vcombine.low %v361_v54, %v369_v55  ;;  %v8500_v4 = vcombine.low %v362_v56, %v370_v58  ;;  %v10330_v54 = vld [vmem:[#allocation2 + $0xc] ss:$16 sps:$4 sm:$0xff]   ;;  %v489_v58 = vld [vmem:[#allocation5 + $0xb10] sm:$0xff] }
  0xf8   :  { %3557 = vmatprep.subr.bf16.mxu0 %v8387_v5  ;;  %3663 = vmatprep.subr.bf16.mxu1 %v8389_v9  ;;  %v8515_v5 = vcombine.high %v377_v62, %v385_v63  ;;  %v8517_v9 = vcombine.high %v378_v0, %v386_v2 }
  0xfb   :  { %3558 = vmatpush1.bf16.msra.mxu0 %v8386_v11  ;;  %3664 = vmatpush1.bf16.msra.mxu1 %v8388_v12  ;;  %v8514_v11 = vcombine.low %v377_v62, %v385_v63  ;;  %v8516_v12 = vcombine.low %v378_v0, %v386_v2  ;;  %v498_v62 = vld [vmem:[#allocation5 + $0xb58] sm:$0xff]  ;;  %v505_v2 = vld [vmem:[#allocation5 + $0xb90] sm:$0xff] }
  0xfc   :  { %3559 = vmatprep.subr.bf16.mxu0 %v8403_v13  ;;  %3665 = vmatprep.subr.bf16.mxu1 %v8405_v17  ;;  %v8531_v13 = vcombine.high %v393_v6, %v401_v7  ;;  %v8533_v17 = vcombine.high %v394_v8, %v402_v10 }
  0xff   :  { %3560 = vmatpush1.bf16.msra.mxu0 %v8402_v19  ;;  %3666 = vmatpush1.bf16.msra.mxu1 %v8404_v20  ;;  %v8530_v19 = vcombine.low %v393_v6, %v401_v7  ;;  %v8532_v20 = vcombine.low %v394_v8, %v402_v10  ;;  %v514_v6 = vld [vmem:[#allocation5 + $0xbd8] sm:$0xff]  ;;  %v521_v10 = vld [vmem:[#allocation5 + $0xc10] sm:$0xff] }
 0x100   :  { %3561 = vmatprep.subr.bf16.mxu0 %v8419_v21  ;;  %3667 = vmatprep.subr.bf16.mxu1 %v8421_v25  ;;  %v8547_v21 = vcombine.high %v409_v14, %v417_v15  ;;  %v8549_v25 = vcombine.high %v410_v16, %v418_v18 }
 0x103   :  { %3562 = vmatpush1.bf16.msra.mxu0 %v8418_v27  ;;  %3668 = vmatpush1.bf16.msra.mxu1 %v8420_v28  ;;  %v10327_v27 = vld [vmem:[#allocation2] ss:$16 sps:$4 sm:$0xff]   ;;  %v8546_v28 = vcombine.low %v409_v14, %v417_v15  ;;  %v530_v14 = vld [vmem:[#allocation5 + $0xc58] sm:$0xff] }
 0x104   :  { %3563 = vmatprep.subr.bf16.mxu0 %v8435_v29  ;;  %3669 = vmatprep.subr.bf16.mxu1 %v8437_v33  ;;  %v8548_v29 = vcombine.low %v410_v16, %v418_v18  ;;  %v442_v33 = vld [vmem:[#allocation5 + $0x998] sm:$0xff]  ;;  %v537_v18 = vld [vmem:[#allocation5 + $0xc90] sm:$0xff] }
 0x107   :  { %3564 = vmatpush1.bf16.msra.mxu0 %v8434_v35  ;;  %3670 = vmatpush1.bf16.msra.mxu1 %v8436_v36  ;;  %v450_v35 = vld [vmem:[#allocation5 + $0x9d8] sm:$0xff]  ;;  %v10328_v36 = vld [vmem:[#allocation2 + $0x24] ss:$16 sps:$4 sm:$0xff]  }
 0x108   :  { %3565 = vmatprep.subr.bf16.mxu0 %v8451_v37  ;;  %3671 = vmatprep.subr.bf16.mxu1 %v8453_v41  ;;  %v8562_v37 = vcombine.low %v425_v22, %v433_v23  ;;  %v465_v41 = vld [vmem:[#allocation5 + $0xa50] sm:$0xff]  ;;  %v8580_v47 = vcombine.low %v442_v33, %v450_v35  ;;  %v546_v22 = vld [vmem:[#allocation5 + $0xcd8] sm:$0xff] }
 0x109   :  { %v8595_v48 = vcombine.high %v457_v40, %v465_v41  ;;  %v8594_v55 = vcombine.low %v457_v40, %v465_v41 }
 0x10b   :  { %3566 = vmatpush1.bf16.msra.mxu0 %v8450_v43  ;;  %3672 = vmatpush1.bf16.msra.mxu1 %v8452_v44  ;;  %v8581_v43 = vcombine.high %v442_v33, %v450_v35  ;;  %v466_v44 = vld [vmem:[#allocation5 + $0xa58] sm:$0xff]  ;;  %v577_v35 = vld [vmem:[#allocation5 + $0xdd0] sm:$0xff] }
 0x10c   :  { %3567 = vmatprep.subr.bf16.mxu0 %v8467_v45  ;;  %3673 = vmatprep.subr.bf16.mxu1 %v8469_v49  ;;  %v10329_v45 = vld [vmem:[#allocation2 + $0x20] ss:$16 sps:$4 sm:$0xff]   ;;  %v8596_v56 = vcombine.low %v458_v42, %v466_v44 }
 0x10d   :  { %v473_v49 = vld [vmem:[#allocation5 + $0xa90] sm:$0xff] }
 0x10e   :  { %v8610_v63 = vcombine.low %v473_v49, %v481_v50 }
 0x10f   :  { %3568 = vmatpush1.bf16.msra.mxu0 %v8466_v51  ;;  %3674 = vmatpush1.bf16.msra.mxu1 %v8468_v52  ;;  %v474_v51 = vld [vmem:[#allocation5 + $0xa98] sm:$0xff]  ;;  %v8597_v52 = vcombine.high %v458_v42, %v466_v44  ;;  %v585_v42 = vld [vmem:[#allocation5 + $0xe10] sm:$0xff] }
 0x110   :  { %3569 = vmatprep.subr.bf16.mxu0 %v8483_v53  ;;  %3675 = vmatprep.subr.bf16.mxu1 %v8485_v57  ;;  %v482_v53 = vld [vmem:[#allocation5 + $0xad8] sm:$0xff]  ;;  %v8611_v57 = vcombine.high %v473_v49, %v481_v50  ;;  %v601_v50 = vld [vmem:[#allocation5 + $0xe90] sm:$0xff] }
 0x111   :  { %v8612_v0 = vcombine.low %v474_v51, %v482_v53  ;;  %v586_v44 = vld [vmem:[#allocation5 + $0xe18] sm:$0xff] }
 0x113   :  { %3570 = vmatpush1.bf16.msra.mxu0 %v8482_v59  ;;  %3676 = vmatpush1.bf16.msra.mxu1 %v8484_v60  ;;  %v497_v59 = vld [vmem:[#allocation5 + $0xb50] sm:$0xff]  ;;  %v490_v60 = vld [vmem:[#allocation5 + $0xb18] sm:$0xff] }
 0x114   :  { %3571 = vmatprep.subr.bf16.mxu0 %v8499_v61  ;;  %3677 = vmatprep.subr.bf16.mxu1 %v8501_v1  ;;  %v8613_v61 = vcombine.high %v474_v51, %v482_v53  ;;  %v8627_v1 = vcombine.high %v489_v58, %v497_v59  ;;  %v8626_v7 = vcombine.low %v489_v58, %v497_v59  ;;  %v609_v51 = vld [vmem:[#allocation5 + $0xed0] sm:$0xff] }
 0x115   :  { %v8628_v8 = vcombine.low %v490_v60, %v498_v62  ;;  %v617_v58 = vld [vmem:[#allocation5 + $0xf10] sm:$0xff] }
 0x116   :  { %v625_v59 = vld [vmem:[#allocation5 + $0xf50] sm:$0xff] }
 0x117   :  { %3572 = vmatpush1.bf16.msra.mxu0 %v8498_v3  ;;  %3678 = vmatpush1.bf16.msra.mxu1 %v8500_v4  ;;  %v513_v3 = vld [vmem:[#allocation5 + $0xbd0] sm:$0xff]  ;;  %v8629_v4 = vcombine.high %v490_v60, %v498_v62  ;;  %v618_v60 = vld [vmem:[#allocation5 + $0xf18] sm:$0xff] }
 0x118   :  { %3573 = vmatprep.subr.bf16.mxu0 %v8515_v5  ;;  %3679 = vmatprep.subr.bf16.mxu1 %v8517_v9  ;;  %v506_v5 = vld [vmem:[#allocation5 + $0xb98] sm:$0xff]  ;;  %v8643_v9 = vcombine.high %v505_v2, %v513_v3  ;;  %v8642_v15 = vcombine.low %v505_v2, %v513_v3  ;;  %v633_v2 = vld [vmem:[#allocation5 + $0xf90] sm:$0xff] }
 0x119   :  { %v8644_v16 = vcombine.low %v506_v5, %v514_v6  ;;  %v626_v62 = vld [vmem:[#allocation5 + $0xf58] sm:$0xff]  ;;  %v641_v3 = vld [vmem:[#allocation5 + $0xfd0] sm:$0xff] }
 0x11b   :  { %3574 = vmatpush1.bf16.msra.mxu0 %v8514_v11  ;;  %3680 = vmatpush1.bf16.msra.mxu1 %v8516_v12  ;;  %v529_v11 = vld [vmem:[#allocation5 + $0xc50] sm:$0xff]  ;;  %v522_v12 = vld [vmem:[#allocation5 + $0xc18] sm:$0xff] }
 0x11c   :  { %3596 = vmatprep.subr.bf16.mxu0 %v8531_v13  ;;  %3702 = vmatprep.subr.bf16.mxu1 %v8533_v17  ;;  %v8645_v13 = vcombine.high %v506_v5, %v514_v6  ;;  %v8659_v17 = vcombine.high %v521_v10, %v529_v11  ;;  %v8658_v23 = vcombine.low %v521_v10, %v529_v11  ;;  %v642_v6 = vld [vmem:[#allocation5 + $0xfd8] sm:$0xff]  ;;  %v139_v10 = vld [vmem:[#allocation5 + $0x20] sm:$0xff] }
 0x11d   :  { %v8660_v24 = vcombine.low %v522_v12, %v530_v14  ;;  %v8757_v5 = vcombine.high %v618_v60, %v626_v62  ;;  %v147_v11 = vld [vmem:[#allocation5 + $0x60] sm:$0xff] }
 0x11e   :  { %3576 = vmatmul.mubr.bf16.vlgmr.msra.gmra.mrb[8].mxu0 %v10327_v27  ;;  %3682 = vmatmul.mubr.bf16.vlgmr.msra.gmra.mrb[8].mxu1 %v10327_v27  ;;  %v561_v27 = vld [vmem:[#allocation5 + $0xd50] sm:$0xff] }
 0x11f   :  { %3597 = vmatpush1.bf16.msra.mxu0 %v8530_v19  ;;  %3703 = vmatpush1.bf16.msra.mxu1 %v8532_v20  ;;  %v545_v19 = vld [vmem:[#allocation5 + $0xcd0] sm:$0xff]  ;;  %v538_v20 = vld [vmem:[#allocation5 + $0xc98] sm:$0xff]  ;;  %v8691_v33 = vcombine.high %v553_v26, %v561_v27 }
 0x120   :  { %3598 = vmatprep.subr.bf16.mxu0 %v8547_v21  ;;  %3704 = vmatprep.subr.bf16.mxu1 %v8549_v25  ;;  %v8661_v21 = vcombine.high %v522_v12, %v530_v14  ;;  %v8675_v25 = vcombine.high %v537_v18, %v545_v19  ;;  %v8674_v31 = vcombine.low %v537_v18, %v545_v19  ;;  %v140_v12 = vld [vmem:[#allocation5 + $0x28] sm:$0xff]  ;;  %v155_v18 = vld [vmem:[#allocation5 + $0xa0] sm:$0xff] }
 0x121   :  { %3585 = vmatprep.mubr.bf16.mxu0 %v10328_v36  ;;  %3691 = vmatprep.mubr.bf16.mxu1 %v10328_v36  ;;  %v8676_v32 = vcombine.low %v538_v20, %v546_v22  ;;  %v570_v36 = vld [vmem:[#allocation5 + $0xd98] sm:$0xff]  ;;  %v148_v14 = vld [vmem:[#allocation5 + $0x68] sm:$0xff]  ;;  %v163_v19 = vld [vmem:[#allocation5 + $0xe0] sm:$0xff] }
 0x123   :  { %3599 = vmatpush1.bf16.msra.mxu0 %v8546_v28  ;;  %3705 = vmatpush1.bf16.msra.mxu1 %v8548_v29  ;;  %v554_v28 = vld [vmem:[#allocation5 + $0xd18] sm:$0xff]  ;;  %v8677_v29 = vcombine.high %v538_v20, %v546_v22  ;;  %v156_v20 = vld [vmem:[#allocation5 + $0xa8] sm:$0xff] }
 0x124   :  { %3600 = vmatprep.subr.bf16.mxu0 %v8563_v30  ;;  %3706 = vmatprep.subr.bf16.mxu1 %v8565_v34  ;;  %v562_v30 = vld [vmem:[#allocation5 + $0xd58] sm:$0xff]  ;;  %v569_v34 = vld [vmem:[#allocation5 + $0xd90] sm:$0xff]  ;;  %v164_v22 = vld [vmem:[#allocation5 + $0xe8] sm:$0xff] }
 0x125   :  { %v8692_v40 = vcombine.low %v554_v28, %v562_v30  ;;  %v8707_v41 = vcombine.high %v569_v34, %v577_v35 }
 0x126   :  { %3586 = vmatmul.mubr.bf16.gmra.mrb[12].mxu0 %v10329_v45  ;;  %3692 = vmatmul.mubr.bf16.gmra.mrb[12].mxu1 %v10329_v45 }
 0x127   :  { %3601 = vmatpush1.bf16.msra.mxu0 %v8562_v37  ;;  %3707 = vmatpush1.bf16.msra.mxu1 %v8564_v38  ;;  %v8693_v37 = vcombine.high %v554_v28, %v562_v30  ;;  %v578_v38 = vld [vmem:[#allocation5 + $0xdd8] sm:$0xff]  ;;  %v172_v28 = vld [vmem:[#allocation5 + $0x128] sm:$0xff] }
 0x128   :  { %3602 = vmatprep.subr.bf16.mxu0 %v8579_v39  ;;  %3708 = vmatprep.subr.bf16.mxu1 %v8581_v43  ;;  %v8690_v39 = vcombine.low %v553_v26, %v561_v27  ;;  %v593_v43 = vld [vmem:[#allocation5 + $0xe50] sm:$0xff]  ;;  %v8709_v45 = vcombine.high %v570_v36, %v578_v38  ;;  %v171_v26 = vld [vmem:[#allocation5 + $0x120] sm:$0xff]  ;;  %v180_v30 = vld [vmem:[#allocation5 + $0x168] sm:$0xff] }
 0x129   :  { %3628 = vmatprep.mubr.bf16.mxu0 %v10330_v54  ;;  %3734 = vmatprep.mubr.bf16.mxu1 %v10330_v54  ;;  %v8723_v49 = vcombine.high %v585_v42, %v593_v43  ;;  %v610_v54 = vld [vmem:[#allocation5 + $0xed8] sm:$0xff]  ;;  %v179_v27 = vld [vmem:[#allocation5 + $0x160] sm:$0xff] }
 0x12b   :  { %3603 = vmatpush1.bf16.msra.mxu0 %v8578_v46  ;;  %3709 = vmatpush1.bf16.msra.mxu1 %v8580_v47  ;;  %v594_v46 = vld [vmem:[#allocation5 + $0xe58] sm:$0xff]  ;;  %v8706_v47 = vcombine.low %v569_v34, %v577_v35  ;;  %v8311_v34 = vcombine.high %v171_v26, %v179_v27  ;;  %v187_v35 = vld [vmem:[#allocation5 + $0x1a0] sm:$0xff] }
 0x12c   :  { %3604 = vmatprep.subr.bf16.mxu0 %v8595_v48  ;;  %3710 = vmatprep.subr.bf16.mxu1 %v8597_v52  ;;  %v8708_v48 = vcombine.low %v570_v36, %v578_v38  ;;  %v602_v52 = vld [vmem:[#allocation5 + $0xe98] sm:$0xff]  ;;  %v8725_v53 = vcombine.high %v586_v44, %v594_v46  ;;  %v195_v36 = vld [vmem:[#allocation5 + $0x1e0] sm:$0xff] }
 0x12d   :  { %v10332_v38 = vld [vmem:[#allocation2 + $0x2c] ss:$16 sps:$4 sm:$0xff]  }
 0x12f   :  { %3605 = vmatpush1.bf16.msra.mxu0 %v8594_v55  ;;  %3711 = vmatpush1.bf16.msra.mxu1 %v8596_v56  ;;  %v8722_v55 = vcombine.low %v585_v42, %v593_v43  ;;  %v8724_v56 = vcombine.low %v586_v44, %v594_v46  ;;  %v8312_v42 = vcombine.low %v172_v28, %v180_v30  ;;  %v203_v44 = vld [vmem:[#allocation5 + $0x220] sm:$0xff]  ;;  %v204_v46 = vld [vmem:[#allocation5 + $0x228] sm:$0xff] }
 0x130   :  { %3606 = vmatprep.subr.bf16.mxu0 %v8611_v57  ;;  %3712 = vmatprep.subr.bf16.mxu1 %v8613_v61  ;;  %v8739_v57 = vcombine.high %v601_v50, %v609_v51  ;;  %v8741_v61 = vcombine.high %v602_v52, %v610_v54  ;;  %v8327_v43 = vcombine.high %v187_v35, %v195_v36 }
 0x133   :  { %3607 = vmatpush1.bf16.msra.mxu0 %v8610_v63  ;;  %3713 = vmatpush1.bf16.msra.mxu1 %v8612_v0  ;;  %v8738_v63 = vcombine.low %v601_v50, %v609_v51  ;;  %v8740_v0 = vcombine.low %v602_v52, %v610_v54  ;;  %v8326_v50 = vcombine.low %v187_v35, %v195_v36  ;;  %v227_v54 = vld [vmem:[#allocation5 + $0x2e0] sm:$0xff] }
 0x134   :  { %3608 = vmatprep.subr.bf16.mxu0 %v8627_v1  ;;  %3714 = vmatprep.subr.bf16.mxu1 %v8629_v4  ;;  %v8755_v1 = vcombine.high %v617_v58, %v625_v59  ;;  %v634_v4 = vld [vmem:[#allocation5 + $0xf98] sm:$0xff] }
 0x137   :  { %3609 = vmatpush1.bf16.msra.mxu0 %v8626_v7  ;;  %3715 = vmatpush1.bf16.msra.mxu1 %v8628_v8  ;;  %v8754_v7 = vcombine.low %v617_v58, %v625_v59  ;;  %v8756_v8 = vcombine.low %v618_v60, %v626_v62  ;;  %v10334_v58 = vld [vmem:[#allocation2 + $0x4] ss:$16 sps:$4 sm:$0xff]  }
 0x138   :  { %3610 = vmatprep.subr.bf16.mxu0 %v8643_v9  ;;  %3716 = vmatprep.subr.bf16.mxu1 %v8645_v13  ;;  %v8771_v9 = vcombine.high %v633_v2, %v641_v3  ;;  %v8773_v13 = vcombine.high %v634_v4, %v642_v6  ;;  %v235_v62 = vld [vmem:[#allocation5 + $0x320] sm:$0xff] }
 0x13b   :  { %3611 = vmatpush1.bf16.msra.mxu0 %v8642_v15  ;;  %3717 = vmatpush1.bf16.msra.mxu1 %v8644_v16  ;;  %v8770_v15 = vcombine.low %v633_v2, %v641_v3  ;;  %v8772_v16 = vcombine.low %v634_v4, %v642_v6  ;;  %v244_v2 = vld [vmem:[#allocation5 + $0x368] sm:$0xff]  ;;  %v251_v6 = vld [vmem:[#allocation5 + $0x3a0] sm:$0xff] }
 0x13c   :  { %3612 = vmatprep.subr.bf16.mxu0 %v8659_v17  ;;  %3718 = vmatprep.subr.bf16.mxu1 %v8661_v21  ;;  %v8279_v17 = vcombine.high %v139_v10, %v147_v11  ;;  %v8281_v21 = vcombine.high %v140_v12, %v148_v14 }
 0x13f   :  { %3613 = vmatpush1.bf16.msra.mxu0 %v8658_v23  ;;  %3719 = vmatpush1.bf16.msra.mxu1 %v8660_v24  ;;  %v8278_v23 = vcombine.low %v139_v10, %v147_v11  ;;  %v8280_v24 = vcombine.low %v140_v12, %v148_v14  ;;  %v260_v10 = vld [vmem:[#allocation5 + $0x3e8] sm:$0xff]  ;;  %v267_v14 = vld [vmem:[#allocation5 + $0x420] sm:$0xff] }
 0x140   :  { %3614 = vmatprep.subr.bf16.mxu0 %v8675_v25  ;;  %3720 = vmatprep.subr.bf16.mxu1 %v8677_v29  ;;  %v8295_v25 = vcombine.high %v155_v18, %v163_v19  ;;  %v8297_v29 = vcombine.high %v156_v20, %v164_v22 }
 0x143   :  { %3615 = vmatpush1.bf16.msra.mxu0 %v8674_v31  ;;  %3721 = vmatpush1.bf16.msra.mxu1 %v8676_v32  ;;  %v10331_v31 = vld [vmem:[#allocation2 + $0x8] ss:$16 sps:$4 sm:$0xff]   ;;  %v8294_v32 = vcombine.low %v155_v18, %v163_v19 }
 0x144   :  { %3616 = vmatprep.subr.bf16.mxu0 %v8691_v33  ;;  %3722 = vmatprep.subr.bf16.mxu1 %v8693_v37  ;;  %v8296_v33 = vcombine.low %v156_v20, %v164_v22  ;;  %v188_v37 = vld [vmem:[#allocation5 + $0x1a8] sm:$0xff]  ;;  %v283_v22 = vld [vmem:[#allocation5 + $0x4a0] sm:$0xff] }
 0x145   :  { %v276_v18 = vld [vmem:[#allocation5 + $0x468] sm:$0xff] }
 0x147   :  { %3617 = vmatpush1.bf16.msra.mxu0 %v8690_v39  ;;  %3723 = vmatpush1.bf16.msra.mxu1 %v8692_v40  ;;  %v8313_v39 = vcombine.high %v172_v28, %v180_v30  ;;  %v196_v40 = vld [vmem:[#allocation5 + $0x1e8] sm:$0xff]  ;;  %v299_v30 = vld [vmem:[#allocation5 + $0x520] sm:$0xff] }
 0x148   :  { %3618 = vmatprep.subr.bf16.mxu0 %v8707_v41  ;;  %3724 = vmatprep.subr.bf16.mxu1 %v8709_v45  ;;  %v8310_v41 = vcombine.low %v171_v26, %v179_v27  ;;  %v211_v45 = vld [vmem:[#allocation5 + $0x260] sm:$0xff]  ;;  %v8328_v51 = vcombine.low %v188_v37, %v196_v40  ;;  %v292_v26 = vld [vmem:[#allocation5 + $0x4e8] sm:$0xff] }
 0x149   :  { %v8343_v52 = vcombine.high %v203_v44, %v211_v45  ;;  %v8342_v59 = vcombine.low %v203_v44, %v211_v45 }
 0x14b   :  { %3619 = vmatpush1.bf16.msra.mxu0 %v8706_v47  ;;  %3725 = vmatpush1.bf16.msra.mxu1 %v8708_v48  ;;  %v8329_v47 = vcombine.high %v188_v37, %v196_v40  ;;  %v212_v48 = vld [vmem:[#allocation5 + $0x268] sm:$0xff] }
 0x14c   :  { %3620 = vmatprep.subr.bf16.mxu0 %v8723_v49  ;;  %3726 = vmatprep.subr.bf16.mxu1 %v8725_v53  ;;  %v10333_v49 = vld [vmem:[#allocation2 + $0x28] ss:$16 sps:$4 sm:$0xff]   ;;  %v219_v53 = vld [vmem:[#allocation5 + $0x2a0] sm:$0xff]  ;;  %v8344_v60 = vcombine.low %v204_v46, %v212_v48 }
 0x14d   :  { %v8358_v3 = vcombine.low %v219_v53, %v227_v54  ;;  %v316_v40 = vld [vmem:[#allocation5 + $0x5a8] sm:$0xff] }
 0x14f   :  { %3621 = vmatpush1.bf16.msra.mxu0 %v8722_v55  ;;  %3727 = vmatpush1.bf16.msra.mxu1 %v8724_v56  ;;  %v220_v55 = vld [vmem:[#allocation5 + $0x2a8] sm:$0xff]  ;;  %v8345_v56 = vcombine.high %v204_v46, %v212_v48  ;;  %v331_v46 = vld [vmem:[#allocation5 + $0x620] sm:$0xff] }
 0x150   :  { %3622 = vmatprep.subr.bf16.mxu0 %v8739_v57  ;;  %3728 = vmatprep.subr.bf16.mxu1 %v8741_v61  ;;  %v228_v57 = vld [vmem:[#allocation5 + $0x2e8] sm:$0xff]  ;;  %v8359_v61 = vcombine.high %v219_v53, %v227_v54  ;;  %v347_v54 = vld [vmem:[#allocation5 + $0x6a0] sm:$0xff] }
 0x151   :  { %v8360_v4 = vcombine.low %v220_v55, %v228_v57  ;;  %v332_v48 = vld [vmem:[#allocation5 + $0x628] sm:$0xff] }
 0x153   :  { %3623 = vmatpush1.bf16.msra.mxu0 %v8738_v63  ;;  %3729 = vmatpush1.bf16.msra.mxu1 %v8740_v0  ;;  %v243_v63 = vld [vmem:[#allocation5 + $0x360] sm:$0xff]  ;;  %v236_v0 = vld [vmem:[#allocation5 + $0x328] sm:$0xff] }
 0x154   :  { %3624 = vmatprep.subr.bf16.mxu0 %v8755_v1  ;;  %3730 = vmatprep.subr.bf16.mxu1 %v8757_v5  ;;  %v8361_v1 = vcombine.high %v220_v55, %v228_v57  ;;  %v8375_v5 = vcombine.high %v235_v62, %v243_v63  ;;  %v8374_v11 = vcombine.low %v235_v62, %v243_v63  ;;  %v355_v55 = vld [vmem:[#allocation5 + $0x6e0] sm:$0xff] }
 0x155   :  { %v8376_v12 = vcombine.low %v236_v0, %v244_v2  ;;  %v363_v62 = vld [vmem:[#allocation5 + $0x720] sm:$0xff] }
 0x156   :  { %v371_v63 = vld [vmem:[#allocation5 + $0x760] sm:$0xff] }
 0x157   :  { %3625 = vmatpush1.bf16.msra.mxu0 %v8754_v7  ;;  %3731 = vmatpush1.bf16.msra.mxu1 %v8756_v8  ;;  %v259_v7 = vld [vmem:[#allocation5 + $0x3e0] sm:$0xff]  ;;  %v252_v8 = vld [vmem:[#allocation5 + $0x3a8] sm:$0xff] }
 0x158   :  { %3626 = vmatprep.subr.bf16.mxu0 %v8771_v9  ;;  %3732 = vmatprep.subr.bf16.mxu1 %v8773_v13  ;;  %v8377_v9 = vcombine.high %v236_v0, %v244_v2  ;;  %v8391_v13 = vcombine.high %v251_v6, %v259_v7  ;;  %v8390_v19 = vcombine.low %v251_v6, %v259_v7  ;;  %v364_v0 = vld [vmem:[#allocation5 + $0x728] sm:$0xff]  ;;  %v379_v6 = vld [vmem:[#allocation5 + $0x7a0] sm:$0xff] }
 0x159   :  { %v8392_v20 = vcombine.low %v252_v8, %v260_v10  ;;  %v372_v2 = vld [vmem:[#allocation5 + $0x768] sm:$0xff]  ;;  %v387_v7 = vld [vmem:[#allocation5 + $0x7e0] sm:$0xff] }
 0x15b   :  { %3627 = vmatpush1.bf16.msra.mxu0 %v8770_v15  ;;  %3733 = vmatpush1.bf16.msra.mxu1 %v8772_v16  ;;  %v275_v15 = vld [vmem:[#allocation5 + $0x460] sm:$0xff]  ;;  %v268_v16 = vld [vmem:[#allocation5 + $0x428] sm:$0xff] }
 0x15c   :  { %3755 = vmatprep.subr.bf16.mxu0 %v8279_v17  ;;  %3861 = vmatprep.subr.bf16.mxu1 %v8281_v21  ;;  %v8393_v17 = vcombine.high %v252_v8, %v260_v10  ;;  %v8407_v21 = vcombine.high %v267_v14, %v275_v15  ;;  %v8406_v27 = vcombine.low %v267_v14, %v275_v15  ;;  %v380_v8 = vld [vmem:[#allocation5 + $0x7a8] sm:$0xff]  ;;  %v395_v14 = vld [vmem:[#allocation5 + $0x820] sm:$0xff] }
 0x15d   :  { %v8408_v28 = vcombine.low %v268_v16, %v276_v18  ;;  %v388_v10 = vld [vmem:[#allocation5 + $0x7e8] sm:$0xff]  ;;  %v403_v15 = vld [vmem:[#allocation5 + $0x860] sm:$0xff] }
 0x15e   :  { %3629 = vmatmul.mubr.bf16.vlgmr.msra.gmra.mrb[8].mxu0 %v10331_v31  ;;  %3735 = vmatmul.mubr.bf16.vlgmr.msra.gmra.mrb[8].mxu1 %v10331_v31  ;;  %v307_v31 = vld [vmem:[#allocation5 + $0x560] sm:$0xff] }
 0x15f   :  { %3756 = vmatpush1.bf16.msra.mxu0 %v8278_v23  ;;  %3862 = vmatpush1.bf16.msra.mxu1 %v8280_v24  ;;  %v291_v23 = vld [vmem:[#allocation5 + $0x4e0] sm:$0xff]  ;;  %v284_v24 = vld [vmem:[#allocation5 + $0x4a8] sm:$0xff]  ;;  %v8439_v37 = vcombine.high %v299_v30, %v307_v31 }
 0x160   :  { %3757 = vmatprep.subr.bf16.mxu0 %v8295_v25  ;;  %3863 = vmatprep.subr.bf16.mxu1 %v8297_v29  ;;  %v8409_v25 = vcombine.high %v268_v16, %v276_v18  ;;  %v8423_v29 = vcombine.high %v283_v22, %v291_v23  ;;  %v8422_v35 = vcombine.low %v283_v22, %v291_v23  ;;  %v396_v16 = vld [vmem:[#allocation5 + $0x828] sm:$0xff]  ;;  %v411_v22 = vld [vmem:[#allocation5 + $0x8a0] sm:$0xff] }
 0x161   :  { %3638 = vmatprep.mubr.bf16.mxu0 %v10332_v38  ;;  %3744 = vmatprep.mubr.bf16.mxu1 %v10332_v38  ;;  %v8424_v36 = vcombine.low %v284_v24, %v292_v26  ;;  %v315_v38 = vld [vmem:[#allocation5 + $0x5a0] sm:$0xff]  ;;  %v404_v18 = vld [vmem:[#allocation5 + $0x868] sm:$0xff] }
 0x162   :  { %v419_v23 = vld [vmem:[#allocation5 + $0x8e0] sm:$0xff] }
 0x163   :  { %3758 = vmatpush1.bf16.msra.mxu0 %v8294_v32  ;;  %3864 = vmatpush1.bf16.msra.mxu1 %v8296_v33  ;;  %v300_v32 = vld [vmem:[#allocation5 + $0x528] sm:$0xff]  ;;  %v8425_v33 = vcombine.high %v284_v24, %v292_v26 }
 0x164   :  { %3759 = vmatprep.subr.bf16.mxu0 %v8311_v34  ;;  %3865 = vmatprep.subr.bf16.mxu1 %v8313_v39  ;;  %v308_v34 = vld [vmem:[#allocation5 + $0x568] sm:$0xff]  ;;  %v323_v39 = vld [vmem:[#allocation5 + $0x5e0] sm:$0xff] }
 0x165   :  { %v8440_v44 = vcombine.low %v300_v32, %v308_v34  ;;  %v8455_v45 = vcombine.high %v315_v38, %v323_v39  ;;  %v412_v24 = vld [vmem:[#allocation5 + $0x8a8] sm:$0xff] }
 0x166   :  { %3639 = vmatmul.mubr.bf16.gmra.mrb[12].mxu0 %v10333_v49  ;;  %3745 = vmatmul.mubr.bf16.gmra.mrb[12].mxu1 %v10333_v49  ;;  %v420_v26 = vld [vmem:[#allocation5 + $0x8e8] sm:$0xff] }
 0x167   :  { %3760 = vmatpush1.bf16.msra.mxu0 %v8310_v41  ;;  %3866 = vmatpush1.bf16.msra.mxu1 %v8312_v42  ;;  %v8441_v41 = vcombine.high %v300_v32, %v308_v34  ;;  %v324_v42 = vld [vmem:[#allocation5 + $0x5e8] sm:$0xff] }
 0x168   :  { %3761 = vmatprep.subr.bf16.mxu0 %v8327_v43  ;;  %3867 = vmatprep.subr.bf16.mxu1 %v8329_v47  ;;  %v8438_v43 = vcombine.low %v299_v30, %v307_v31  ;;  %v339_v47 = vld [vmem:[#allocation5 + $0x660] sm:$0xff]  ;;  %v8457_v49 = vcombine.high %v316_v40, %v324_v42  ;;  %v428_v32 = vld [vmem:[#allocation5 + $0x928] sm:$0xff] }
 0x169   :  { %3787 = vmatprep.mubr.bf16.mxu0 %v10334_v58  ;;  %3893 = vmatprep.mubr.bf16.mxu1 %v10334_v58  ;;  %v8471_v53 = vcombine.high %v331_v46, %v339_v47  ;;  %v356_v58 = vld [vmem:[#allocation5 + $0x6e8] sm:$0xff]  ;;  %v427_v30 = vld [vmem:[#allocation5 + $0x920] sm:$0xff] }
 0x16a   :  { %v435_v31 = vld [vmem:[#allocation5 + $0x960] sm:$0xff]  ;;  %v436_v34 = vld [vmem:[#allocation5 + $0x968] sm:$0xff] }
 0x16b   :  { %3762 = vmatpush1.bf16.msra.mxu0 %v8326_v50  ;;  %3868 = vmatpush1.bf16.msra.mxu1 %v8328_v51  ;;  %v340_v50 = vld [vmem:[#allocation5 + $0x668] sm:$0xff]  ;;  %v8454_v51 = vcombine.low %v315_v38, %v323_v39  ;;  %v8567_v38 = vcombine.high %v427_v30, %v435_v31  ;;  %v443_v39 = vld [vmem:[#allocation5 + $0x9a0] sm:$0xff] }
 0x16c   :  { %3763 = vmatprep.subr.bf16.mxu0 %v8343_v52  ;;  %3869 = vmatprep.subr.bf16.mxu1 %v8345_v56  ;;  %v8456_v52 = vcombine.low %v316_v40, %v324_v42  ;;  %v348_v56 = vld [vmem:[#allocation5 + $0x6a8] sm:$0xff]  ;;  %v8473_v57 = vcombine.high %v332_v48, %v340_v50  ;;  %v451_v40 = vld [vmem:[#allocation5 + $0x9e0] sm:$0xff]  ;;  %v8569_v42 = vcombine.high %v428_v32, %v436_v34 }
 0x16f   :  { %3764 = vmatpush1.bf16.msra.mxu0 %v8342_v59  ;;  %3870 = vmatpush1.bf16.msra.mxu1 %v8344_v60  ;;  %v8470_v59 = vcombine.low %v331_v46, %v339_v47  ;;  %v8472_v60 = vcombine.low %v332_v48, %v340_v50  ;;  %v8566_v46 = vcombine.low %v427_v30, %v435_v31  ;;  %v459_v50 = vld [vmem:[#allocation5 + $0xa20] sm:$0xff] }
 0x170   :  { %3765 = vmatprep.subr.bf16.mxu0 %v8359_v61  ;;  %3871 = vmatprep.subr.bf16.mxu1 %v8361_v1  ;;  %v8487_v61 = vcombine.high %v347_v54, %v355_v55  ;;  %v8489_v1 = vcombine.high %v348_v56, %v356_v58  ;;  %v8568_v47 = vcombine.low %v428_v32, %v436_v34 }
 0x171   :  { %v8583_v48 = vcombine.high %v443_v39, %v451_v40 }
 0x173   :  { %3766 = vmatpush1.bf16.msra.mxu0 %v8358_v3  ;;  %3872 = vmatpush1.bf16.msra.mxu1 %v8360_v4  ;;  %v8486_v3 = vcombine.low %v347_v54, %v355_v55  ;;  %v8488_v4 = vcombine.low %v348_v56, %v356_v58  ;;  %v10595_v55 = vld [vmem:[#allocation2 + $0x20] ss:$16 sps:$4 sm:$0xff]   ;;  %v8582_v56 = vcombine.low %v443_v39, %v451_v40 }
 0x174   :  { %3767 = vmatprep.subr.bf16.mxu0 %v8375_v5  ;;  %3873 = vmatprep.subr.bf16.mxu1 %v8377_v9  ;;  %v8503_v5 = vcombine.high %v363_v62, %v371_v63  ;;  %v8505_v9 = vcombine.high %v364_v0, %v372_v2 }
 0x177   :  { %3768 = vmatpush1.bf16.msra.mxu0 %v8374_v11  ;;  %3874 = vmatpush1.bf16.msra.mxu1 %v8376_v12  ;;  %v8502_v11 = vcombine.low %v363_v62, %v371_v63  ;;  %v8504_v12 = vcombine.low %v364_v0, %v372_v2  ;;  %v10599_v62 = vld [vmem:[#allocation2 + $0xc] ss:$16 sps:$4 sm:$0xff]  }
 0x178   :  { %3769 = vmatprep.subr.bf16.mxu0 %v8391_v13  ;;  %3875 = vmatprep.subr.bf16.mxu1 %v8393_v17  ;;  %v8519_v13 = vcombine.high %v379_v6, %v387_v7  ;;  %v8521_v17 = vcombine.high %v380_v8, %v388_v10  ;;  %v476_v0 = vld [vmem:[#allocation5 + $0xaa8] sm:$0xff] }
 0x17b   :  { %3770 = vmatpush1.bf16.msra.mxu0 %v8390_v19  ;;  %3876 = vmatpush1.bf16.msra.mxu1 %v8392_v20  ;;  %v8518_v19 = vcombine.low %v379_v6, %v387_v7  ;;  %v8520_v20 = vcombine.low %v380_v8, %v388_v10  ;;  %v491_v10 = vld [vmem:[#allocation5 + $0xb20] sm:$0xff] }
 0x17c   :  { %3771 = vmatprep.subr.bf16.mxu0 %v8407_v21  ;;  %3877 = vmatprep.subr.bf16.mxu1 %v8409_v25  ;;  %v8535_v21 = vcombine.high %v395_v14, %v403_v15  ;;  %v8537_v25 = vcombine.high %v396_v16, %v404_v18 }
 0x17f   :  { %3772 = vmatpush1.bf16.msra.mxu0 %v8406_v27  ;;  %3878 = vmatpush1.bf16.msra.mxu1 %v8408_v28  ;;  %v8534_v27 = vcombine.low %v395_v14, %v403_v15  ;;  %v8536_v28 = vcombine.low %v396_v16, %v404_v18  ;;  %v500_v14 = vld [vmem:[#allocation5 + $0xb68] sm:$0xff] }
 0x180   :  { %3773 = vmatprep.subr.bf16.mxu0 %v8423_v29  ;;  %3879 = vmatprep.subr.bf16.mxu1 %v8425_v33  ;;  %v8551_v29 = vcombine.high %v411_v22, %v419_v23  ;;  %v8553_v33 = vcombine.high %v412_v24, %v420_v26 }
 0x183   :  { %3774 = vmatpush1.bf16.msra.mxu0 %v8422_v35  ;;  %3880 = vmatpush1.bf16.msra.mxu1 %v8424_v36  ;;  %v10585_v35 = vld [vmem:[#allocation2] ss:$16 sps:$4 sm:$0xff]   ;;  %v8550_v36 = vcombine.low %v411_v22, %v419_v23 }
 0x184   :  { %3775 = vmatprep.subr.bf16.mxu0 %v8439_v37  ;;  %3881 = vmatprep.subr.bf16.mxu1 %v8441_v41  ;;  %v8552_v37 = vcombine.low %v412_v24, %v420_v26  ;;  %v444_v41 = vld [vmem:[#allocation5 + $0x9a8] sm:$0xff]  ;;  %v10633_v23 = vld [vmem:[#allocation5 + $0xba0] sm:$0xff] }
 0x185   :  { %v515_v24 = vld [vmem:[#allocation5 + $0xbe0] sm:$0xff] }
 0x187   :  { %3776 = vmatpush1.bf16.msra.mxu0 %v8438_v43  ;;  %3882 = vmatpush1.bf16.msra.mxu1 %v8440_v44  ;;  %v452_v43 = vld [vmem:[#allocation5 + $0x9e8] sm:$0xff]  ;;  %v10589_v44 = vld [vmem:[#allocation2 + $0x24] ss:$16 sps:$4 sm:$0xff]  }
 0x188   :  { %3777 = vmatprep.subr.bf16.mxu0 %v8455_v45  ;;  %3883 = vmatprep.subr.bf16.mxu1 %v8457_v49  ;;  %v91_v45 = vlaneseq  ;;  %v8585_v49 = vcombine.high %v444_v41, %v452_v43 }
 0x18a   :  { %v10593_v54 = vshrl.u32 %v91_v45, 7 }
 0x18b   :  { %3778 = vmatpush1.bf16.msra.mxu0 %v8454_v51  ;;  %3884 = vmatpush1.bf16.msra.mxu1 %v8456_v52  ;;  %v467_v51 = vld [vmem:[#allocation5 + $0xa60] sm:$0xff]  ;;  %v460_v52 = vld [vmem:[#allocation5 + $0xa28] sm:$0xff] }
 0x18c   :  { %3779 = vmatprep.subr.bf16.mxu0 %v8471_v53  ;;  %3885 = vmatprep.subr.bf16.mxu1 %v8473_v57  ;;  %v468_v53 = vld [vmem:[#allocation5 + $0xa68] sm:$0xff]  ;;  %v8584_v57 = vcombine.low %v444_v41, %v452_v43  ;;  %v8599_v58 = vcombine.high %v459_v50, %v467_v51  ;;  %v10603_v63 = vsub.s32 0, %v10593_v54  ;;  %v8598_v2 = vcombine.low %v459_v50, %v467_v51 }
 0x18d   :  { %v8600_v6 = vcombine.low %v460_v52, %v468_v53  ;;  %v10615_v7 = vsub.s32 3, %v10593_v54  ;;  %v8647_v41 = vcombine.high %v10633_v23, %v515_v24 }
 0x18f   :  { %3780 = vmatpush1.bf16.msra.mxu0 %v8470_v59  ;;  %3886 = vmatpush1.bf16.msra.mxu1 %v8472_v60  ;;  %v8601_v59 = vcombine.high %v460_v52, %v468_v53  ;;  %v475_v60 = vld [vmem:[#allocation5 + $0xaa0] sm:$0xff] }
 0x190   :  { %3781 = vmatprep.subr.bf16.mxu0 %v8487_v61  ;;  %3887 = vmatprep.subr.bf16.mxu1 %v8489_v1  ;;  %v483_v61 = vld [vmem:[#allocation5 + $0xae0] sm:$0xff]  ;;  %v484_v1 = vld [vmem:[#allocation5 + $0xae8] sm:$0xff] }
 0x191   :  { %v8615_v8 = vcombine.high %v475_v60, %v483_v61 }
 0x193   :  { %3782 = vmatpush1.bf16.msra.mxu0 %v8486_v3  ;;  %3888 = vmatpush1.bf16.msra.mxu1 %v8488_v4  ;;  %v10606_v3 = vld [vmem:[#allocation7] sm:$0xff]  ;;  %v10609_v4 = vsub.s32 2, %v10593_v54 }
 0x194   :  { %3783 = vmatprep.subr.bf16.mxu0 %v8503_v5  ;;  %3889 = vmatprep.subr.bf16.mxu1 %v8505_v9  ;;  %v10612_v5 = vsub.s32 1, %v10593_v54  ;;  %v8617_v9 = vcombine.high %v476_v0, %v484_v1  ;;  %v10631_v18 = vrot.slane %v10606_v3, %v10615_v7 }
 0x195   :  { %v10623_v15 = vrot.slane %v10606_v3, %v10609_v4 }
 0x196   :  { %v10627_v16 = vrot.slane %v10606_v3, %v10612_v5 }
 0x197   :  { %3784 = vmatpush1.bf16.msra.mxu0 %v8502_v11  ;;  %3890 = vmatpush1.bf16.msra.mxu1 %v8504_v12  ;;  %v499_v11 = vld [vmem:[#allocation5 + $0xb60] sm:$0xff]  ;;  %v10619_v12 = vrot.slane %v10606_v3, %v10603_v63 }
 0x198   :  { %3785 = vmatprep.subr.bf16.mxu0 %v8519_v13  ;;  %3891 = vmatprep.subr.bf16.mxu1 %v8521_v17  ;;  %v492_v13 = vld [vmem:[#allocation5 + $0xb28] sm:$0xff]  ;;  %v8614_v17 = vcombine.low %v475_v60, %v483_v61  ;;  %v8630_v34 = vcombine.low %v491_v10, %v499_v11 }
 0x199   :  { %v8633_v22 = vcombine.high %v492_v13, %v500_v14 }
 0x19b   :  { %3786 = vmatpush1.bf16.msra.mxu0 %v8518_v19  ;;  %3892 = vmatpush1.bf16.msra.mxu1 %v8520_v20  ;;  %v8616_v19 = vcombine.low %v476_v0, %v484_v1  ;;  %v8631_v20 = vcombine.high %v491_v10, %v499_v11 }
 0x19c   :  { %3808 = vmatprep.subr.bf16.mxu0 %v8535_v21  ;;  %3914 = vmatprep.subr.bf16.mxu1 %v8537_v25 }
 0x19e   :  { %3788 = vmatmul.mubr.bf16.vlgmr.msra.gmra.mrb[16].mxu0 %v10585_v35  ;;  %3894 = vmatmul.mubr.bf16.vlgmr.msra.gmra.mrb[16].mxu1 %v10585_v35 }
 0x19f   :  { %3809 = vmatpush1.bf16.msra.mxu0 %v8534_v27  ;;  %3915 = vmatpush1.bf16.msra.mxu1 %v8536_v28  ;;  %v10636_v28 = vld [vmem:[#allocation5 + $0xba8] sm:$0xff] }
 0x1a0   :  { %3810 = vmatprep.subr.bf16.mxu0 %v8551_v29  ;;  %3916 = vmatprep.subr.bf16.mxu1 %v8553_v33  ;;  %v10638_v29 = vld [vmem:[#allocation5 + $0xbe8] sm:$0xff] }
 0x1a1   :  { %3797 = vmatprep.mubr.bf16.mxu0 %v10589_v44  ;;  %3903 = vmatprep.mubr.bf16.mxu1 %v10589_v44  ;;  %v8648_v53 = vcombine.low %v10636_v28, %v10638_v29 }
 0x1a3   :  { %3811 = vmatpush1.bf16.msra.mxu0 %v8550_v36  ;;  %3917 = vmatpush1.bf16.msra.mxu1 %v8552_v37  ;;  %v8632_v36 = vcombine.low %v492_v13, %v500_v14  ;;  %v539_v13 = vld [vmem:[#allocation5 + $0xca0] sm:$0xff] }
 0x1a4   :  { %3812 = vmatprep.subr.bf16.mxu0 %v8567_v38  ;;  %3918 = vmatprep.subr.bf16.mxu1 %v8569_v42  ;;  %v547_v14 = vld [vmem:[#allocation5 + $0xce0] sm:$0xff] }
 0x1a6   :  { %3798 = vmatmul.mubr.bf16.gmra.mrb[20].mxu0 %v10595_v55  ;;  %3904 = vmatmul.mubr.bf16.gmra.mrb[20].mxu1 %v10595_v55 }
 0x1a7   :  { %3813 = vmatpush1.bf16.msra.mxu0 %v8566_v46  ;;  %3919 = vmatpush1.bf16.msra.mxu1 %v8568_v47  ;;  %v8646_v46 = vcombine.low %v10633_v23, %v515_v24  ;;  %v8649_v47 = vcombine.high %v10636_v28, %v10638_v29  ;;  %v548_v23 = vld [vmem:[#allocation5 + $0xce8] sm:$0xff] }
 0x1a8   :  { %3814 = vmatprep.subr.bf16.mxu0 %v8583_v48  ;;  %3920 = vmatprep.subr.bf16.mxu1 %v8585_v49  ;;  %v10650_v48 = vld [vmem:[#allocation5 + $0xc20] sm:$0xff] }
 0x1a9   :  { %3840 = vmatprep.mubr.bf16.mxu0 %v10599_v62  ;;  %3946 = vmatprep.mubr.bf16.mxu1 %v10599_v62  ;;  %v10652_v49 = vld [vmem:[#allocation5 + $0xc60] sm:$0xff] }
 0x1aa   :  { %v8662_v28 = vcombine.low %v10650_v48, %v10652_v49 }
 0x1ab   :  { %3815 = vmatpush1.bf16.msra.mxu0 %v8582_v56  ;;  %3921 = vmatpush1.bf16.msra.mxu1 %v8584_v57  ;;  %v524_v56 = vld [vmem:[#allocation5 + $0xc28] sm:$0xff] }
 0x1ac   :  { %3816 = vmatprep.subr.bf16.mxu0 %v8599_v58  ;;  %3922 = vmatprep.subr.bf16.mxu1 %v8601_v59  ;;  %v532_v57 = vld [vmem:[#allocation5 + $0xc68] sm:$0xff] }
 0x1ad   :  { %v8665_v11 = vcombine.high %v524_v56, %v532_v57  ;;  %v8664_v29 = vcombine.low %v524_v56, %v532_v57 }
 0x1af   :  { %3817 = vmatpush1.bf16.msra.mxu0 %v8598_v2  ;;  %3923 = vmatpush1.bf16.msra.mxu1 %v8600_v6  ;;  %v8663_v6 = vcombine.high %v10650_v48, %v10652_v49  ;;  %v564_v48 = vld [vmem:[#allocation5 + $0xd68] sm:$0xff] }
 0x1b0   :  { %3818 = vmatprep.subr.bf16.mxu0 %v8615_v8  ;;  %3924 = vmatprep.subr.bf16.mxu1 %v8617_v9 }
 0x1b1   :  { %v3418_v21 = vpop.f32.mrb[0].mxu0  ;;  %v3524_v26 = vpop.f32.mrb[0].mxu1 }
 0x1b2   :  { %v9294_v25 = vadd.f32 %v3418_v21, %v10619_v12  ;;  %v3420_v27 = vpop.f32.mrb[1].mxu0  ;;  %v9302_v30 = vadd.f32 %v3524_v26, %v10623_v15  ;;  %v3526_v32 = vpop.f32.mrb[1].mxu1 }
 0x1b3   :  { %v9295_v31 = vadd.f32 %v3420_v27, %v10627_v16  ;;  %v3422_v33 = vpop.f32.mrb[2].mxu0  ;;  %3819 = vmatpush1.bf16.msra.mxu0 %v8614_v17  ;;  %v9303_v37 = vadd.f32 %v3526_v32, %v10631_v18  ;;  %v3528_v39 = vpop.f32.mrb[2].mxu1  ;;  %3925 = vmatpush1.bf16.msra.mxu1 %v8616_v19 }
 0x1b4   :  { %v9296_v38 = vadd.f32 %v3422_v33, %v10619_v12  ;;  %v3424_v40 = vpop.f32.mrb[3].mxu0  ;;  %3820 = vmatprep.subr.bf16.mxu0 %v8631_v20  ;;  %v9304_v42 = vadd.f32 %v3528_v39, %v10623_v15  ;;  %v3530_v45 = vpop.f32.mrb[3].mxu1  ;;  %3926 = vmatprep.subr.bf16.mxu1 %v8633_v22  ;;  %v4179_v50 = vmax.f32 %v9294_v25, 0.0  ;;  %v4181_v58 = vmax.f32 %v9302_v30, 0.0  ;;  %v540_v22 = vld [vmem:[#allocation5 + $0xca8] sm:$0xff] }
 0x1b5   :  { %v9297_v43 = vadd.f32 %v3424_v40, %v10627_v16  ;;  %v9305_v52 = vadd.f32 %v3530_v45, %v10631_v18  ;;  %v4180_v59 = vmax.f32 %v9295_v31, 0.0  ;;  %v4182_v0 = vmax.f32 %v9303_v37, 0.0 }
 0x1b6   :  { %v4195_v51 = vmax.f32 %v9296_v38, 0.0  ;;  %v4197_v60 = vmax.f32 %v9304_v42, 0.0  ;;  %v8678_v39 = vcombine.low %v539_v13, %v547_v14  ;;  %v8681_v40 = vcombine.high %v540_v22, %v548_v23  ;;  %v563_v42 = vld [vmem:[#allocation5 + $0xd60] sm:$0xff] }
 0x1b7   :  { %v4196_v61 = vmax.f32 %v9297_v43, 0.0  ;;  %3821 = vmatpush1.bf16.msra.mxu0 %v8630_v34  ;;  %v4198_v2 = vmax.f32 %v9305_v52, 0.0  ;;  %3927 = vmatpush1.bf16.msra.mxu1 %v8632_v36  ;;  %v8679_v34 = vcombine.high %v539_v13, %v547_v14  ;;  %v587_v14 = vld [vmem:[#allocation5 + $0xe20] sm:$0xff] }
 0x1b8   :  { %v10657_v1 = vpack.c.bf16 %v4195_v51, %v4179_v50  ;;  %3822 = vmatprep.subr.bf16.mxu0 %v8647_v41  ;;  %v10661_v8 = vpack.c.bf16 %v4197_v60, %v4181_v58  ;;  %3928 = vmatprep.subr.bf16.mxu1 %v8649_v47  ;;  %v555_v41 = vld [vmem:[#allocation5 + $0xd20] sm:$0xff]  ;;  %v556_v47 = vld [vmem:[#allocation5 + $0xd28] sm:$0xff] }
 0x1b9   :  { %v10663_v9 = vpack.c.bf16 %v4196_v61, %v4180_v59  ;;  %v3428_v10 = vpop.f32.mrb[4].mxu0  ;;  %v10665_v17 = vpack.c.bf16 %v4198_v2, %v4182_v0  ;;  %v3534_v20 = vpop.f32.mrb[4].mxu1  ;;  %v8695_v56 = vcombine.high %v555_v41, %v563_v42  ;;  %v571_v59 = vld [vmem:[#allocation5 + $0xda0] sm:$0xff]  ;;  %v572_v0 = vld [vmem:[#allocation5 + $0xda8] sm:$0xff] }
 0x1ba   :  { %v9298_v19 = vadd.f32 %v3428_v10, %v10619_v12  ;;  %v3430_v21 = vpop.f32.mrb[5].mxu0  ;;  %v9306_v24 = vadd.f32 %v3534_v20, %v10623_v15  ;;  %v3536_v26 = vpop.f32.mrb[5].mxu1  ;;  %v579_v60 = vld [vmem:[#allocation5 + $0xde0] sm:$0xff]  ;;  %v580_v2 = vld [vmem:[#allocation5 + $0xde8] sm:$0xff]  ;;  %v8696_v10 = vcombine.low %v556_v47, %v564_v48 }
 0x1bb   :  { %v9299_v25 = vadd.f32 %v3430_v21, %v10627_v16  ;;  %v3432_v27 = vpop.f32.mrb[6].mxu0  ;;  %3823 = vmatpush1.bf16.msra.mxu0 %v8646_v46  ;;  %v9307_v30 = vadd.f32 %v3536_v26, %v10631_v18  ;;  %v3538_v32 = vpop.f32.mrb[6].mxu1  ;;  %3929 = vmatpush1.bf16.msra.mxu1 %v8648_v53  ;;  %v8713_v13 = vcombine.high %v572_v0, %v580_v2  ;;  %v588_v20 = vld [vmem:[#allocation5 + $0xe28] sm:$0xff]  ;;  %v603_v26 = vld [vmem:[#allocation5 + $0xea0] sm:$0xff] }
 0x1bc   :  { %v9300_v31 = vadd.f32 %v3432_v27, %v10619_v12  ;;  %v3434_v33 = vpop.f32.mrb[7].mxu0  ;;  %3824 = vmatprep.subr.bf16.mxu0 %v8663_v6  ;;  %v9308_v36 = vadd.f32 %v3538_v32, %v10623_v15  ;;  %v3540_v38 = vpop.f32.mrb[7].mxu1  ;;  %3930 = vmatprep.subr.bf16.mxu1 %v8665_v11  ;;  %v4211_v43 = vmax.f32 %v9298_v19, 0.0  ;;  %v8680_v12 = vcombine.low %v540_v22, %v548_v23  ;;  %v595_v19 = vld [vmem:[#allocation5 + $0xe60] sm:$0xff]  ;;  %v596_v21 = vld [vmem:[#allocation5 + $0xe68] sm:$0xff] }
 0x1bd   :  { %v9301_v37 = vadd.f32 %v3434_v33, %v10627_v16  ;;  %v9309_v46 = vadd.f32 %v3540_v38, %v10631_v18  ;;  %v4213_v49 = vmax.f32 %v9306_v24, 0.0  ;;  %v4212_v50 = vmax.f32 %v9299_v25, 0.0  ;;  %v611_v27 = vld [vmem:[#allocation5 + $0xee0] sm:$0xff]  ;;  %v628_v38 = vld [vmem:[#allocation5 + $0xf68] sm:$0xff] }
 0x1be   :  { %v4227_v45 = vmax.f32 %v9300_v31, 0.0  ;;  %v4229_v51 = vmax.f32 %v9308_v36, 0.0  ;;  %v4214_v15 = vmax.f32 %v9307_v30, 0.0  ;;  %v8697_v18 = vcombine.high %v556_v47, %v564_v48  ;;  %v627_v36 = vld [vmem:[#allocation5 + $0xf60] sm:$0xff] }
 0x1bf   :  { %v4228_v52 = vmax.f32 %v9301_v37, 0.0  ;;  %3825 = vmatpush1.bf16.msra.mxu0 %v8662_v28  ;;  %v4230_v53 = vmax.f32 %v9309_v46, 0.0  ;;  %3931 = vmatpush1.bf16.msra.mxu1 %v8664_v29  ;;  %v8694_v6 = vcombine.low %v555_v41, %v563_v42  ;;  %v8711_v11 = vcombine.high %v571_v59, %v579_v60  ;;  %v604_v28 = vld [vmem:[#allocation5 + $0xea8] sm:$0xff] }
 0x1c0   :  { %v10677_v16 = vpack.c.bf16 %v4227_v45, %v4211_v43  ;;  %3826 = vmatprep.subr.bf16.mxu0 %v8679_v34  ;;  %v10679_v57 = vpack.c.bf16 %v4229_v51, %v4213_v49  ;;  %3932 = vmatprep.subr.bf16.mxu1 %v8681_v40  ;;  %v8710_v22 = vcombine.low %v571_v59, %v579_v60  ;;  %v612_v29 = vld [vmem:[#allocation5 + $0xee8] sm:$0xff]  ;;  %v619_v34 = vld [vmem:[#allocation5 + $0xf20] sm:$0xff]  ;;  %v141_v51 = vld [vmem:[#allocation5 + $0x30] sm:$0xff] }
 0x1c1   :  { %v10681_v58 = vpack.c.bf16 %v4228_v52, %v4212_v50  ;;  %v10683_v61 = vpack.c.bf16 %v4230_v53, %v4214_v15  ;;  %v8712_v23 = vcombine.low %v572_v0, %v580_v2  ;;  %v8727_v24 = vcombine.high %v587_v14, %v595_v19  ;;  %v620_v37 = vld [vmem:[#allocation5 + $0xf28] sm:$0xff]  ;;  %v635_v43 = vld [vmem:[#allocation5 + $0xfa0] sm:$0xff]  ;;  %v149_v52 = vld [vmem:[#allocation5 + $0x70] sm:$0xff] }
 0x1c2   :  { %v8729_v25 = vcombine.high %v588_v20, %v596_v21  ;;  %v8726_v30 = vcombine.low %v587_v14, %v595_v19  ;;  %v8728_v31 = vcombine.low %v588_v20, %v596_v21  ;;  %v8743_v32 = vcombine.high %v603_v26, %v611_v27  ;;  %v643_v45 = vld [vmem:[#allocation5 + $0xfe0] sm:$0xff]  ;;  %v636_v46 = vld [vmem:[#allocation5 + $0xfa8] sm:$0xff]  ;;  %v142_v15 = vld [vmem:[#allocation5 + $0x38] sm:$0xff] }
 0x1c3   :  { %3827 = vmatpush1.bf16.msra.mxu0 %v8678_v39  ;;  %3933 = vmatpush1.bf16.msra.mxu1 %v8680_v12  ;;  %v8745_v33 = vcombine.high %v604_v28, %v612_v29  ;;  %v8742_v39 = vcombine.low %v603_v26, %v611_v27  ;;  %v8744_v40 = vcombine.low %v604_v28, %v612_v29  ;;  %v644_v12 = vld [vmem:[#allocation5 + $0xfe8] sm:$0xff]  ;;  %v150_v53 = vld [vmem:[#allocation5 + $0x78] sm:$0xff]  ;;  %v157_v0 = vld [vmem:[#allocation5 + $0xb0] sm:$0xff] }
 0x1c4   :  { %3828 = vmatprep.subr.bf16.mxu0 %v8695_v56  ;;  %3934 = vmatprep.subr.bf16.mxu1 %v8697_v18  ;;  %v8759_v41 = vcombine.high %v619_v34, %v627_v36  ;;  %v8761_v42 = vcombine.high %v620_v37, %v628_v38  ;;  %v8758_v47 = vcombine.low %v619_v34, %v627_v36  ;;  %v165_v2 = vld [vmem:[#allocation5 + $0xf0] sm:$0xff]  ;;  %v10689_v28 = vld [vmem:[#allocation2 + $0x2c] ss:$16 sps:$4 sm:$0xff]  }
 0x1c5   :  { %v8760_v48 = vcombine.low %v620_v37, %v628_v38  ;;  %v8775_v49 = vcombine.high %v635_v43, %v643_v45  ;;  %v8777_v50 = vcombine.high %v636_v46, %v644_v12  ;;  %v8774_v56 = vcombine.low %v635_v43, %v643_v45  ;;  %v173_v20 = vld [vmem:[#allocation5 + $0x130] sm:$0xff]  ;;  %v214_v43 = vld [vmem:[#allocation5 + $0x278] sm:$0xff] }
 0x1c6   :  { %v8776_v18 = vcombine.low %v636_v46, %v644_v12  ;;  %v8283_v59 = vcombine.high %v141_v51, %v149_v52  ;;  %v8285_v60 = vcombine.high %v142_v15, %v150_v53  ;;  %v8299_v14 = vcombine.high %v157_v0, %v165_v2  ;;  %v181_v21 = vld [vmem:[#allocation5 + $0x170] sm:$0xff] }
 0x1c7   :  { %3829 = vmatpush1.bf16.msra.mxu0 %v8694_v6  ;;  %3935 = vmatpush1.bf16.msra.mxu1 %v8696_v10  ;;  %v158_v6 = vld [vmem:[#allocation5 + $0xb8] sm:$0xff]  ;;  %v8315_v27 = vcombine.high %v173_v20, %v181_v21  ;;  %v8314_v34 = vcombine.low %v173_v20, %v181_v21 }
 0x1c8   :  { %3830 = vmatprep.subr.bf16.mxu0 %v8711_v11  ;;  %3936 = vmatprep.subr.bf16.mxu1 %v8713_v13  ;;  %v166_v10 = vld [vmem:[#allocation5 + $0xf8] sm:$0xff]  ;;  %v8282_v11 = vcombine.low %v141_v51, %v149_v52  ;;  %v8284_v13 = vcombine.low %v142_v15, %v150_v53 }
 0x1c9   :  { %v8301_v19 = vcombine.high %v158_v6, %v166_v10  ;;  %v8300_v26 = vcombine.low %v158_v6, %v166_v10  ;;  %v222_v51 = vld [vmem:[#allocation5 + $0x2b8] sm:$0xff] }
 0x1ca   :  { %v230_v52 = vld [vmem:[#allocation5 + $0x2f8] sm:$0xff] }
 0x1cb   :  { %3831 = vmatpush1.bf16.msra.mxu0 %v8710_v22  ;;  %3937 = vmatpush1.bf16.msra.mxu1 %v8712_v23  ;;  %v10685_v22 = vld [vmem:[#allocation2 + $0x8] ss:$16 sps:$4 sm:$0xff]   ;;  %v8364_v10 = vcombine.low %v222_v51, %v230_v52 }
 0x1cc   :  { %3832 = vmatprep.subr.bf16.mxu0 %v8727_v24  ;;  %3938 = vmatprep.subr.bf16.mxu1 %v8729_v25  ;;  %v174_v23 = vld [vmem:[#allocation5 + $0x138] sm:$0xff]  ;;  %v8298_v25 = vcombine.low %v157_v0, %v165_v2 }
 0x1cd   :  { %v182_v24 = vld [vmem:[#allocation5 + $0x178] sm:$0xff] }
 0x1ce   :  { %v8317_v29 = vcombine.high %v174_v23, %v182_v24  ;;  %v8316_v36 = vcombine.low %v174_v23, %v182_v24  ;;  %v238_v0 = vld [vmem:[#allocation5 + $0x338] sm:$0xff] }
 0x1cf   :  { %3833 = vmatpush1.bf16.msra.mxu0 %v8726_v30  ;;  %3939 = vmatpush1.bf16.msra.mxu1 %v8728_v31  ;;  %v189_v30 = vld [vmem:[#allocation5 + $0x1b0] sm:$0xff]  ;;  %v246_v2 = vld [vmem:[#allocation5 + $0x378] sm:$0xff] }
 0x1d0   :  { %3834 = vmatprep.subr.bf16.mxu0 %v8743_v32  ;;  %3940 = vmatprep.subr.bf16.mxu1 %v8745_v33  ;;  %v197_v31 = vld [vmem:[#allocation5 + $0x1f0] sm:$0xff]  ;;  %v190_v32 = vld [vmem:[#allocation5 + $0x1b8] sm:$0xff]  ;;  %v8380_v24 = vcombine.low %v238_v0, %v246_v2 }
 0x1d1   :  { %v198_v33 = vld [vmem:[#allocation5 + $0x1f8] sm:$0xff]  ;;  %v8331_v37 = vcombine.high %v189_v30, %v197_v31  ;;  %v8330_v45 = vcombine.low %v189_v30, %v197_v31 }
 0x1d2   :  { %v8333_v38 = vcombine.high %v190_v32, %v198_v33  ;;  %v8332_v46 = vcombine.low %v190_v32, %v198_v33  ;;  %v254_v20 = vld [vmem:[#allocation5 + $0x3b8] sm:$0xff] }
 0x1d3   :  { %3835 = vmatpush1.bf16.msra.mxu0 %v8742_v39  ;;  %3941 = vmatpush1.bf16.msra.mxu1 %v8744_v40  ;;  %v205_v39 = vld [vmem:[#allocation5 + $0x230] sm:$0xff]  ;;  %v262_v21 = vld [vmem:[#allocation5 + $0x3f8] sm:$0xff] }
 0x1d4   :  { %3836 = vmatprep.subr.bf16.mxu0 %v8759_v41  ;;  %3942 = vmatprep.subr.bf16.mxu1 %v8761_v42  ;;  %v213_v40 = vld [vmem:[#allocation5 + $0x270] sm:$0xff]  ;;  %v10693_v41 = vld [vmem:[#allocation2 + $0x28] ss:$16 sps:$4 sm:$0xff]   ;;  %v8396_v33 = vcombine.low %v254_v20, %v262_v21 }
 0x1d5   :  { %v206_v42 = vld [vmem:[#allocation5 + $0x238] sm:$0xff]  ;;  %v8347_v12 = vcombine.high %v205_v39, %v213_v40  ;;  %v8346_v15 = vcombine.low %v205_v39, %v213_v40 }
 0x1d6   :  { %v8348_v53 = vcombine.low %v206_v42, %v214_v43  ;;  %v270_v30 = vld [vmem:[#allocation5 + $0x438] sm:$0xff] }
 0x1d7   :  { %3837 = vmatpush1.bf16.msra.mxu0 %v8758_v47  ;;  %3943 = vmatpush1.bf16.msra.mxu1 %v8760_v48  ;;  %v8349_v47 = vcombine.high %v206_v42, %v214_v43  ;;  %v221_v48 = vld [vmem:[#allocation5 + $0x2b0] sm:$0xff]  ;;  %v278_v31 = vld [vmem:[#allocation5 + $0x478] sm:$0xff] }
 0x1d8   :  { %3838 = vmatprep.subr.bf16.mxu0 %v8775_v49  ;;  %3944 = vmatprep.subr.bf16.mxu1 %v8777_v50  ;;  %v229_v49 = vld [vmem:[#allocation5 + $0x2f0] sm:$0xff]  ;;  %v286_v39 = vld [vmem:[#allocation5 + $0x4b8] sm:$0xff]  ;;  %v8412_v43 = vcombine.low %v270_v30, %v278_v31 }
 0x1d9   :  { %v10342_v50 = vld [vmem:[#allocation2 + $0x4] ss:$16 sps:$4 sm:$0xff]   ;;  %v8362_v6 = vcombine.low %v221_v48, %v229_v49  ;;  %v294_v40 = vld [vmem:[#allocation5 + $0x4f8] sm:$0xff] }
 0x1db   :  { %3839 = vmatpush1.bf16.msra.mxu0 %v8774_v56  ;;  %3945 = vmatpush1.bf16.msra.mxu1 %v8776_v18  ;;  %v8363_v56 = vcombine.high %v221_v48, %v229_v49  ;;  %v8365_v18 = vcombine.high %v222_v51, %v230_v52  ;;  %v302_v48 = vld [vmem:[#allocation5 + $0x538] sm:$0xff]  ;;  %v8428_v51 = vcombine.low %v286_v39, %v294_v40 }
 0x1dc   :  { %3967 = vmatprep.subr.bf16.mxu0 %v8283_v59  ;;  %4073 = vmatprep.subr.bf16.mxu1 %v8285_v60  ;;  %v237_v59 = vld [vmem:[#allocation5 + $0x330] sm:$0xff]  ;;  %v310_v49 = vld [vmem:[#allocation5 + $0x578] sm:$0xff] }
 0x1dd   :  { %v245_v60 = vld [vmem:[#allocation5 + $0x370] sm:$0xff] }
 0x1de   :  { %3841 = vmatmul.mubr.bf16.vlgmr.msra.gmra.mrb[16].mxu0 %v10685_v22  ;;  %3947 = vmatmul.mubr.bf16.vlgmr.msra.gmra.mrb[16].mxu1 %v10685_v22  ;;  %v8378_v23 = vcombine.low %v237_v59, %v245_v60 }
 0x1df   :  { %3968 = vmatpush1.bf16.msra.mxu0 %v8282_v11  ;;  %4074 = vmatpush1.bf16.msra.mxu1 %v8284_v13  ;;  %v8379_v11 = vcombine.high %v237_v59, %v245_v60  ;;  %v8381_v13 = vcombine.high %v238_v0, %v246_v2  ;;  %v326_v59 = vld [vmem:[#allocation5 + $0x5f8] sm:$0xff]  ;;  %v8444_v0 = vcombine.low %v302_v48, %v310_v49 }
 0x1e0   :  { %3969 = vmatprep.subr.bf16.mxu0 %v8299_v14  ;;  %4075 = vmatprep.subr.bf16.mxu1 %v8301_v19  ;;  %v253_v14 = vld [vmem:[#allocation5 + $0x3b0] sm:$0xff] }
 0x1e1   :  { %3850 = vmatprep.mubr.bf16.mxu0 %v10689_v28  ;;  %3956 = vmatprep.mubr.bf16.mxu1 %v10689_v28  ;;  %v261_v19 = vld [vmem:[#allocation5 + $0x3f0] sm:$0xff] }
 0x1e2   :  { %v8394_v32 = vcombine.low %v253_v14, %v261_v19 }
 0x1e3   :  { %3970 = vmatpush1.bf16.msra.mxu0 %v8298_v25  ;;  %4076 = vmatpush1.bf16.msra.mxu1 %v8300_v26  ;;  %v8395_v25 = vcombine.high %v253_v14, %v261_v19  ;;  %v8397_v26 = vcombine.high %v254_v20, %v262_v21  ;;  %v342_v14 = vld [vmem:[#allocation5 + $0x678] sm:$0xff] }
 0x1e4   :  { %3971 = vmatprep.subr.bf16.mxu0 %v8315_v27  ;;  %4077 = vmatprep.subr.bf16.mxu1 %v8317_v29  ;;  %v269_v27 = vld [vmem:[#allocation5 + $0x430] sm:$0xff] }
 0x1e5   :  { %v277_v29 = vld [vmem:[#allocation5 + $0x470] sm:$0xff] }
 0x1e6   :  { %3851 = vmatmul.mubr.bf16.gmra.mrb[20].mxu0 %v10693_v41  ;;  %3957 = vmatmul.mubr.bf16.gmra.mrb[20].mxu1 %v10693_v41  ;;  %v8410_v42 = vcombine.low %v269_v27, %v277_v29 }
 0x1e7   :  { %3972 = vmatpush1.bf16.msra.mxu0 %v8314_v34  ;;  %4078 = vmatpush1.bf16.msra.mxu1 %v8316_v36  ;;  %v8411_v34 = vcombine.high %v269_v27, %v277_v29  ;;  %v8413_v36 = vcombine.high %v270_v30, %v278_v31  ;;  %v358_v27 = vld [vmem:[#allocation5 + $0x6f8] sm:$0xff] }
 0x1e8   :  { %3973 = vmatprep.subr.bf16.mxu0 %v8331_v37  ;;  %4079 = vmatprep.subr.bf16.mxu1 %v8333_v38  ;;  %v285_v37 = vld [vmem:[#allocation5 + $0x4b0] sm:$0xff] }
 0x1e9   :  { %3999 = vmatprep.mubr.bf16.mxu0 %v10342_v50  ;;  %4105 = vmatprep.mubr.bf16.mxu1 %v10342_v50  ;;  %v293_v38 = vld [vmem:[#allocation5 + $0x4f0] sm:$0xff] }
 0x1ea   :  { %v8426_v50 = vcombine.low %v285_v37, %v293_v38 }
 0x1eb   :  { %3974 = vmatpush1.bf16.msra.mxu0 %v8330_v45  ;;  %4080 = vmatpush1.bf16.msra.mxu1 %v8332_v46  ;;  %v8427_v45 = vcombine.high %v285_v37, %v293_v38  ;;  %v8429_v46 = vcombine.high %v286_v39, %v294_v40  ;;  %v374_v37 = vld [vmem:[#allocation5 + $0x778] sm:$0xff] }
 0x1ec   :  { %3975 = vmatprep.subr.bf16.mxu0 %v8347_v12  ;;  %4081 = vmatprep.subr.bf16.mxu1 %v8349_v47  ;;  %v301_v12 = vld [vmem:[#allocation5 + $0x530] sm:$0xff] }
 0x1ed   :  { %v309_v47 = vld [vmem:[#allocation5 + $0x570] sm:$0xff] }
 0x1ee   :  { %v8443_v52 = vcombine.high %v301_v12, %v309_v47  ;;  %v8442_v60 = vcombine.low %v301_v12, %v309_v47  ;;  %v390_v12 = vld [vmem:[#allocation5 + $0x7f8] sm:$0xff] }
 0x1ef   :  { %3976 = vmatpush1.bf16.msra.mxu0 %v8346_v15  ;;  %4082 = vmatpush1.bf16.msra.mxu1 %v8348_v53  ;;  %v8445_v15 = vcombine.high %v302_v48, %v310_v49  ;;  %v317_v53 = vld [vmem:[#allocation5 + $0x5b0] sm:$0xff] }
 0x1f0   :  { %3977 = vmatprep.subr.bf16.mxu0 %v8363_v56  ;;  %4083 = vmatprep.subr.bf16.mxu1 %v8365_v18  ;;  %v325_v56 = vld [vmem:[#allocation5 + $0x5f0] sm:$0xff]  ;;  %v318_v18 = vld [vmem:[#allocation5 + $0x5b8] sm:$0xff] }
 0x1f1   :  { %v8459_v2 = vcombine.high %v317_v53, %v325_v56  ;;  %v8458_v19 = vcombine.low %v317_v53, %v325_v56  ;;  %v8460_v20 = vcombine.low %v318_v18, %v326_v59  ;;  %v406_v53 = vld [vmem:[#allocation5 + $0x878] sm:$0xff] }
 0x1f3   :  { %3978 = vmatpush1.bf16.msra.mxu0 %v8362_v6  ;;  %4084 = vmatpush1.bf16.msra.mxu1 %v8364_v10  ;;  %v8461_v6 = vcombine.high %v318_v18, %v326_v59  ;;  %v333_v10 = vld [vmem:[#allocation5 + $0x630] sm:$0xff] }
 0x1f4   :  { %3979 = vmatprep.subr.bf16.mxu0 %v8379_v11  ;;  %4085 = vmatprep.subr.bf16.mxu1 %v8381_v13  ;;  %v341_v11 = vld [vmem:[#allocation5 + $0x670] sm:$0xff]  ;;  %v334_v13 = vld [vmem:[#allocation5 + $0x638] sm:$0xff] }
 0x1f5   :  { %v8475_v21 = vcombine.high %v333_v10, %v341_v11  ;;  %v8474_v29 = vcombine.low %v333_v10, %v341_v11  ;;  %v8476_v30 = vcombine.low %v334_v13, %v342_v14  ;;  %v422_v10 = vld [vmem:[#allocation5 + $0x8f8] sm:$0xff] }
 0x1f7   :  { %3980 = vmatpush1.bf16.msra.mxu0 %v8378_v23  ;;  %4086 = vmatpush1.bf16.msra.mxu1 %v8380_v24  ;;  %v8477_v23 = vcombine.high %v334_v13, %v342_v14  ;;  %v349_v24 = vld [vmem:[#allocation5 + $0x6b0] sm:$0xff] }
 0x1f8   :  { %3981 = vmatprep.subr.bf16.mxu0 %v8395_v25  ;;  %4087 = vmatprep.subr.bf16.mxu1 %v8397_v26  ;;  %v357_v25 = vld [vmem:[#allocation5 + $0x6f0] sm:$0xff]  ;;  %v350_v26 = vld [vmem:[#allocation5 + $0x6b8] sm:$0xff] }
 0x1f9   :  { %v8491_v31 = vcombine.high %v349_v24, %v357_v25  ;;  %v8490_v38 = vcombine.low %v349_v24, %v357_v25  ;;  %v8492_v39 = vcombine.low %v350_v26, %v358_v27  ;;  %v438_v24 = vld [vmem:[#allocation5 + $0x978] sm:$0xff] }
 0x1fb   :  { %3982 = vmatpush1.bf16.msra.mxu0 %v8394_v32  ;;  %4088 = vmatpush1.bf16.msra.mxu1 %v8396_v33  ;;  %v8493_v32 = vcombine.high %v350_v26, %v358_v27  ;;  %v365_v33 = vld [vmem:[#allocation5 + $0x730] sm:$0xff] }
 0x1fc   :  { %3983 = vmatprep.subr.bf16.mxu0 %v8411_v34  ;;  %4089 = vmatprep.subr.bf16.mxu1 %v8413_v36  ;;  %v373_v34 = vld [vmem:[#allocation5 + $0x770] sm:$0xff]  ;;  %v366_v36 = vld [vmem:[#allocation5 + $0x738] sm:$0xff] }
 0x1fd   :  { %v8507_v40 = vcombine.high %v365_v33, %v373_v34  ;;  %v8506_v47 = vcombine.low %v365_v33, %v373_v34  ;;  %v8508_v48 = vcombine.low %v366_v36, %v374_v37  ;;  %v454_v33 = vld [vmem:[#allocation5 + $0x9f8] sm:$0xff] }
 0x1ff   :  { %3984 = vmatpush1.bf16.msra.mxu0 %v8410_v42  ;;  %4090 = vmatpush1.bf16.msra.mxu1 %v8412_v43  ;;  %v8509_v42 = vcombine.high %v366_v36, %v374_v37  ;;  %v381_v43 = vld [vmem:[#allocation5 + $0x7b0] sm:$0xff] }
 0x200   :  { %3985 = vmatprep.subr.bf16.mxu0 %v8427_v45  ;;  %4091 = vmatprep.subr.bf16.mxu1 %v8429_v46  ;;  %v389_v45 = vld [vmem:[#allocation5 + $0x7f0] sm:$0xff]  ;;  %v382_v46 = vld [vmem:[#allocation5 + $0x7b8] sm:$0xff] }
 0x201   :  { %v8523_v49 = vcombine.high %v381_v43, %v389_v45  ;;  %v8522_v56 = vcombine.low %v381_v43, %v389_v45  ;;  %v8524_v18 = vcombine.low %v382_v46, %v390_v12 }
 0x203   :  { %3986 = vmatpush1.bf16.msra.mxu0 %v8426_v50  ;;  %4092 = vmatpush1.bf16.msra.mxu1 %v8428_v51  ;;  %v8525_v50 = vcombine.high %v382_v46, %v390_v12  ;;  %v397_v51 = vld [vmem:[#allocation5 + $0x830] sm:$0xff] }
 0x204   :  { %3987 = vmatprep.subr.bf16.mxu0 %v8443_v52  ;;  %4093 = vmatprep.subr.bf16.mxu1 %v8445_v15  ;;  %v405_v52 = vld [vmem:[#allocation5 + $0x870] sm:$0xff]  ;;  %v398_v15 = vld [vmem:[#allocation5 + $0x838] sm:$0xff] }
 0x205   :  { %v8539_v59 = vcombine.high %v397_v51, %v405_v52  ;;  %v8538_v11 = vcombine.low %v397_v51, %v405_v52  ;;  %v8540_v13 = vcombine.low %v398_v15, %v406_v53  ;;  %v477_v12 = vld [vmem:[#allocation5 + $0xab0] sm:$0xff]  ;;  %v673_v52 = vsub.s32 5, %v10593_v54 }
 0x207   :  { %3988 = vmatpush1.bf16.msra.mxu0 %v8442_v60  ;;  %4094 = vmatpush1.bf16.msra.mxu1 %v8444_v0  ;;  %v8541_v60 = vcombine.high %v398_v15, %v406_v53  ;;  %v413_v0 = vld [vmem:[#allocation5 + $0x8b0] sm:$0xff]  ;;  %v681_v53 = vsub.s32 7, %v10593_v54 }
 0x208   :  { %3989 = vmatprep.subr.bf16.mxu0 %v8459_v2  ;;  %4095 = vmatprep.subr.bf16.mxu1 %v8461_v6  ;;  %v421_v2 = vld [vmem:[#allocation5 + $0x8f0] sm:$0xff]  ;;  %v414_v6 = vld [vmem:[#allocation5 + $0x8b8] sm:$0xff] }
 0x209   :  { %v8555_v14 = vcombine.high %v413_v0, %v421_v2  ;;  %v8554_v25 = vcombine.low %v413_v0, %v421_v2  ;;  %v8556_v26 = vcombine.low %v414_v6, %v422_v10  ;;  %v494_v0 = vld [vmem:[#allocation5 + $0xb38] sm:$0xff] }
 0x20a   :  { %v502_v2 = vld [vmem:[#allocation5 + $0xb78] sm:$0xff] }
 0x20b   :  { %3990 = vmatpush1.bf16.msra.mxu0 %v8458_v19  ;;  %4096 = vmatpush1.bf16.msra.mxu1 %v8460_v20  ;;  %v8557_v19 = vcombine.high %v414_v6, %v422_v10  ;;  %v429_v20 = vld [vmem:[#allocation5 + $0x930] sm:$0xff]  ;;  %v10722_v10 = vrot.slane %v10606_v3, %v673_v52 }
 0x20c   :  { %3991 = vmatprep.subr.bf16.mxu0 %v8475_v21  ;;  %4097 = vmatprep.subr.bf16.mxu1 %v8477_v23  ;;  %v437_v21 = vld [vmem:[#allocation5 + $0x970] sm:$0xff]  ;;  %v430_v23 = vld [vmem:[#allocation5 + $0x938] sm:$0xff] }
 0x20d   :  { %v8571_v27 = vcombine.high %v429_v20, %v437_v21  ;;  %v8570_v34 = vcombine.low %v429_v20, %v437_v21  ;;  %v8637_v21 = vcombine.high %v494_v0, %v502_v2 }
 0x20f   :  { %3992 = vmatpush1.bf16.msra.mxu0 %v8474_v29  ;;  %4098 = vmatpush1.bf16.msra.mxu1 %v8476_v30  ;;  %v8573_v29 = vcombine.high %v430_v23, %v438_v24  ;;  %v445_v30 = vld [vmem:[#allocation5 + $0x9b0] sm:$0xff] }
 0x210   :  { %3993 = vmatprep.subr.bf16.mxu0 %v8491_v31  ;;  %4099 = vmatprep.subr.bf16.mxu1 %v8493_v32  ;;  %v453_v31 = vld [vmem:[#allocation5 + $0x9f0] sm:$0xff]  ;;  %v446_v32 = vld [vmem:[#allocation5 + $0x9b8] sm:$0xff] }
 0x211   :  { %v8587_v36 = vcombine.high %v445_v30, %v453_v31  ;;  %v8589_v37 = vcombine.high %v446_v32, %v454_v33  ;;  %v8586_v43 = vcombine.low %v445_v30, %v453_v31  ;;  %v10734_v30 = vld [vmem:[#allocation5 + $0xbf8] sm:$0xff] }
 0x213   :  { %3994 = vmatpush1.bf16.msra.mxu0 %v8490_v38  ;;  %4100 = vmatpush1.bf16.msra.mxu1 %v8492_v39  ;;  %v461_v38 = vld [vmem:[#allocation5 + $0xa30] sm:$0xff] }
 0x214   :  { %3995 = vmatprep.subr.bf16.mxu0 %v8507_v40  ;;  %4101 = vmatprep.subr.bf16.mxu1 %v8509_v42  ;;  %v469_v39 = vld [vmem:[#allocation5 + $0xa70] sm:$0xff]  ;;  %v462_v40 = vld [vmem:[#allocation5 + $0xa38] sm:$0xff] }
 0x215   :  { %v470_v42 = vld [vmem:[#allocation5 + $0xa78] sm:$0xff]  ;;  %v8603_v45 = vcombine.high %v461_v38, %v469_v39  ;;  %v8602_v51 = vcombine.low %v461_v38, %v469_v39 }
 0x216   :  { %v8605_v46 = vcombine.high %v462_v40, %v470_v42  ;;  %v8604_v15 = vcombine.low %v462_v40, %v470_v42 }
 0x217   :  { %3996 = vmatpush1.bf16.msra.mxu0 %v8506_v47  ;;  %4102 = vmatpush1.bf16.msra.mxu1 %v8508_v48  ;;  %v485_v47 = vld [vmem:[#allocation5 + $0xaf0] sm:$0xff]  ;;  %v669_v48 = vsub.s32 4, %v10593_v54 }
 0x218   :  { %3997 = vmatprep.subr.bf16.mxu0 %v8523_v49  ;;  %4103 = vmatprep.subr.bf16.mxu1 %v8525_v50  ;;  %v478_v49 = vld [vmem:[#allocation5 + $0xab8] sm:$0xff] }
 0x219   :  { %v486_v50 = vld [vmem:[#allocation5 + $0xaf8] sm:$0xff] }
 0x21b   :  { %3998 = vmatpush1.bf16.msra.mxu0 %v8522_v56  ;;  %4104 = vmatpush1.bf16.msra.mxu1 %v8524_v18  ;;  %v8619_v56 = vcombine.high %v477_v12, %v485_v47  ;;  %v8621_v18 = vcombine.high %v478_v49, %v486_v50 }
 0x21c   :  { %4020 = vmatprep.subr.bf16.mxu0 %v8539_v59  ;;  %4126 = vmatprep.subr.bf16.mxu1 %v8541_v60  ;;  %v493_v59 = vld [vmem:[#allocation5 + $0xb30] sm:$0xff] }
 0x21d   :  { %v501_v60 = vld [vmem:[#allocation5 + $0xb70] sm:$0xff] }
 0x21e   :  { %4000 = vmatmul.mubr.bf16.vlgmr.msra.gmra.mrb[24].mxu0 %v10585_v35  ;;  %4106 = vmatmul.mubr.bf16.vlgmr.msra.gmra.mrb[24].mxu1 %v10585_v35  ;;  %v8572_v35 = vcombine.low %v430_v23, %v438_v24  ;;  %v10729_v23 = vld [vmem:[#allocation5 + $0xbb0] sm:$0xff] }
 0x21f   :  { %4021 = vmatpush1.bf16.msra.mxu0 %v8538_v11  ;;  %4127 = vmatpush1.bf16.msra.mxu1 %v8540_v13  ;;  %v8618_v11 = vcombine.low %v477_v12, %v485_v47  ;;  %v10727_v13 = vrot.slane %v10606_v3, %v681_v53  ;;  %v517_v24 = vld [vmem:[#allocation5 + $0xbf0] sm:$0xff] }
 0x220   :  { %4022 = vmatprep.subr.bf16.mxu0 %v8555_v14  ;;  %4128 = vmatprep.subr.bf16.mxu1 %v8557_v19  ;;  %v8620_v14 = vcombine.low %v478_v49, %v486_v50  ;;  %v8635_v19 = vcombine.high %v493_v59, %v501_v60  ;;  %v8651_v40 = vcombine.high %v10729_v23, %v517_v24  ;;  %v10746_v12 = vld [vmem:[#allocation5 + $0xc30] sm:$0xff] }
 0x221   :  { %4009 = vmatprep.mubr.bf16.mxu0 %v10589_v44  ;;  %4115 = vmatprep.mubr.bf16.mxu1 %v10589_v44  ;;  %v8588_v44 = vcombine.low %v446_v32, %v454_v33  ;;  %v10748_v47 = vld [vmem:[#allocation5 + $0xc70] sm:$0xff] }
 0x223   :  { %4023 = vmatpush1.bf16.msra.mxu0 %v8554_v25  ;;  %4129 = vmatpush1.bf16.msra.mxu1 %v8556_v26 }
 0x224   :  { %4024 = vmatprep.subr.bf16.mxu0 %v8571_v27  ;;  %4130 = vmatprep.subr.bf16.mxu1 %v8573_v29  ;;  %v10732_v29 = vld [vmem:[#allocation5 + $0xbb8] sm:$0xff] }
 0x226   :  { %4010 = vmatmul.mubr.bf16.gmra.mrb[28].mxu0 %v10595_v55  ;;  %4116 = vmatmul.mubr.bf16.gmra.mrb[28].mxu1 %v10595_v55  ;;  %v677_v55 = vsub.s32 6, %v10593_v54 }
 0x227   :  { %4025 = vmatpush1.bf16.msra.mxu0 %v8570_v34  ;;  %4131 = vmatpush1.bf16.msra.mxu1 %v8572_v35  ;;  %v8634_v34 = vcombine.low %v493_v59, %v501_v60  ;;  %v8636_v35 = vcombine.low %v494_v0, %v502_v2 }
 0x228   :  { %4026 = vmatprep.subr.bf16.mxu0 %v8587_v36  ;;  %4132 = vmatprep.subr.bf16.mxu1 %v8589_v37  ;;  %v10717_v6 = vrot.slane %v10606_v3, %v677_v55 }
 0x229   :  { %4052 = vmatprep.mubr.bf16.mxu0 %v10599_v62  ;;  %4158 = vmatprep.mubr.bf16.mxu1 %v10599_v62  ;;  %v10712_v62 = vrot.slane %v10606_v3, %v669_v48 }
 0x22b   :  { %4027 = vmatpush1.bf16.msra.mxu0 %v8586_v43  ;;  %4133 = vmatpush1.bf16.msra.mxu1 %v8588_v44 }
 0x22c   :  { %4028 = vmatprep.subr.bf16.mxu0 %v8603_v45  ;;  %4134 = vmatprep.subr.bf16.mxu1 %v8605_v46  ;;  %v8650_v45 = vcombine.low %v10729_v23, %v517_v24  ;;  %v8653_v46 = vcombine.high %v10732_v29, %v10734_v30 }
 0x22f   :  { %4029 = vmatpush1.bf16.msra.mxu0 %v8602_v51  ;;  %4135 = vmatpush1.bf16.msra.mxu1 %v8604_v15  ;;  %v8652_v15 = vcombine.low %v10732_v29, %v10734_v30 }
 0x230   :  { %4030 = vmatprep.subr.bf16.mxu0 %v8619_v56  ;;  %4136 = vmatprep.subr.bf16.mxu1 %v8621_v18  ;;  %v526_v56 = vld [vmem:[#allocation5 + $0xc38] sm:$0xff] }
 0x231   :  { %v3630_v20 = vpop.f32.mrb[8].mxu0  ;;  %v3736_v26 = vpop.f32.mrb[8].mxu1  ;;  %v534_v18 = vld [vmem:[#allocation5 + $0xc78] sm:$0xff] }
 0x232   :  { %v9310_v25 = vadd.f32 %v3630_v20, %v10712_v62  ;;  %v3632_v27 = vpop.f32.mrb[9].mxu0  ;;  %v9318_v3 = vadd.f32 %v3736_v26, %v10717_v6  ;;  %v3738_v32 = vpop.f32.mrb[9].mxu1  ;;  %v8667_v20 = vcombine.high %v10746_v12, %v10748_v47  ;;  %v541_v26 = vld [vmem:[#allocation5 + $0xcb0] sm:$0xff] }
 0x233   :  { %v9311_v31 = vadd.f32 %v3632_v27, %v10722_v10  ;;  %v3634_v33 = vpop.f32.mrb[10].mxu0  ;;  %4031 = vmatpush1.bf16.msra.mxu0 %v8618_v11  ;;  %v9319_v36 = vadd.f32 %v3738_v32, %v10727_v13  ;;  %v3740_v38 = vpop.f32.mrb[10].mxu1  ;;  %4137 = vmatpush1.bf16.msra.mxu1 %v8620_v14  ;;  %v549_v27 = vld [vmem:[#allocation5 + $0xcf0] sm:$0xff]  ;;  %v542_v32 = vld [vmem:[#allocation5 + $0xcb8] sm:$0xff] }
 0x234   :  { %v9312_v37 = vadd.f32 %v3634_v33, %v10712_v62  ;;  %v3636_v39 = vpop.f32.mrb[11].mxu0  ;;  %4032 = vmatprep.subr.bf16.mxu0 %v8635_v19  ;;  %v9320_v42 = vadd.f32 %v3740_v38, %v10717_v6  ;;  %v3742_v44 = vpop.f32.mrb[11].mxu1  ;;  %4138 = vmatprep.subr.bf16.mxu1 %v8637_v21  ;;  %v4183_v49 = vmax.f32 %v9310_v25, 0.0  ;;  %v4185_v59 = vmax.f32 %v9318_v3, 0.0  ;;  %v550_v33 = vld [vmem:[#allocation5 + $0xcf8] sm:$0xff] }
 0x235   :  { %v9313_v43 = vadd.f32 %v3636_v39, %v10722_v10  ;;  %v9321_v51 = vadd.f32 %v3742_v44, %v10727_v13  ;;  %v4184_v60 = vmax.f32 %v9311_v31, 0.0  ;;  %v4186_v11 = vmax.f32 %v9319_v36, 0.0 }
 0x236   :  { %v4199_v50 = vmax.f32 %v9312_v37, 0.0  ;;  %v4201_v0 = vmax.f32 %v9320_v42, 0.0  ;;  %v8669_v25 = vcombine.high %v526_v56, %v534_v18  ;;  %v8666_v38 = vcombine.low %v10746_v12, %v10748_v47  ;;  %v565_v12 = vld [vmem:[#allocation5 + $0xd70] sm:$0xff] }
 0x237   :  { %v4200_v2 = vmax.f32 %v9313_v43, 0.0  ;;  %4033 = vmatpush1.bf16.msra.mxu0 %v8634_v34  ;;  %v4202_v19 = vmax.f32 %v9321_v51, 0.0  ;;  %4139 = vmatpush1.bf16.msra.mxu1 %v8636_v35  ;;  %v8668_v39 = vcombine.low %v526_v56, %v534_v18 }
 0x238   :  { %v10753_v14 = vpack.c.bf16 %v4199_v50, %v4183_v49  ;;  %4034 = vmatprep.subr.bf16.mxu0 %v8651_v40  ;;  %v10757_v21 = vpack.c.bf16 %v4201_v0, %v4185_v59  ;;  %4140 = vmatprep.subr.bf16.mxu1 %v8653_v46  ;;  %v8683_v46 = vcombine.high %v541_v26, %v549_v27  ;;  %v558_v0 = vld [vmem:[#allocation5 + $0xd38] sm:$0xff] }
 0x239   :  { %v10759_v23 = vpack.c.bf16 %v4200_v2, %v4184_v60  ;;  %v3640_v24 = vpop.f32.mrb[12].mxu0  ;;  %v10761_v29 = vpack.c.bf16 %v4202_v19, %v4186_v11  ;;  %v3746_v3 = vpop.f32.mrb[12].mxu1  ;;  %v8685_v59 = vcombine.high %v542_v32, %v550_v33  ;;  %v557_v60 = vld [vmem:[#allocation5 + $0xd30] sm:$0xff] }
 0x23a   :  { %v9314_v30 = vadd.f32 %v3640_v24, %v10712_v62  ;;  %v3642_v31 = vpop.f32.mrb[13].mxu0  ;;  %v9322_v34 = vadd.f32 %v3746_v3, %v10717_v6  ;;  %v3748_v36 = vpop.f32.mrb[13].mxu1  ;;  %v581_v3 = vld [vmem:[#allocation5 + $0xdf0] sm:$0xff] }
 0x23b   :  { %v9315_v35 = vadd.f32 %v3642_v31, %v10722_v10  ;;  %v3644_v37 = vpop.f32.mrb[14].mxu0  ;;  %4035 = vmatpush1.bf16.msra.mxu0 %v8650_v45  ;;  %v9323_v40 = vadd.f32 %v3748_v36, %v10727_v13  ;;  %v3750_v43 = vpop.f32.mrb[14].mxu1  ;;  %4141 = vmatpush1.bf16.msra.mxu1 %v8652_v15  ;;  %v8682_v45 = vcombine.low %v541_v26, %v549_v27  ;;  %v566_v15 = vld [vmem:[#allocation5 + $0xd78] sm:$0xff] }
 0x23c   :  { %v9316_v42 = vadd.f32 %v3644_v37, %v10712_v62  ;;  %v3646_v44 = vpop.f32.mrb[15].mxu0  ;;  %4036 = vmatprep.subr.bf16.mxu0 %v8667_v20  ;;  %v9324_v49 = vadd.f32 %v3750_v43, %v10717_v6  ;;  %v3752_v51 = vpop.f32.mrb[15].mxu1  ;;  %4142 = vmatprep.subr.bf16.mxu1 %v8669_v25  ;;  %v4215_v47 = vmax.f32 %v9314_v30, 0.0  ;;  %v8684_v62 = vcombine.low %v542_v32, %v550_v33  ;;  %v573_v30 = vld [vmem:[#allocation5 + $0xdb0] sm:$0xff]  ;;  %v574_v32 = vld [vmem:[#allocation5 + $0xdb8] sm:$0xff] }
 0x23d   :  { %v9317_v50 = vadd.f32 %v3646_v44, %v10722_v10  ;;  %v9325_v18 = vadd.f32 %v3752_v51, %v10727_v13  ;;  %v4217_v2 = vmax.f32 %v9322_v34, 0.0  ;;  %v4216_v11 = vmax.f32 %v9315_v35, 0.0  ;;  %v582_v33 = vld [vmem:[#allocation5 + $0xdf8] sm:$0xff]  ;;  %v613_v51 = vld [vmem:[#allocation5 + $0xef0] sm:$0xff] }
 0x23e   :  { %v4231_v56 = vmax.f32 %v9316_v42, 0.0  ;;  %v4233_v19 = vmax.f32 %v9324_v49, 0.0  ;;  %v4218_v6 = vmax.f32 %v9323_v40, 0.0  ;;  %v8699_v25 = vcombine.high %v557_v60, %v565_v12  ;;  %v590_v40 = vld [vmem:[#allocation5 + $0xe38] sm:$0xff] }
 0x23f   :  { %v4232_v20 = vmax.f32 %v9317_v50, 0.0  ;;  %4037 = vmatpush1.bf16.msra.mxu0 %v8666_v38  ;;  %v4234_v24 = vmax.f32 %v9325_v18, 0.0  ;;  %4143 = vmatpush1.bf16.msra.mxu1 %v8668_v39  ;;  %v8701_v13 = vcombine.high %v558_v0, %v566_v15  ;;  %v8698_v34 = vcombine.low %v557_v60, %v565_v12  ;;  %v589_v38 = vld [vmem:[#allocation5 + $0xe30] sm:$0xff]  ;;  %v598_v42 = vld [vmem:[#allocation5 + $0xe78] sm:$0xff] }
 0x240   :  { %v10773_v10 = vpack.c.bf16 %v4231_v56, %v4215_v47  ;;  %4038 = vmatprep.subr.bf16.mxu0 %v8683_v46  ;;  %v10775_v26 = vpack.c.bf16 %v4233_v19, %v4217_v2  ;;  %4144 = vmatprep.subr.bf16.mxu1 %v8685_v59  ;;  %v8700_v35 = vcombine.low %v558_v0, %v566_v15  ;;  %v597_v39 = vld [vmem:[#allocation5 + $0xe70] sm:$0xff]  ;;  %v614_v59 = vld [vmem:[#allocation5 + $0xef8] sm:$0xff] }
 0x241   :  { %v10777_v27 = vpack.c.bf16 %v4232_v20, %v4216_v11  ;;  %v10779_v31 = vpack.c.bf16 %v4234_v24, %v4218_v6  ;;  %v8715_v36 = vcombine.high %v573_v30, %v581_v3  ;;  %v8717_v37 = vcombine.high %v574_v32, %v582_v33  ;;  %v605_v50 = vld [vmem:[#allocation5 + $0xeb0] sm:$0xff]  ;;  %v622_v0 = vld [vmem:[#allocation5 + $0xf38] sm:$0xff] }
 0x242   :  { %v8714_v43 = vcombine.low %v573_v30, %v581_v3  ;;  %v8716_v44 = vcombine.low %v574_v32, %v582_v33  ;;  %v8731_v46 = vcombine.high %v589_v38, %v597_v39  ;;  %v8733_v49 = vcombine.high %v590_v40, %v598_v42  ;;  %v621_v18 = vld [vmem:[#allocation5 + $0xf30] sm:$0xff]  ;;  %v630_v15 = vld [vmem:[#allocation5 + $0xf78] sm:$0xff] }
 0x243   :  { %4039 = vmatpush1.bf16.msra.mxu0 %v8682_v45  ;;  %4145 = vmatpush1.bf16.msra.mxu1 %v8684_v62  ;;  %v606_v45 = vld [vmem:[#allocation5 + $0xeb8] sm:$0xff]  ;;  %v8730_v60 = vcombine.low %v589_v38, %v597_v39  ;;  %v8732_v12 = vcombine.low %v590_v40, %v598_v42  ;;  %v8747_v47 = vcombine.high %v605_v50, %v613_v51  ;;  %v629_v62 = vld [vmem:[#allocation5 + $0xf70] sm:$0xff] }
 0x244   :  { %4040 = vmatprep.subr.bf16.mxu0 %v8699_v25  ;;  %4146 = vmatprep.subr.bf16.mxu1 %v8701_v13  ;;  %v8749_v56 = vcombine.high %v606_v45, %v614_v59  ;;  %v8746_v2 = vcombine.low %v605_v50, %v613_v51  ;;  %v8748_v11 = vcombine.low %v606_v45, %v614_v59  ;;  %v637_v6 = vld [vmem:[#allocation5 + $0xfb0] sm:$0xff]  ;;  %v638_v25 = vld [vmem:[#allocation5 + $0xfb8] sm:$0xff] }
 0x245   :  { %v8763_v19 = vcombine.high %v621_v18, %v629_v62  ;;  %v8765_v20 = vcombine.high %v622_v0, %v630_v15  ;;  %v645_v24 = vld [vmem:[#allocation5 + $0xff0] sm:$0xff]  ;;  %v646_v13 = vld [vmem:[#allocation5 + $0xff8] sm:$0xff]  ;;  %v8762_v30 = vcombine.low %v621_v18, %v629_v62  ;;  %v8764_v3 = vcombine.low %v622_v0, %v630_v15 }
 0x246   :  { %v8779_v32 = vcombine.high %v637_v6, %v645_v24  ;;  %v8781_v33 = vcombine.high %v638_v25, %v646_v13  ;;  %v9558_v38 = vld [vmem:[#allocation8] ss:$16 sps:$4 sm:$0xff]   ;;  %v9561_v39 = vld [vmem:[#allocation8 + $0x8] ss:$16 sps:$4 sm:$0xff]   ;;  %v9566_v40 = vld [vmem:[#allocation8 + $0x24] ss:$16 sps:$4 sm:$0xff]  }
 0x247   :  { %4041 = vmatpush1.bf16.msra.mxu0 %v8698_v34  ;;  %4147 = vmatpush1.bf16.msra.mxu1 %v8700_v35  ;;  %v8778_v34 = vcombine.low %v637_v6, %v645_v24  ;;  %v8780_v35 = vcombine.low %v638_v25, %v646_v13  ;;  %v9569_v42 = vld [vmem:[#allocation8 + $0x2c] ss:$16 sps:$4 sm:$0xff]   ;;  %v9570_v50 = vld [vmem:[#allocation8 + $0x40] ss:$16 sps:$4 sm:$0xff]   ;;  %v9573_v51 = vld [vmem:[#allocation8 + $0x48] ss:$16 sps:$4 sm:$0xff]  }
 0x248   :  { %4042 = vmatprep.subr.bf16.mxu0 %v8715_v36  ;;  %4148 = vmatprep.subr.bf16.mxu1 %v8717_v37  ;;  %v9560_v36 = vld [vmem:[#allocation8 + $0x4] ss:$16 sps:$4 sm:$0xff]   ;;  %v9563_v37 = vld [vmem:[#allocation8 + $0xc] ss:$16 sps:$4 sm:$0xff]   ;;  %v9576_v59 = vld [vmem:[#allocation8 + $0x60] ss:$16 sps:$4 sm:$0xff]  }
 0x249   :  { %v9578_v45 = vld [vmem:[#allocation8 + $0x64] ss:$16 sps:$4 sm:$0xff]   ;;  %v9588_v62 = vld [vmem:[#allocation8 + $0xa0] ss:$16 sps:$4 sm:$0xff]   ;;  %v9591_v0 = vld [vmem:[#allocation8 + $0xa8] ss:$16 sps:$4 sm:$0xff]  }
 0x24a   :  { %v9590_v18 = vld [vmem:[#allocation8 + $0xa4] ss:$16 sps:$4 sm:$0xff]   ;;  %v9600_v6 = vld [vmem:[#allocation8 + $0xe0] ss:$16 sps:$4 sm:$0xff]   ;;  %v9603_v24 = vld [vmem:[#allocation8 + $0xe8] ss:$16 sps:$4 sm:$0xff]  }
 0x24b   :  { %4043 = vmatpush1.bf16.msra.mxu0 %v8714_v43  ;;  %4149 = vmatpush1.bf16.msra.mxu1 %v8716_v44  ;;  %v9564_v43 = vld [vmem:[#allocation8 + $0x20] ss:$16 sps:$4 sm:$0xff]   ;;  %v9567_v44 = vld [vmem:[#allocation8 + $0x28] ss:$16 sps:$4 sm:$0xff]   ;;  %v9596_v15 = vld [vmem:[#allocation8 + $0xc4] ss:$16 sps:$4 sm:$0xff]  }
 0x24c   :  { %4044 = vmatprep.subr.bf16.mxu0 %v8731_v46  ;;  %4150 = vmatprep.subr.bf16.mxu1 %v8733_v49  ;;  %v9572_v46 = vld [vmem:[#allocation8 + $0x44] ss:$16 sps:$4 sm:$0xff]   ;;  %v9575_v49 = vld [vmem:[#allocation8 + $0x4c] ss:$16 sps:$4 sm:$0xff]  }
 0x24d   :  { %v9608_v25 = vld [vmem:[#allocation8 + $0x104] ss:$16 sps:$4 sm:$0xff]   ;;  %v9611_v13 = vld [vmem:[#allocation8 + $0x10c] ss:$16 sps:$4 sm:$0xff]  }
 0x24f   :  { %4045 = vmatpush1.bf16.msra.mxu0 %v8730_v60  ;;  %4151 = vmatpush1.bf16.msra.mxu1 %v8732_v12  ;;  %v9579_v60 = vld [vmem:[#allocation8 + $0x68] ss:$16 sps:$4 sm:$0xff]   ;;  %v9584_v12 = vld [vmem:[#allocation8 + $0x84] ss:$16 sps:$4 sm:$0xff]  }
 0x250   :  { %4046 = vmatprep.subr.bf16.mxu0 %v8747_v47  ;;  %4152 = vmatprep.subr.bf16.mxu1 %v8749_v56  ;;  %v9582_v47 = vld [vmem:[#allocation8 + $0x80] ss:$16 sps:$4 sm:$0xff]   ;;  %v9585_v56 = vld [vmem:[#allocation8 + $0x88] ss:$16 sps:$4 sm:$0xff]  }
 0x253   :  { %4047 = vmatpush1.bf16.msra.mxu0 %v8746_v2  ;;  %4153 = vmatpush1.bf16.msra.mxu1 %v8748_v11  ;;  %v9599_v2 = vld [vmem:[#allocation8 + $0xcc] ss:$16 sps:$4 sm:$0xff]   ;;  %v9597_v11 = vld [vmem:[#allocation8 + $0xc8] ss:$16 sps:$4 sm:$0xff]  }
 0x254   :  { %4048 = vmatprep.subr.bf16.mxu0 %v8763_v19  ;;  %4154 = vmatprep.subr.bf16.mxu1 %v8765_v20  ;;  %v9602_v19 = vld [vmem:[#allocation8 + $0xe4] ss:$16 sps:$4 sm:$0xff]   ;;  %v9605_v20 = vld [vmem:[#allocation8 + $0xec] ss:$16 sps:$4 sm:$0xff]  }
 0x257   :  { %4049 = vmatpush1.bf16.msra.mxu0 %v8762_v30  ;;  %4155 = vmatpush1.bf16.msra.mxu1 %v8764_v3  ;;  %v9606_v30 = vld [vmem:[#allocation8 + $0x100] ss:$16 sps:$4 sm:$0xff]   ;;  %v9609_v3 = vld [vmem:[#allocation8 + $0x108] ss:$16 sps:$4 sm:$0xff]  }
 0x258   :  { %4050 = vmatprep.subr.bf16.mxu0 %v8779_v32  ;;  %4156 = vmatprep.subr.bf16.mxu1 %v8781_v33  ;;  %v9614_v32 = vld [vmem:[#allocation8 + $0x124] ss:$16 sps:$4 sm:$0xff]   ;;  %v9617_v33 = vld [vmem:[#allocation8 + $0x12c] ss:$16 sps:$4 sm:$0xff]  }
 0x25b   :  { %4051 = vmatpush1.bf16.msra.mxu0 %v8778_v34  ;;  %4157 = vmatpush1.bf16.msra.mxu1 %v8780_v35  ;;  %v9612_v34 = vld [vmem:[#allocation8 + $0x120] ss:$16 sps:$4 sm:$0xff]   ;;  %v9615_v35 = vld [vmem:[#allocation8 + $0x128] ss:$16 sps:$4 sm:$0xff]  }
 0x25c   :  { %7363 = vmatprep.subr.bf16.mxu0 %v9560_v36  ;;  %7787 = vmatprep.subr.bf16.mxu1 %v9563_v37  ;;  %v9620_v36 = vld [vmem:[#allocation8 + $0x144] ss:$16 sps:$4 sm:$0xff]   ;;  %v9623_v37 = vld [vmem:[#allocation8 + $0x14c] ss:$16 sps:$4 sm:$0xff]  }
 0x25e   :  { %4053 = vmatmul.mubr.bf16.vlgmr.msra.gmra.mrb[24].mxu0 %v10685_v22  ;;  %4159 = vmatmul.mubr.bf16.vlgmr.msra.gmra.mrb[24].mxu1 %v10685_v22  ;;  %v9581_v22 = vld [vmem:[#allocation8 + $0x6c] ss:$16 sps:$4 sm:$0xff]  }
 0x25f   :  { %7364 = vmatpush1.bf16.msra.mxu0 %v9558_v38  ;;  %7788 = vmatpush1.bf16.msra.mxu1 %v9561_v39  ;;  %v9618_v38 = vld [vmem:[#allocation8 + $0x140] ss:$16 sps:$4 sm:$0xff]   ;;  %v9621_v39 = vld [vmem:[#allocation8 + $0x148] ss:$16 sps:$4 sm:$0xff]  }
 0x260   :  { %7365 = vmatprep.subr.bf16.mxu0 %v9566_v40  ;;  %7789 = vmatprep.subr.bf16.mxu1 %v9569_v42  ;;  %v9626_v40 = vld [vmem:[#allocation8 + $0x164] ss:$16 sps:$4 sm:$0xff]   ;;  %v9629_v42 = vld [vmem:[#allocation8 + $0x16c] ss:$16 sps:$4 sm:$0xff]  }
 0x261   :  { %4062 = vmatprep.mubr.bf16.mxu0 %v10689_v28  ;;  %4168 = vmatprep.mubr.bf16.mxu1 %v10689_v28  ;;  %v9587_v28 = vld [vmem:[#allocation8 + $0x8c] ss:$16 sps:$4 sm:$0xff]  }
 0x263   :  { %7366 = vmatpush1.bf16.msra.mxu0 %v9564_v43  ;;  %7790 = vmatpush1.bf16.msra.mxu1 %v9567_v44  ;;  %v9624_v43 = vld [vmem:[#allocation8 + $0x160] ss:$16 sps:$4 sm:$0xff]   ;;  %v9627_v44 = vld [vmem:[#allocation8 + $0x168] ss:$16 sps:$4 sm:$0xff]  }
 0x264   :  { %7367 = vmatprep.subr.bf16.mxu0 %v9572_v46  ;;  %7791 = vmatprep.subr.bf16.mxu1 %v9575_v49  ;;  %v9632_v46 = vld [vmem:[#allocation8 + $0x184] ss:$16 sps:$4 sm:$0xff]   ;;  %v9635_v49 = vld [vmem:[#allocation8 + $0x18c] ss:$16 sps:$4 sm:$0xff]  }
 0x266   :  { %4063 = vmatmul.mubr.bf16.gmra.mrb[28].mxu0 %v10693_v41  ;;  %4169 = vmatmul.mubr.bf16.gmra.mrb[28].mxu1 %v10693_v41  ;;  %v9593_v41 = vld [vmem:[#allocation8 + $0xac] ss:$16 sps:$4 sm:$0xff]  }
 0x267   :  { %7368 = vmatpush1.bf16.msra.mxu0 %v9570_v50  ;;  %7395 = vmatprep.mubr.bf16.mxu0 %v10663_v9  ;;  %v9630_v50 = vld [vmem:[#allocation8 + $0x180] ss:$16 sps:$4 sm:$0xff]  }
 0x268   :  { %7792 = vmatpush1.bf16.msra.mxu1 %v9573_v51  ;;  %7819 = vmatprep.mubr.bf16.mxu1 %v10663_v9  ;;  %v9594_v9 = vld [vmem:[#allocation8 + $0xc0] ss:$16 sps:$4 sm:$0xff]   ;;  %v9633_v51 = vld [vmem:[#allocation8 + $0x188] ss:$16 sps:$4 sm:$0xff]  }
 0x269   :  { %7369 = vmatprep.subr.bf16.mxu0 %v9578_v45  ;;  %7793 = vmatprep.subr.bf16.mxu1 %v9581_v22  ;;  %v9638_v45 = vld [vmem:[#allocation8 + $0x1a4] ss:$16 sps:$4 sm:$0xff]   ;;  %v9641_v22 = vld [vmem:[#allocation8 + $0x1ac] ss:$16 sps:$4 sm:$0xff]  }
 0x26b   :  { %7370 = vmatpush1.bf16.msra.mxu0 %v9576_v59  ;;  %v9636_v59 = vld [vmem:[#allocation8 + $0x1a0] ss:$16 sps:$4 sm:$0xff]  }
 0x26c   :  { %7794 = vmatpush1.bf16.msra.mxu1 %v9579_v60  ;;  %7371 = vmatprep.subr.bf16.mxu0 %v9584_v12  ;;  %v9639_v60 = vld [vmem:[#allocation8 + $0x1a8] ss:$16 sps:$4 sm:$0xff]   ;;  %v9644_v12 = vld [vmem:[#allocation8 + $0x1c4] ss:$16 sps:$4 sm:$0xff]  }
 0x26d   :  { %7795 = vmatprep.subr.bf16.mxu1 %v9587_v28  ;;  %v9647_v28 = vld [vmem:[#allocation8 + $0x1cc] ss:$16 sps:$4 sm:$0xff]  }
 0x26f   :  { %7372 = vmatpush1.bf16.msra.mxu0 %v9582_v47  ;;  %v9642_v47 = vld [vmem:[#allocation8 + $0x1c0] ss:$16 sps:$4 sm:$0xff]  }
 0x270   :  { %7796 = vmatpush1.bf16.msra.mxu1 %v9585_v56  ;;  %7373 = vmatprep.subr.bf16.mxu0 %v9590_v18  ;;  %v9645_v56 = vld [vmem:[#allocation8 + $0x1c8] ss:$16 sps:$4 sm:$0xff]   ;;  %v9650_v18 = vld [vmem:[#allocation8 + $0x1e4] ss:$16 sps:$4 sm:$0xff]  }
 0x271   :  { %7797 = vmatprep.subr.bf16.mxu1 %v9593_v41  ;;  %v9653_v41 = vld [vmem:[#allocation8 + $0x1ec] ss:$16 sps:$4 sm:$0xff]  }
 0x273   :  { %7374 = vmatpush1.bf16.msra.mxu0 %v9588_v62  ;;  %v9648_v62 = vld [vmem:[#allocation8 + $0x1e0] ss:$16 sps:$4 sm:$0xff]  }
 0x274   :  { %7798 = vmatpush1.bf16.msra.mxu1 %v9591_v0  ;;  %7375 = vmatprep.subr.bf16.mxu0 %v9596_v15  ;;  %v9651_v0 = vld [vmem:[#allocation8 + $0x1e8] ss:$16 sps:$4 sm:$0xff]   ;;  %v9656_v15 = vld [vmem:[#allocation8 + $0x204] ss:$16 sps:$4 sm:$0xff]  }
 0x275   :  { %7799 = vmatprep.subr.bf16.mxu1 %v9599_v2  ;;  %v9659_v2 = vld [vmem:[#allocation8 + $0x20c] ss:$16 sps:$4 sm:$0xff]  }
 0x277   :  { %7376 = vmatpush1.bf16.msra.mxu0 %v9594_v9  ;;  %v9654_v9 = vld [vmem:[#allocation8 + $0x200] ss:$16 sps:$4 sm:$0xff]  }
 0x278   :  { %7800 = vmatpush1.bf16.msra.mxu1 %v9597_v11  ;;  %7377 = vmatprep.subr.bf16.mxu0 %v9602_v19  ;;  %v9657_v11 = vld [vmem:[#allocation8 + $0x208] ss:$16 sps:$4 sm:$0xff]   ;;  %v9662_v19 = vld [vmem:[#allocation8 + $0x224] ss:$16 sps:$4 sm:$0xff]  }
 0x279   :  { %7801 = vmatprep.subr.bf16.mxu1 %v9605_v20  ;;  %v9665_v20 = vld [vmem:[#allocation8 + $0x22c] ss:$16 sps:$4 sm:$0xff]  }
 0x27b   :  { %7378 = vmatpush1.bf16.msra.mxu0 %v9600_v6  ;;  %v9660_v6 = vld [vmem:[#allocation8 + $0x220] ss:$16 sps:$4 sm:$0xff]  }
 0x27c   :  { %7802 = vmatpush1.bf16.msra.mxu1 %v9603_v24  ;;  %7379 = vmatprep.subr.bf16.mxu0 %v9608_v25  ;;  %v9663_v24 = vld [vmem:[#allocation8 + $0x228] ss:$16 sps:$4 sm:$0xff]   ;;  %v9668_v25 = vld [vmem:[#allocation8 + $0x244] ss:$16 sps:$4 sm:$0xff]  }
 0x27d   :  { %7803 = vmatprep.subr.bf16.mxu1 %v9611_v13  ;;  %v9671_v13 = vld [vmem:[#allocation8 + $0x24c] ss:$16 sps:$4 sm:$0xff]  }
 0x27f   :  { %7380 = vmatpush1.bf16.msra.mxu0 %v9606_v30  ;;  %v9666_v30 = vld [vmem:[#allocation8 + $0x240] ss:$16 sps:$4 sm:$0xff]  }
 0x280   :  { %7804 = vmatpush1.bf16.msra.mxu1 %v9609_v3  ;;  %7381 = vmatprep.subr.bf16.mxu0 %v9614_v32  ;;  %v9669_v3 = vld [vmem:[#allocation8 + $0x248] ss:$16 sps:$4 sm:$0xff]   ;;  %v9674_v32 = vld [vmem:[#allocation8 + $0x264] ss:$16 sps:$4 sm:$0xff]  }
 0x281   :  { %7805 = vmatprep.subr.bf16.mxu1 %v9617_v33  ;;  %v9675_v33 = vld [vmem:[#allocation8 + $0x268] ss:$16 sps:$4 sm:$0xff]  }
 0x283   :  { %7382 = vmatpush1.bf16.msra.mxu0 %v9612_v34  ;;  %v9680_v34 = vld [vmem:[#allocation8 + $0x284] ss:$16 sps:$4 sm:$0xff]  }
 0x284   :  { %7806 = vmatpush1.bf16.msra.mxu1 %v9615_v35  ;;  %7383 = vmatprep.subr.bf16.mxu0 %v9620_v36  ;;  %v9683_v35 = vld [vmem:[#allocation8 + $0x28c] ss:$16 sps:$4 sm:$0xff]  }
 0x285   :  { %7807 = vmatprep.subr.bf16.mxu1 %v9623_v37  ;;  %v10797_v36 = vld [vmem:[#allocation7 + $0x8] sm:$0xff]  ;;  %v9678_v37 = vld [vmem:[#allocation8 + $0x280] ss:$16 sps:$4 sm:$0xff]  }
 0x287   :  { %7384 = vmatpush1.bf16.msra.mxu0 %v9618_v38  ;;  %v9681_v38 = vld [vmem:[#allocation8 + $0x288] ss:$16 sps:$4 sm:$0xff]  }
 0x288   :  { %7808 = vmatpush1.bf16.msra.mxu1 %v9621_v39  ;;  %7385 = vmatprep.subr.bf16.mxu0 %v9626_v40  ;;  %v10801_v39 = vrot.slane %v10797_v36, %v10603_v63  ;;  %v10805_v40 = vrot.slane %v10797_v36, %v10609_v4 }
 0x289   :  { %7809 = vmatprep.subr.bf16.mxu1 %v9629_v42  ;;  %v10809_v42 = vrot.slane %v10797_v36, %v10612_v5 }
 0x28b   :  { %7386 = vmatpush1.bf16.msra.mxu0 %v9624_v43  ;;  %v10813_v43 = vrot.slane %v10797_v36, %v10615_v7 }
 0x28c   :  { %7810 = vmatpush1.bf16.msra.mxu1 %v9627_v44  ;;  %7387 = vmatprep.subr.bf16.mxu0 %v9632_v46  ;;  %v9684_v44 = vld [vmem:[#allocation8 + $0x2a0] ss:$16 sps:$4 sm:$0xff]  }
 0x28d   :  { %7811 = vmatprep.subr.bf16.mxu1 %v9635_v49  ;;  %v9687_v49 = vld [vmem:[#allocation8 + $0x2a8] ss:$16 sps:$4 sm:$0xff]  }
 0x28f   :  { %7388 = vmatpush1.bf16.msra.mxu0 %v9630_v50  ;;  %v9692_v50 = vld [vmem:[#allocation8 + $0x2c4] ss:$16 sps:$4 sm:$0xff]  }
 0x290   :  { %7812 = vmatpush1.bf16.msra.mxu1 %v9633_v51  ;;  %7389 = vmatprep.subr.bf16.mxu0 %v9638_v45 }
 0x291   :  { %7813 = vmatprep.subr.bf16.mxu1 %v9641_v22 }
 0x293   :  { %7390 = vmatpush1.bf16.msra.mxu0 %v9636_v59  ;;  %v9695_v59 = vld [vmem:[#allocation8 + $0x2cc] ss:$16 sps:$4 sm:$0xff]  }
 0x294   :  { %7814 = vmatpush1.bf16.msra.mxu1 %v9639_v60  ;;  %7391 = vmatprep.subr.bf16.mxu0 %v9644_v12 }
 0x295   :  { %7815 = vmatprep.subr.bf16.mxu1 %v9647_v28 }
 0x297   :  { %7392 = vmatpush1.bf16.msra.mxu0 %v9642_v47 }
 0x298   :  { %7816 = vmatpush1.bf16.msra.mxu1 %v9645_v56  ;;  %7393 = vmatprep.subr.bf16.mxu0 %v9650_v18 }
 0x299   :  { %7817 = vmatprep.subr.bf16.mxu1 %v9653_v41 }
 0x29b   :  { %7394 = vmatpush1.bf16.msra.mxu0 %v9648_v62 }
 0x29c   :  { %7818 = vmatpush1.bf16.msra.mxu1 %v9651_v0  ;;  %7416 = vmatprep.subr.bf16.mxu0 %v9656_v15  ;;  %v9690_v0 = vld [vmem:[#allocation8 + $0x2c0] ss:$16 sps:$4 sm:$0xff]  }
 0x29d   :  { %7840 = vmatprep.subr.bf16.mxu1 %v9659_v2 }
 0x29e   :  { %7396 = vmatmul.mubr.bf16.vlgmr.msra.gmra.mrb[32].mxu0 %v10657_v1 }
 0x29f   :  { %7820 = vmatmul.mubr.bf16.vlgmr.msra.gmra.mrb[32].mxu1 %v10657_v1  ;;  %7405 = vmatprep.mubr.bf16.mxu0 %v10681_v58  ;;  %v9677_v1 = vld [vmem:[#allocation8 + $0x26c] ss:$16 sps:$4 sm:$0xff]  }
 0x2a0   :  { %7417 = vmatpush1.bf16.msra.mxu0 %v9654_v9  ;;  %7829 = vmatprep.mubr.bf16.mxu1 %v10681_v58  ;;  %v9672_v58 = vld [vmem:[#allocation8 + $0x260] ss:$16 sps:$4 sm:$0xff]  }
 0x2a1   :  { %7841 = vmatpush1.bf16.msra.mxu1 %v9657_v11  ;;  %7418 = vmatprep.subr.bf16.mxu0 %v9662_v19  ;;  %v9693_v11 = vld [vmem:[#allocation8 + $0x2c8] ss:$16 sps:$4 sm:$0xff]   ;;  %v9698_v19 = vld [vmem:[#allocation8 + $0x2e4] ss:$16 sps:$4 sm:$0xff]  }
 0x2a2   :  { %7842 = vmatprep.subr.bf16.mxu1 %v9665_v20 }
 0x2a4   :  { %7419 = vmatpush1.bf16.msra.mxu0 %v9660_v6 }
 0x2a5   :  { %7843 = vmatpush1.bf16.msra.mxu1 %v9663_v24  ;;  %7420 = vmatprep.subr.bf16.mxu0 %v9668_v25  ;;  %v9701_v25 = vld [vmem:[#allocation8 + $0x2ec] ss:$16 sps:$4 sm:$0xff]  }
 0x2a6   :  { %7406 = vmatmul.mubr.bf16.gmra.mrb[36].mxu0 %v10677_v16  ;;  %7844 = vmatprep.subr.bf16.mxu1 %v9671_v13 }
 0x2a7   :  { %7830 = vmatmul.mubr.bf16.gmra.mrb[36].mxu1 %v10677_v16  ;;  %7448 = vmatprep.mubr.bf16.mxu0 %v10665_v17  ;;  %v9686_v16 = vld [vmem:[#allocation8 + $0x2a4] ss:$16 sps:$4 sm:$0xff]  }
 0x2a8   :  { %7421 = vmatpush1.bf16.msra.mxu0 %v9666_v30  ;;  %7872 = vmatprep.mubr.bf16.mxu1 %v10665_v17  ;;  %v9689_v17 = vld [vmem:[#allocation8 + $0x2ac] ss:$16 sps:$4 sm:$0xff]  }
 0x2a9   :  { %7845 = vmatpush1.bf16.msra.mxu1 %v9669_v3  ;;  %7422 = vmatprep.subr.bf16.mxu0 %v9674_v32 }
 0x2aa   :  { %7846 = vmatprep.subr.bf16.mxu1 %v9677_v1 }
 0x2ac   :  { %7423 = vmatpush1.bf16.msra.mxu0 %v9672_v58 }
 0x2ad   :  { %7847 = vmatpush1.bf16.msra.mxu1 %v9675_v33  ;;  %7424 = vmatprep.subr.bf16.mxu0 %v9680_v34  ;;  %v9696_v34 = vld [vmem:[#allocation8 + $0x2e0] ss:$16 sps:$4 sm:$0xff]  }
 0x2ae   :  { %7848 = vmatprep.subr.bf16.mxu1 %v9683_v35 }
 0x2b0   :  { %7425 = vmatpush1.bf16.msra.mxu0 %v9678_v37 }
 0x2b1   :  { %7849 = vmatpush1.bf16.msra.mxu1 %v9681_v38  ;;  %v3842_v46 = vpop.f32.mrb[16].mxu0  ;;  %7426 = vmatprep.subr.bf16.mxu0 %v9686_v16  ;;  %v3948_v45 = vpop.f32.mrb[16].mxu1  ;;  %v9699_v16 = vld [vmem:[#allocation8 + $0x2e8] ss:$16 sps:$4 sm:$0xff]  }
 0x2b2   :  { %v9326_v51 = vadd.f32 %v3842_v46, %v10801_v39  ;;  %v3844_v22 = vpop.f32.mrb[17].mxu0  ;;  %7850 = vmatprep.subr.bf16.mxu1 %v9689_v17  ;;  %v9334_v60 = vadd.f32 %v3948_v45, %v10805_v40  ;;  %v3950_v28 = vpop.f32.mrb[17].mxu1  ;;  %v9704_v17 = vld [vmem:[#allocation8 + $0x304] ss:$16 sps:$4 sm:$0xff]  }
 0x2b3   :  { %v9327_v12 = vadd.f32 %v3844_v22, %v10809_v42  ;;  %v3846_v47 = vpop.f32.mrb[18].mxu0  ;;  %v9335_v56 = vadd.f32 %v3950_v28, %v10813_v43  ;;  %v3952_v41 = vpop.f32.mrb[18].mxu1 }
 0x2b4   :  { %v9328_v18 = vadd.f32 %v3846_v47, %v10801_v39  ;;  %7427 = vmatpush1.bf16.msra.mxu0 %v9684_v44  ;;  %v3848_v62 = vpop.f32.mrb[19].mxu0  ;;  %v9336_v15 = vadd.f32 %v3952_v41, %v10805_v40  ;;  %v3954_v9 = vpop.f32.mrb[19].mxu1  ;;  %v4187_v20 = vmax.f32 %v9326_v51, 0.0  ;;  %v4189_v13 = vmax.f32 %v9334_v60, 0.0  ;;  %v9707_v51 = vld [vmem:[#allocation8 + $0x30c] ss:$16 sps:$4 sm:$0xff]  }
 0x2b5   :  { %7851 = vmatpush1.bf16.msra.mxu1 %v9687_v49  ;;  %v9329_v2 = vadd.f32 %v3848_v62, %v10809_v42  ;;  %7428 = vmatprep.subr.bf16.mxu0 %v9692_v50  ;;  %v9337_v24 = vadd.f32 %v3954_v9, %v10813_v43  ;;  %v4188_v30 = vmax.f32 %v9327_v12, 0.0  ;;  %v4190_v1 = vmax.f32 %v9335_v56, 0.0 }
 0x2b6   :  { %v4203_v6 = vmax.f32 %v9328_v18, 0.0  ;;  %7852 = vmatprep.subr.bf16.mxu1 %v9695_v59  ;;  %v4205_v3 = vmax.f32 %v9336_v15, 0.0  ;;  %v9702_v18 = vld [vmem:[#allocation8 + $0x300] ss:$16 sps:$4 sm:$0xff]   ;;  %v9705_v15 = vld [vmem:[#allocation8 + $0x308] ss:$16 sps:$4 sm:$0xff]  }
 0x2b7   :  { %v4204_v32 = vmax.f32 %v9329_v2, 0.0  ;;  %v4206_v33 = vmax.f32 %v9337_v24, 0.0  ;;  %v9710_v2 = vld [vmem:[#allocation8 + $0x324] ss:$16 sps:$4 sm:$0xff]  }
 0x2b8   :  { %v10823_v58 = vpack.c.bf16 %v4203_v6, %v4187_v20  ;;  %7429 = vmatpush1.bf16.msra.mxu0 %v9690_v0  ;;  %v10825_v35 = vpack.c.bf16 %v4205_v3, %v4189_v13  ;;  %v9713_v20 = vld [vmem:[#allocation8 + $0x32c] ss:$16 sps:$4 sm:$0xff]  }
 0x2b9   :  { %v10827_v37 = vpack.c.bf16 %v4204_v32, %v4188_v30  ;;  %7853 = vmatpush1.bf16.msra.mxu1 %v9693_v11  ;;  %v3852_v38 = vpop.f32.mrb[20].mxu0  ;;  %7430 = vmatprep.subr.bf16.mxu0 %v9698_v19  ;;  %v10829_v44 = vpack.c.bf16 %v4206_v33, %v4190_v1  ;;  %v3958_v49 = vpop.f32.mrb[20].mxu1  ;;  %v9711_v1 = vld [vmem:[#allocation8 + $0x328] ss:$16 sps:$4 sm:$0xff]  }
 0x2ba   :  { %v9330_v46 = vadd.f32 %v3852_v38, %v10801_v39  ;;  %v3854_v50 = vpop.f32.mrb[21].mxu0  ;;  %7854 = vmatprep.subr.bf16.mxu1 %v9701_v25  ;;  %v9338_v45 = vadd.f32 %v3958_v49, %v10805_v40  ;;  %v3960_v59 = vpop.f32.mrb[21].mxu1  ;;  %v9714_v38 = vld [vmem:[#allocation8 + $0x340] ss:$16 sps:$4 sm:$0xff]  }
 0x2bb   :  { %v9331_v22 = vadd.f32 %v3854_v50, %v10809_v42  ;;  %v3856_v60 = vpop.f32.mrb[22].mxu0  ;;  %v9339_v12 = vadd.f32 %v3960_v59, %v10813_v43  ;;  %v3962_v47 = vpop.f32.mrb[22].mxu1  ;;  %v9720_v49 = vld [vmem:[#allocation8 + $0x360] ss:$16 sps:$4 sm:$0xff]   ;;  %v9723_v50 = vld [vmem:[#allocation8 + $0x368] ss:$16 sps:$4 sm:$0xff]  }
 0x2bc   :  { %v9332_v28 = vadd.f32 %v3856_v60, %v10801_v39  ;;  %7431 = vmatpush1.bf16.msra.mxu0 %v9696_v34  ;;  %v3858_v56 = vpop.f32.mrb[23].mxu0  ;;  %v9340_v41 = vadd.f32 %v3962_v47, %v10805_v40  ;;  %v3964_v0 = vpop.f32.mrb[23].mxu1  ;;  %v4219_v9 = vmax.f32 %v9330_v46, 0.0  ;;  %v4221_v39 = vmax.f32 %v9338_v45, 0.0  ;;  %v9719_v34 = vld [vmem:[#allocation8 + $0x34c] ss:$16 sps:$4 sm:$0xff]  }
 0x2bd   :  { %7855 = vmatpush1.bf16.msra.mxu1 %v9699_v16  ;;  %v9333_v62 = vadd.f32 %v3858_v56, %v10809_v42  ;;  %7432 = vmatprep.subr.bf16.mxu0 %v9704_v17  ;;  %v9341_v19 = vadd.f32 %v3964_v0, %v10813_v43  ;;  %v4220_v6 = vmax.f32 %v9331_v22, 0.0  ;;  %v4222_v13 = vmax.f32 %v9339_v12, 0.0  ;;  %v9708_v42 = vld [vmem:[#allocation8 + $0x320] ss:$16 sps:$4 sm:$0xff]   ;;  %v9716_v43 = vld [vmem:[#allocation8 + $0x344] ss:$16 sps:$4 sm:$0xff]  }
 0x2be   :  { %v4235_v11 = vmax.f32 %v9332_v28, 0.0  ;;  %7856 = vmatprep.subr.bf16.mxu1 %v9707_v51  ;;  %v4237_v24 = vmax.f32 %v9340_v41, 0.0  ;;  %v9717_v16 = vld [vmem:[#allocation8 + $0x348] ss:$16 sps:$4 sm:$0xff]   ;;  %v9722_v17 = vld [vmem:[#allocation8 + $0x364] ss:$16 sps:$4 sm:$0xff]  }
 0x2bf   :  { %v4236_v25 = vmax.f32 %v9333_v62, 0.0  ;;  %v4238_v40 = vmax.f32 %v9341_v19, 0.0  ;;  %v9725_v46 = vld [vmem:[#allocation8 + $0x36c] ss:$16 sps:$4 sm:$0xff]   ;;  %v9728_v51 = vld [vmem:[#allocation8 + $0x384] ss:$16 sps:$4 sm:$0xff]  }
 0x2c0   :  { %v10839_v30 = vpack.c.bf16 %v4235_v11, %v4219_v9  ;;  %7433 = vmatpush1.bf16.msra.mxu0 %v9702_v18  ;;  %v10841_v3 = vpack.c.bf16 %v4237_v24, %v4221_v39  ;;  %v9731_v45 = vld [vmem:[#allocation8 + $0x38c] ss:$16 sps:$4 sm:$0xff]   ;;  %v9726_v22 = vld [vmem:[#allocation8 + $0x380] ss:$16 sps:$4 sm:$0xff]   ;;  %v9729_v59 = vld [vmem:[#allocation8 + $0x388] ss:$16 sps:$4 sm:$0xff]  }
 0x2c1   :  { %v10843_v32 = vpack.c.bf16 %v4236_v25, %v4220_v6  ;;  %7857 = vmatpush1.bf16.msra.mxu1 %v9705_v15  ;;  %7434 = vmatprep.subr.bf16.mxu0 %v9710_v2  ;;  %v10845_v33 = vpack.c.bf16 %v4238_v40, %v4222_v13  ;;  %v9734_v60 = vld [vmem:[#allocation8 + $0x3a4] ss:$16 sps:$4 sm:$0xff]   ;;  %v9737_v12 = vld [vmem:[#allocation8 + $0x3ac] ss:$16 sps:$4 sm:$0xff]   ;;  %v9732_v28 = vld [vmem:[#allocation8 + $0x3a0] ss:$16 sps:$4 sm:$0xff]  }
 0x2c2   :  { %7858 = vmatprep.subr.bf16.mxu1 %v9713_v20  ;;  %v9735_v47 = vld [vmem:[#allocation8 + $0x3a8] ss:$16 sps:$4 sm:$0xff]   ;;  %v9740_v56 = vld [vmem:[#allocation8 + $0x3c4] ss:$16 sps:$4 sm:$0xff]   ;;  %v9743_v18 = vld [vmem:[#allocation8 + $0x3cc] ss:$16 sps:$4 sm:$0xff]  }
 0x2c3   :  { %v9738_v41 = vld [vmem:[#allocation8 + $0x3c0] ss:$16 sps:$4 sm:$0xff]   ;;  %v9741_v62 = vld [vmem:[#allocation8 + $0x3c8] ss:$16 sps:$4 sm:$0xff]   ;;  %v9746_v0 = vld [vmem:[#allocation8 + $0x3e4] ss:$16 sps:$4 sm:$0xff]  }
 0x2c4   :  { %7435 = vmatpush1.bf16.msra.mxu0 %v9708_v42  ;;  %v9749_v15 = vld [vmem:[#allocation8 + $0x3ec] ss:$16 sps:$4 sm:$0xff]   ;;  %v9744_v2 = vld [vmem:[#allocation8 + $0x3e0] ss:$16 sps:$4 sm:$0xff]   ;;  %v9747_v9 = vld [vmem:[#allocation8 + $0x3e8] ss:$16 sps:$4 sm:$0xff]  }
 0x2c5   :  { %7859 = vmatpush1.bf16.msra.mxu1 %v9711_v1  ;;  %7436 = vmatprep.subr.bf16.mxu0 %v9716_v43  ;;  %v9752_v11 = vld [vmem:[#allocation8 + $0x404] ss:$16 sps:$4 sm:$0xff]   ;;  %v9755_v19 = vld [vmem:[#allocation8 + $0x40c] ss:$16 sps:$4 sm:$0xff]   ;;  %v9750_v20 = vld [vmem:[#allocation8 + $0x400] ss:$16 sps:$4 sm:$0xff]  }
 0x2c6   :  { %7860 = vmatprep.subr.bf16.mxu1 %v9719_v34  ;;  %v9753_v39 = vld [vmem:[#allocation8 + $0x408] ss:$16 sps:$4 sm:$0xff]   ;;  %v9758_v6 = vld [vmem:[#allocation8 + $0x424] ss:$16 sps:$4 sm:$0xff]   ;;  %v9761_v24 = vld [vmem:[#allocation8 + $0x42c] ss:$16 sps:$4 sm:$0xff]  }
 0x2c7   :  { %v9756_v25 = vld [vmem:[#allocation8 + $0x420] ss:$16 sps:$4 sm:$0xff]   ;;  %v9759_v13 = vld [vmem:[#allocation8 + $0x428] ss:$16 sps:$4 sm:$0xff]   ;;  %v9764_v40 = vld [vmem:[#allocation8 + $0x444] ss:$16 sps:$4 sm:$0xff]  }
 0x2c8   :  { %7437 = vmatpush1.bf16.msra.mxu0 %v9714_v38  ;;  %v9767_v42 = vld [vmem:[#allocation8 + $0x44c] ss:$16 sps:$4 sm:$0xff]   ;;  %v9762_v1 = vld [vmem:[#allocation8 + $0x440] ss:$16 sps:$4 sm:$0xff]   ;;  %v9765_v43 = vld [vmem:[#allocation8 + $0x448] ss:$16 sps:$4 sm:$0xff]  }
 0x2c9   :  { %7861 = vmatpush1.bf16.msra.mxu1 %v9717_v16  ;;  %7438 = vmatprep.subr.bf16.mxu0 %v9722_v17  ;;  %v9770_v34 = vld [vmem:[#allocation8 + $0x464] ss:$16 sps:$4 sm:$0xff]   ;;  %v9771_v38 = vld [vmem:[#allocation8 + $0x468] ss:$16 sps:$4 sm:$0xff]   ;;  %v9779_v17 = vld [vmem:[#allocation8 + $0x48c] ss:$16 sps:$4 sm:$0xff]  }
 0x2ca   :  { %7862 = vmatprep.subr.bf16.mxu1 %v9725_v46  ;;  %v9776_v16 = vld [vmem:[#allocation8 + $0x484] ss:$16 sps:$4 sm:$0xff]   ;;  %v9774_v46 = vld [vmem:[#allocation8 + $0x480] ss:$16 sps:$4 sm:$0xff]  }
 0x2cc   :  { %7439 = vmatpush1.bf16.msra.mxu0 %v9720_v49  ;;  %v9777_v49 = vld [vmem:[#allocation8 + $0x488] ss:$16 sps:$4 sm:$0xff]  }
 0x2cd   :  { %7863 = vmatpush1.bf16.msra.mxu1 %v9723_v50  ;;  %7440 = vmatprep.subr.bf16.mxu0 %v9728_v51  ;;  %v9782_v50 = vld [vmem:[#allocation8 + $0x4a4] ss:$16 sps:$4 sm:$0xff]   ;;  %v9780_v51 = vld [vmem:[#allocation8 + $0x4a0] ss:$16 sps:$4 sm:$0xff]  }
 0x2ce   :  { %7864 = vmatprep.subr.bf16.mxu1 %v9731_v45  ;;  %v9788_v45 = vld [vmem:[#allocation8 + $0x4c4] ss:$16 sps:$4 sm:$0xff]  }
 0x2d0   :  { %7441 = vmatpush1.bf16.msra.mxu0 %v9726_v22  ;;  %v9791_v22 = vld [vmem:[#allocation8 + $0x4cc] ss:$16 sps:$4 sm:$0xff]  }
 0x2d1   :  { %7865 = vmatpush1.bf16.msra.mxu1 %v9729_v59  ;;  %7442 = vmatprep.subr.bf16.mxu0 %v9734_v60  ;;  %v9786_v59 = vld [vmem:[#allocation8 + $0x4c0] ss:$16 sps:$4 sm:$0xff]   ;;  %v9789_v60 = vld [vmem:[#allocation8 + $0x4c8] ss:$16 sps:$4 sm:$0xff]  }
 0x2d2   :  { %7866 = vmatprep.subr.bf16.mxu1 %v9737_v12  ;;  %v9794_v12 = vld [vmem:[#allocation8 + $0x4e4] ss:$16 sps:$4 sm:$0xff]  }
 0x2d4   :  { %7443 = vmatpush1.bf16.msra.mxu0 %v9732_v28  ;;  %v9797_v28 = vld [vmem:[#allocation8 + $0x4ec] ss:$16 sps:$4 sm:$0xff]  }
 0x2d5   :  { %7867 = vmatpush1.bf16.msra.mxu1 %v9735_v47  ;;  %7444 = vmatprep.subr.bf16.mxu0 %v9740_v56  ;;  %v9792_v47 = vld [vmem:[#allocation8 + $0x4e0] ss:$16 sps:$4 sm:$0xff]   ;;  %v9795_v56 = vld [vmem:[#allocation8 + $0x4e8] ss:$16 sps:$4 sm:$0xff]  }
 0x2d6   :  { %7868 = vmatprep.subr.bf16.mxu1 %v9743_v18  ;;  %v9800_v18 = vld [vmem:[#allocation8 + $0x504] ss:$16 sps:$4 sm:$0xff]  }
 0x2d8   :  { %7445 = vmatpush1.bf16.msra.mxu0 %v9738_v41  ;;  %v9803_v41 = vld [vmem:[#allocation8 + $0x50c] ss:$16 sps:$4 sm:$0xff]  }
 0x2d9   :  { %7869 = vmatpush1.bf16.msra.mxu1 %v9741_v62  ;;  %7446 = vmatprep.subr.bf16.mxu0 %v9746_v0  ;;  %v9798_v62 = vld [vmem:[#allocation8 + $0x500] ss:$16 sps:$4 sm:$0xff]   ;;  %v9801_v0 = vld [vmem:[#allocation8 + $0x508] ss:$16 sps:$4 sm:$0xff]  }
 0x2da   :  { %7870 = vmatprep.subr.bf16.mxu1 %v9749_v15  ;;  %v9806_v15 = vld [vmem:[#allocation8 + $0x524] ss:$16 sps:$4 sm:$0xff]  }
 0x2dc   :  { %7447 = vmatpush1.bf16.msra.mxu0 %v9744_v2  ;;  %v9809_v2 = vld [vmem:[#allocation8 + $0x52c] ss:$16 sps:$4 sm:$0xff]  }
 0x2dd   :  { %7871 = vmatpush1.bf16.msra.mxu1 %v9747_v9  ;;  %7469 = vmatprep.subr.bf16.mxu0 %v9752_v11  ;;  %v9804_v9 = vld [vmem:[#allocation8 + $0x520] ss:$16 sps:$4 sm:$0xff]   ;;  %v9807_v11 = vld [vmem:[#allocation8 + $0x528] ss:$16 sps:$4 sm:$0xff]  }
 0x2de   :  { %7893 = vmatprep.subr.bf16.mxu1 %v9755_v19  ;;  %v9812_v19 = vld [vmem:[#allocation8 + $0x544] ss:$16 sps:$4 sm:$0xff]  }
 0x2df   :  { %7449 = vmatmul.mubr.bf16.vlgmr.msra.gmra.mrb[32].mxu0 %v10661_v8 }
 0x2e0   :  { %7873 = vmatmul.mubr.bf16.vlgmr.msra.gmra.mrb[32].mxu1 %v10661_v8  ;;  %7458 = vmatprep.mubr.bf16.mxu0 %v10683_v61  ;;  %v9773_v8 = vld [vmem:[#allocation8 + $0x46c] ss:$16 sps:$4 sm:$0xff]  }
 0x2e1   :  { %7470 = vmatpush1.bf16.msra.mxu0 %v9750_v20  ;;  %7882 = vmatprep.mubr.bf16.mxu1 %v10683_v61  ;;  %v9768_v61 = vld [vmem:[#allocation8 + $0x460] ss:$16 sps:$4 sm:$0xff]   ;;  %v9815_v20 = vld [vmem:[#allocation8 + $0x54c] ss:$16 sps:$4 sm:$0xff]  }
 0x2e2   :  { %7894 = vmatpush1.bf16.msra.mxu1 %v9753_v39  ;;  %7471 = vmatprep.subr.bf16.mxu0 %v9758_v6  ;;  %v9810_v39 = vld [vmem:[#allocation8 + $0x540] ss:$16 sps:$4 sm:$0xff]   ;;  %v9813_v6 = vld [vmem:[#allocation8 + $0x548] ss:$16 sps:$4 sm:$0xff]  }
 0x2e3   :  { %7895 = vmatprep.subr.bf16.mxu1 %v9761_v24  ;;  %v9818_v24 = vld [vmem:[#allocation8 + $0x564] ss:$16 sps:$4 sm:$0xff]  }
 0x2e5   :  { %7472 = vmatpush1.bf16.msra.mxu0 %v9756_v25  ;;  %v9821_v25 = vld [vmem:[#allocation8 + $0x56c] ss:$16 sps:$4 sm:$0xff]  }
 0x2e6   :  { %7896 = vmatpush1.bf16.msra.mxu1 %v9759_v13  ;;  %7473 = vmatprep.subr.bf16.mxu0 %v9764_v40  ;;  %v9816_v13 = vld [vmem:[#allocation8 + $0x560] ss:$16 sps:$4 sm:$0xff]   ;;  %v9819_v40 = vld [vmem:[#allocation8 + $0x568] ss:$16 sps:$4 sm:$0xff]  }
 0x2e7   :  { %7459 = vmatmul.mubr.bf16.gmra.mrb[36].mxu0 %v10679_v57  ;;  %7897 = vmatprep.subr.bf16.mxu1 %v9767_v42  ;;  %v9824_v42 = vld [vmem:[#allocation8 + $0x584] ss:$16 sps:$4 sm:$0xff]  }
 0x2e8   :  { %7883 = vmatmul.mubr.bf16.gmra.mrb[36].mxu1 %v10679_v57  ;;  %7501 = vmatprep.mubr.bf16.mxu0 %v10759_v23  ;;  %v9785_v57 = vld [vmem:[#allocation8 + $0x4ac] ss:$16 sps:$4 sm:$0xff]  }
 0x2e9   :  { %7474 = vmatpush1.bf16.msra.mxu0 %v9762_v1  ;;  %7925 = vmatprep.mubr.bf16.mxu1 %v10759_v23  ;;  %v9783_v23 = vld [vmem:[#allocation8 + $0x4a8] ss:$16 sps:$4 sm:$0xff]   ;;  %v9827_v1 = vld [vmem:[#allocation8 + $0x58c] ss:$16 sps:$4 sm:$0xff]  }
 0x2ea   :  { %7898 = vmatpush1.bf16.msra.mxu1 %v9765_v43  ;;  %7475 = vmatprep.subr.bf16.mxu0 %v9770_v34  ;;  %v9822_v43 = vld [vmem:[#allocation8 + $0x580] ss:$16 sps:$4 sm:$0xff]   ;;  %v9825_v34 = vld [vmem:[#allocation8 + $0x588] ss:$16 sps:$4 sm:$0xff]  }
 0x2eb   :  { %7899 = vmatprep.subr.bf16.mxu1 %v9773_v8  ;;  %v9830_v8 = vld [vmem:[#allocation8 + $0x5a4] ss:$16 sps:$4 sm:$0xff]  }
 0x2ed   :  { %7476 = vmatpush1.bf16.msra.mxu0 %v9768_v61  ;;  %v9833_v61 = vld [vmem:[#allocation8 + $0x5ac] ss:$16 sps:$4 sm:$0xff]  }
 0x2ee   :  { %7900 = vmatpush1.bf16.msra.mxu1 %v9771_v38  ;;  %7477 = vmatprep.subr.bf16.mxu0 %v9776_v16  ;;  %v9828_v38 = vld [vmem:[#allocation8 + $0x5a0] ss:$16 sps:$4 sm:$0xff]   ;;  %v9831_v16 = vld [vmem:[#allocation8 + $0x5a8] ss:$16 sps:$4 sm:$0xff]  }
 0x2ef   :  { %7901 = vmatprep.subr.bf16.mxu1 %v9779_v17  ;;  %v9836_v17 = vld [vmem:[#allocation8 + $0x5c4] ss:$16 sps:$4 sm:$0xff]  }
 0x2f1   :  { %7478 = vmatpush1.bf16.msra.mxu0 %v9774_v46  ;;  %v9839_v46 = vld [vmem:[#allocation8 + $0x5cc] ss:$16 sps:$4 sm:$0xff]  }
 0x2f2   :  { %7902 = vmatpush1.bf16.msra.mxu1 %v9777_v49  ;;  %7479 = vmatprep.subr.bf16.mxu0 %v9782_v50  ;;  %v9834_v49 = vld [vmem:[#allocation8 + $0x5c0] ss:$16 sps:$4 sm:$0xff]   ;;  %v9837_v50 = vld [vmem:[#allocation8 + $0x5c8] ss:$16 sps:$4 sm:$0xff]  }
 0x2f3   :  { %7903 = vmatprep.subr.bf16.mxu1 %v9785_v57  ;;  %v9842_v57 = vld [vmem:[#allocation8 + $0x5e4] ss:$16 sps:$4 sm:$0xff]  }
 0x2f5   :  { %7480 = vmatpush1.bf16.msra.mxu0 %v9780_v51  ;;  %v9845_v51 = vld [vmem:[#allocation8 + $0x5ec] ss:$16 sps:$4 sm:$0xff]  }
 0x2f6   :  { %7904 = vmatpush1.bf16.msra.mxu1 %v9783_v23  ;;  %7481 = vmatprep.subr.bf16.mxu0 %v9788_v45  ;;  %v9840_v23 = vld [vmem:[#allocation8 + $0x5e0] ss:$16 sps:$4 sm:$0xff]   ;;  %v9843_v45 = vld [vmem:[#allocation8 + $0x5e8] ss:$16 sps:$4 sm:$0xff]  }
 0x2f7   :  { %7905 = vmatprep.subr.bf16.mxu1 %v9791_v22  ;;  %v9848_v22 = vld [vmem:[#allocation8 + $0x604] ss:$16 sps:$4 sm:$0xff]  }
 0x2f9   :  { %7482 = vmatpush1.bf16.msra.mxu0 %v9786_v59  ;;  %v9851_v59 = vld [vmem:[#allocation8 + $0x60c] ss:$16 sps:$4 sm:$0xff]  }
 0x2fa   :  { %7906 = vmatpush1.bf16.msra.mxu1 %v9789_v60  ;;  %7483 = vmatprep.subr.bf16.mxu0 %v9794_v12  ;;  %v9846_v60 = vld [vmem:[#allocation8 + $0x600] ss:$16 sps:$4 sm:$0xff]   ;;  %v9849_v12 = vld [vmem:[#allocation8 + $0x608] ss:$16 sps:$4 sm:$0xff]  }
 0x2fb   :  { %7907 = vmatprep.subr.bf16.mxu1 %v9797_v28  ;;  %v9854_v28 = vld [vmem:[#allocation8 + $0x624] ss:$16 sps:$4 sm:$0xff]  }
 0x2fd   :  { %7484 = vmatpush1.bf16.msra.mxu0 %v9792_v47  ;;  %v9857_v47 = vld [vmem:[#allocation8 + $0x62c] ss:$16 sps:$4 sm:$0xff]  }
 0x2fe   :  { %7908 = vmatpush1.bf16.msra.mxu1 %v9795_v56  ;;  %7485 = vmatprep.subr.bf16.mxu0 %v9800_v18  ;;  %v9852_v56 = vld [vmem:[#allocation8 + $0x620] ss:$16 sps:$4 sm:$0xff]   ;;  %v9855_v18 = vld [vmem:[#allocation8 + $0x628] ss:$16 sps:$4 sm:$0xff]  }
 0x2ff   :  { %7909 = vmatprep.subr.bf16.mxu1 %v9803_v41  ;;  %v9860_v41 = vld [vmem:[#allocation8 + $0x644] ss:$16 sps:$4 sm:$0xff]  }
 0x301   :  { %7486 = vmatpush1.bf16.msra.mxu0 %v9798_v62  ;;  %v9863_v62 = vld [vmem:[#allocation8 + $0x64c] ss:$16 sps:$4 sm:$0xff]  }
 0x302   :  { %7910 = vmatpush1.bf16.msra.mxu1 %v9801_v0  ;;  %7487 = vmatprep.subr.bf16.mxu0 %v9806_v15  ;;  %v9858_v0 = vld [vmem:[#allocation8 + $0x640] ss:$16 sps:$4 sm:$0xff]   ;;  %v9861_v15 = vld [vmem:[#allocation8 + $0x648] ss:$16 sps:$4 sm:$0xff]  }
 0x303   :  { %7911 = vmatprep.subr.bf16.mxu1 %v9809_v2  ;;  %v9866_v2 = vld [vmem:[#allocation8 + $0x664] ss:$16 sps:$4 sm:$0xff]  }
 0x305   :  { %7488 = vmatpush1.bf16.msra.mxu0 %v9804_v9  ;;  %v9867_v9 = vld [vmem:[#allocation8 + $0x668] ss:$16 sps:$4 sm:$0xff]  }
 0x306   :  { %7912 = vmatpush1.bf16.msra.mxu1 %v9807_v11  ;;  %7489 = vmatprep.subr.bf16.mxu0 %v9812_v19  ;;  %v9872_v11 = vld [vmem:[#allocation8 + $0x684] ss:$16 sps:$4 sm:$0xff]   ;;  %v9875_v19 = vld [vmem:[#allocation8 + $0x68c] ss:$16 sps:$4 sm:$0xff]  }
 0x307   :  { %7913 = vmatprep.subr.bf16.mxu1 %v9815_v20  ;;  %v9870_v20 = vld [vmem:[#allocation8 + $0x680] ss:$16 sps:$4 sm:$0xff]  }
 0x309   :  { %7490 = vmatpush1.bf16.msra.mxu0 %v9810_v39  ;;  %v10866_v39 = vrot.slane %v10797_v36, %v669_v48  ;;  %v10881_v48 = vrot.slane %v10797_v36, %v681_v53 }
 0x30a   :  { %7914 = vmatpush1.bf16.msra.mxu1 %v9813_v6  ;;  %7491 = vmatprep.subr.bf16.mxu0 %v9818_v24  ;;  %v10876_v6 = vrot.slane %v10797_v36, %v673_v52  ;;  %v9878_v24 = vld [vmem:[#allocation8 + $0x6a4] ss:$16 sps:$4 sm:$0xff]  }
 0x30b   :  { %7915 = vmatprep.subr.bf16.mxu1 %v9821_v25  ;;  %v9881_v25 = vld [vmem:[#allocation8 + $0x6ac] ss:$16 sps:$4 sm:$0xff]  }
 0x30d   :  { %7492 = vmatpush1.bf16.msra.mxu0 %v9816_v13 }
 0x30e   :  { %7916 = vmatpush1.bf16.msra.mxu1 %v9819_v40  ;;  %7493 = vmatprep.subr.bf16.mxu0 %v9824_v42 }
 0x30f   :  { %7917 = vmatprep.subr.bf16.mxu1 %v9827_v1  ;;  %v9876_v1 = vld [vmem:[#allocation8 + $0x6a0] ss:$16 sps:$4 sm:$0xff]  }
 0x311   :  { %7494 = vmatpush1.bf16.msra.mxu0 %v9822_v43 }
 0x312   :  { %7918 = vmatpush1.bf16.msra.mxu1 %v9825_v34  ;;  %7495 = vmatprep.subr.bf16.mxu0 %v9830_v8  ;;  %v9879_v8 = vld [vmem:[#allocation8 + $0x6a8] ss:$16 sps:$4 sm:$0xff]  }
 0x313   :  { %7919 = vmatprep.subr.bf16.mxu1 %v9833_v61  ;;  %v9884_v61 = vld [vmem:[#allocation8 + $0x6c4] ss:$16 sps:$4 sm:$0xff]  }
 0x315   :  { %7496 = vmatpush1.bf16.msra.mxu0 %v9828_v38 }
 0x316   :  { %7920 = vmatpush1.bf16.msra.mxu1 %v9831_v16  ;;  %7497 = vmatprep.subr.bf16.mxu0 %v9836_v17  ;;  %v9887_v17 = vld [vmem:[#allocation8 + $0x6cc] ss:$16 sps:$4 sm:$0xff]  }
 0x317   :  { %7921 = vmatprep.subr.bf16.mxu1 %v9839_v46 }
 0x319   :  { %7498 = vmatpush1.bf16.msra.mxu0 %v9834_v49 }
 0x31a   :  { %7922 = vmatpush1.bf16.msra.mxu1 %v9837_v50  ;;  %7499 = vmatprep.subr.bf16.mxu0 %v9842_v57 }
 0x31b   :  { %7923 = vmatprep.subr.bf16.mxu1 %v9845_v51 }
 0x31d   :  { %7500 = vmatpush1.bf16.msra.mxu0 %v9840_v23 }
 0x31e   :  { %7924 = vmatpush1.bf16.msra.mxu1 %v9843_v45  ;;  %7522 = vmatprep.subr.bf16.mxu0 %v9848_v22  ;;  %v9882_v45 = vld [vmem:[#allocation8 + $0x6c0] ss:$16 sps:$4 sm:$0xff]   ;;  %v9885_v22 = vld [vmem:[#allocation8 + $0x6c8] ss:$16 sps:$4 sm:$0xff]  }
 0x31f   :  { %7946 = vmatprep.subr.bf16.mxu1 %v9851_v59 }
 0x320   :  { %7502 = vmatmul.mubr.bf16.vlgmr.msra.gmra.mrb[32].mxu0 %v10753_v14 }
 0x321   :  { %7926 = vmatmul.mubr.bf16.vlgmr.msra.gmra.mrb[32].mxu1 %v10753_v14  ;;  %7511 = vmatprep.mubr.bf16.mxu0 %v10777_v27  ;;  %v9869_v14 = vld [vmem:[#allocation8 + $0x66c] ss:$16 sps:$4 sm:$0xff]  }
 0x322   :  { %7523 = vmatpush1.bf16.msra.mxu0 %v9846_v60  ;;  %7935 = vmatprep.mubr.bf16.mxu1 %v10777_v27  ;;  %v9864_v27 = vld [vmem:[#allocation8 + $0x660] ss:$16 sps:$4 sm:$0xff]  }
 0x323   :  { %7947 = vmatpush1.bf16.msra.mxu1 %v9849_v12  ;;  %7524 = vmatprep.subr.bf16.mxu0 %v9854_v28 }
 0x324   :  { %7948 = vmatprep.subr.bf16.mxu1 %v9857_v47  ;;  %v9890_v47 = vld [vmem:[#allocation8 + $0x6e4] ss:$16 sps:$4 sm:$0xff]  }
 0x326   :  { %7525 = vmatpush1.bf16.msra.mxu0 %v9852_v56 }
 0x327   :  { %7949 = vmatpush1.bf16.msra.mxu1 %v9855_v18  ;;  %7526 = vmatprep.subr.bf16.mxu0 %v9860_v41 }
 0x328   :  { %7512 = vmatmul.mubr.bf16.gmra.mrb[36].mxu0 %v10773_v10  ;;  %7950 = vmatprep.subr.bf16.mxu1 %v9863_v62  ;;  %v9893_v62 = vld [vmem:[#allocation8 + $0x6ec] ss:$16 sps:$4 sm:$0xff]  }
 0x329   :  { %7936 = vmatmul.mubr.bf16.gmra.mrb[36].mxu1 %v10773_v10  ;;  %7554 = vmatprep.mubr.bf16.mxu0 %v10761_v29  ;;  %v9873_v10 = vld [vmem:[#allocation8 + $0x688] ss:$16 sps:$4 sm:$0xff]  }
 0x32a   :  { %7527 = vmatpush1.bf16.msra.mxu0 %v9858_v0  ;;  %7978 = vmatprep.mubr.bf16.mxu1 %v10761_v29  ;;  %v10871_v29 = vrot.slane %v10797_v36, %v677_v55 }
 0x32b   :  { %7951 = vmatpush1.bf16.msra.mxu1 %v9861_v15  ;;  %7528 = vmatprep.subr.bf16.mxu0 %v9866_v2 }
 0x32c   :  { %7952 = vmatprep.subr.bf16.mxu1 %v9869_v14 }
 0x32e   :  { %7529 = vmatpush1.bf16.msra.mxu0 %v9864_v27 }
 0x32f   :  { %7953 = vmatpush1.bf16.msra.mxu1 %v9867_v9  ;;  %7530 = vmatprep.subr.bf16.mxu0 %v9872_v11 }
 0x330   :  { %7954 = vmatprep.subr.bf16.mxu1 %v9875_v19  ;;  %v9888_v19 = vld [vmem:[#allocation8 + $0x6e0] ss:$16 sps:$4 sm:$0xff]  }
 0x331   :  { %v4054_v13 = vpop.f32.mrb[24].mxu0  ;;  %v4160_v42 = vpop.f32.mrb[24].mxu1 }
 0x332   :  { %7531 = vmatpush1.bf16.msra.mxu0 %v9870_v20  ;;  %v9342_v40 = vadd.f32 %v4054_v13, %v10866_v39  ;;  %v4056_v55 = vpop.f32.mrb[25].mxu0  ;;  %v9350_v43 = vadd.f32 %v4160_v42, %v10871_v29  ;;  %v4162_v34 = vpop.f32.mrb[25].mxu1 }
 0x333   :  { %7955 = vmatpush1.bf16.msra.mxu1 %v9873_v10  ;;  %v9343_v52 = vadd.f32 %v4056_v55, %v10876_v6  ;;  %7532 = vmatprep.subr.bf16.mxu0 %v9878_v24  ;;  %v4058_v54 = vpop.f32.mrb[26].mxu0  ;;  %v9351_v53 = vadd.f32 %v4162_v34, %v10881_v48  ;;  %v4164_v38 = vpop.f32.mrb[26].mxu1 }
 0x334   :  { %7956 = vmatprep.subr.bf16.mxu1 %v9881_v25  ;;  %v9344_v36 = vadd.f32 %v4058_v54, %v10866_v39  ;;  %v4060_v16 = vpop.f32.mrb[27].mxu0  ;;  %v9352_v46 = vadd.f32 %v4164_v38, %v10871_v29  ;;  %v4166_v50 = vpop.f32.mrb[27].mxu1  ;;  %v4191_v57 = vmax.f32 %v9342_v40, 0.0  ;;  %v4193_v59 = vmax.f32 %v9350_v43, 0.0  ;;  %v9891_v25 = vld [vmem:[#allocation8 + $0x6e8] ss:$16 sps:$4 sm:$0xff]  }
 0x335   :  { %v9345_v49 = vadd.f32 %v4060_v16, %v10876_v6  ;;  %v9353_v23 = vadd.f32 %v4166_v50, %v10881_v48  ;;  %v4192_v60 = vmax.f32 %v9343_v52, 0.0  ;;  %v4194_v56 = vmax.f32 %v9351_v53, 0.0  ;;  %v9896_v40 = vld [vmem:[#allocation8 + $0x704] ss:$16 sps:$4 sm:$0xff]   ;;  %v9899_v52 = vld [vmem:[#allocation8 + $0x70c] ss:$16 sps:$4 sm:$0xff]  }
 0x336   :  { %v4207_v51 = vmax.f32 %v9344_v36, 0.0  ;;  %7533 = vmatpush1.bf16.msra.mxu0 %v9876_v1  ;;  %v4209_v12 = vmax.f32 %v9352_v46, 0.0  ;;  %v9894_v38 = vld [vmem:[#allocation8 + $0x700] ss:$16 sps:$4 sm:$0xff]   ;;  %v9897_v16 = vld [vmem:[#allocation8 + $0x708] ss:$16 sps:$4 sm:$0xff]  }
 0x337   :  { %7957 = vmatpush1.bf16.msra.mxu1 %v9879_v8  ;;  %v4208_v28 = vmax.f32 %v9345_v49, 0.0  ;;  %7534 = vmatprep.subr.bf16.mxu0 %v9884_v61  ;;  %v4210_v41 = vmax.f32 %v9353_v23, 0.0  ;;  %v9902_v50 = vld [vmem:[#allocation8 + $0x724] ss:$16 sps:$4 sm:$0xff]  }
 0x338   :  { %v10891_v18 = vpack.c.bf16 %v4207_v51, %v4191_v57  ;;  %7958 = vmatprep.subr.bf16.mxu1 %v9887_v17  ;;  %v10893_v0 = vpack.c.bf16 %v4209_v12, %v4193_v59  ;;  %v9903_v59 = vld [vmem:[#allocation8 + $0x728] ss:$16 sps:$4 sm:$0xff]   ;;  %v9911_v12 = vld [vmem:[#allocation8 + $0x74c] ss:$16 sps:$4 sm:$0xff]  }
 0x339   :  { %v10895_v15 = vpack.c.bf16 %v4208_v28, %v4192_v60  ;;  %v4064_v2 = vpop.f32.mrb[28].mxu0  ;;  %v10897_v14 = vpack.c.bf16 %v4210_v41, %v4194_v56  ;;  %v4170_v9 = vpop.f32.mrb[28].mxu1  ;;  %v9908_v60 = vld [vmem:[#allocation8 + $0x744] ss:$16 sps:$4 sm:$0xff]   ;;  %v9906_v28 = vld [vmem:[#allocation8 + $0x740] ss:$16 sps:$4 sm:$0xff]  }
 0x33a   :  { %7535 = vmatpush1.bf16.msra.mxu0 %v9882_v45  ;;  %v9346_v27 = vadd.f32 %v4064_v2, %v10866_v39  ;;  %v4066_v11 = vpop.f32.mrb[29].mxu0  ;;  %v9354_v20 = vadd.f32 %v4170_v9, %v10871_v29  ;;  %v4172_v24 = vpop.f32.mrb[29].mxu1  ;;  %v9914_v56 = vld [vmem:[#allocation8 + $0x764] ss:$16 sps:$4 sm:$0xff]   ;;  %v9917_v41 = vld [vmem:[#allocation8 + $0x76c] ss:$16 sps:$4 sm:$0xff]  }
 0x33b   :  { %7959 = vmatpush1.bf16.msra.mxu1 %v9885_v22  ;;  %v9347_v10 = vadd.f32 %v4066_v11, %v10876_v6  ;;  %7536 = vmatprep.subr.bf16.mxu0 %v9890_v47  ;;  %v4068_v13 = vpop.f32.mrb[30].mxu0  ;;  %v9355_v42 = vadd.f32 %v4172_v24, %v10881_v48  ;;  %v4174_v1 = vpop.f32.mrb[30].mxu1  ;;  %v9900_v22 = vld [vmem:[#allocation8 + $0x720] ss:$16 sps:$4 sm:$0xff]   ;;  %v9909_v47 = vld [vmem:[#allocation8 + $0x748] ss:$16 sps:$4 sm:$0xff]  }
 0x33c   :  { %7960 = vmatprep.subr.bf16.mxu1 %v9893_v62  ;;  %v9348_v55 = vadd.f32 %v4068_v13, %v10866_v39  ;;  %v4070_v43 = vpop.f32.mrb[31].mxu0  ;;  %v9356_v34 = vadd.f32 %v4174_v1, %v10871_v29  ;;  %v4176_v54 = vpop.f32.mrb[31].mxu1  ;;  %v4223_v61 = vmax.f32 %v9346_v27, 0.0  ;;  %v4225_v17 = vmax.f32 %v9354_v20, 0.0  ;;  %v9912_v62 = vld [vmem:[#allocation8 + $0x760] ss:$16 sps:$4 sm:$0xff]  }
 0x33d   :  { %v9349_v8 = vadd.f32 %v4070_v43, %v10876_v6  ;;  %v9357_v36 = vadd.f32 %v4176_v54, %v10881_v48  ;;  %v4224_v46 = vmax.f32 %v9347_v10, 0.0  ;;  %v4226_v57 = vmax.f32 %v9355_v42, 0.0  ;;  %v9905_v6 = vld [vmem:[#allocation8 + $0x72c] ss:$16 sps:$4 sm:$0xff]   ;;  %v9915_v2 = vld [vmem:[#allocation8 + $0x768] ss:$16 sps:$4 sm:$0xff]  }
 0x33e   :  { %v4239_v53 = vmax.f32 %v9348_v55, 0.0  ;;  %7537 = vmatpush1.bf16.msra.mxu0 %v9888_v19  ;;  %v4241_v49 = vmax.f32 %v9356_v34, 0.0  ;;  %v9920_v27 = vld [vmem:[#allocation8 + $0x784] ss:$16 sps:$4 sm:$0xff]   ;;  %v9923_v9 = vld [vmem:[#allocation8 + $0x78c] ss:$16 sps:$4 sm:$0xff]  }
 0x33f   :  { %7961 = vmatpush1.bf16.msra.mxu1 %v9891_v25  ;;  %v4240_v39 = vmax.f32 %v9349_v8, 0.0  ;;  %7538 = vmatprep.subr.bf16.mxu0 %v9896_v40  ;;  %v4242_v29 = vmax.f32 %v9357_v36, 0.0  ;;  %v9918_v11 = vld [vmem:[#allocation8 + $0x780] ss:$16 sps:$4 sm:$0xff]   ;;  %v9921_v19 = vld [vmem:[#allocation8 + $0x788] ss:$16 sps:$4 sm:$0xff]  }
 0x340   :  { %v10907_v51 = vpack.c.bf16 %v4239_v53, %v4223_v61  ;;  %7962 = vmatprep.subr.bf16.mxu1 %v9899_v52  ;;  %v10909_v23 = vpack.c.bf16 %v4241_v49, %v4225_v17  ;;  %v9926_v20 = vld [vmem:[#allocation8 + $0x7a4] ss:$16 sps:$4 sm:$0xff]   ;;  %v9929_v10 = vld [vmem:[#allocation8 + $0x7ac] ss:$16 sps:$4 sm:$0xff]   ;;  %v9924_v24 = vld [vmem:[#allocation8 + $0x7a0] ss:$16 sps:$4 sm:$0xff]  }
 0x341   :  { %v10911_v45 = vpack.c.bf16 %v4240_v39, %v4224_v46  ;;  %v10913_v48 = vpack.c.bf16 %v4242_v29, %v4226_v57  ;;  %v9927_v25 = vld [vmem:[#allocation8 + $0x7a8] ss:$16 sps:$4 sm:$0xff]   ;;  %v9932_v13 = vld [vmem:[#allocation8 + $0x7c4] ss:$16 sps:$4 sm:$0xff]   ;;  %v9935_v40 = vld [vmem:[#allocation8 + $0x7cc] ss:$16 sps:$4 sm:$0xff]  }
 0x342   :  { %7539 = vmatpush1.bf16.msra.mxu0 %v9894_v38  ;;  %v9930_v42 = vld [vmem:[#allocation8 + $0x7c0] ss:$16 sps:$4 sm:$0xff]   ;;  %v9933_v55 = vld [vmem:[#allocation8 + $0x7c8] ss:$16 sps:$4 sm:$0xff]   ;;  %v9938_v1 = vld [vmem:[#allocation8 + $0x7e4] ss:$16 sps:$4 sm:$0xff]  }
 0x343   :  { %7963 = vmatpush1.bf16.msra.mxu1 %v9897_v16  ;;  %7540 = vmatprep.subr.bf16.mxu0 %v9902_v50  ;;  %v9941_v43 = vld [vmem:[#allocation8 + $0x7ec] ss:$16 sps:$4 sm:$0xff]   ;;  %v9936_v52 = vld [vmem:[#allocation8 + $0x7e0] ss:$16 sps:$4 sm:$0xff]   ;;  %v9939_v34 = vld [vmem:[#allocation8 + $0x7e8] ss:$16 sps:$4 sm:$0xff]  }
 0x344   :  { %7964 = vmatprep.subr.bf16.mxu1 %v9905_v6  ;;  %v9944_v8 = vld [vmem:[#allocation8 + $0x804] ss:$16 sps:$4 sm:$0xff]   ;;  %v9947_v54 = vld [vmem:[#allocation8 + $0x80c] ss:$16 sps:$4 sm:$0xff]   ;;  %v9942_v61 = vld [vmem:[#allocation8 + $0x800] ss:$16 sps:$4 sm:$0xff]  }
 0x345   :  { %v9945_v53 = vld [vmem:[#allocation8 + $0x808] ss:$16 sps:$4 sm:$0xff]   ;;  %v9950_v36 = vld [vmem:[#allocation8 + $0x824] ss:$16 sps:$4 sm:$0xff]   ;;  %v9953_v38 = vld [vmem:[#allocation8 + $0x82c] ss:$16 sps:$4 sm:$0xff]  }
 0x346   :  { %7541 = vmatpush1.bf16.msra.mxu0 %v9900_v22  ;;  %v9948_v16 = vld [vmem:[#allocation8 + $0x820] ss:$16 sps:$4 sm:$0xff]   ;;  %v9951_v17 = vld [vmem:[#allocation8 + $0x828] ss:$16 sps:$4 sm:$0xff]   ;;  %v9956_v46 = vld [vmem:[#allocation8 + $0x844] ss:$16 sps:$4 sm:$0xff]  }
 0x347   :  { %7965 = vmatpush1.bf16.msra.mxu1 %v9903_v59  ;;  %7542 = vmatprep.subr.bf16.mxu0 %v9908_v60  ;;  %v9959_v49 = vld [vmem:[#allocation8 + $0x84c] ss:$16 sps:$4 sm:$0xff]   ;;  %v9954_v39 = vld [vmem:[#allocation8 + $0x840] ss:$16 sps:$4 sm:$0xff]   ;;  %v9957_v50 = vld [vmem:[#allocation8 + $0x848] ss:$16 sps:$4 sm:$0xff]  }
 0x348   :  { %7966 = vmatprep.subr.bf16.mxu1 %v9911_v12  ;;  %v9962_v57 = vld [vmem:[#allocation8 + $0x864] ss:$16 sps:$4 sm:$0xff]   ;;  %v9963_v29 = vld [vmem:[#allocation8 + $0x868] ss:$16 sps:$4 sm:$0xff]   ;;  %v9971_v22 = vld [vmem:[#allocation8 + $0x88c] ss:$16 sps:$4 sm:$0xff]  }
 0x349   :  { %v9968_v6 = vld [vmem:[#allocation8 + $0x884] ss:$16 sps:$4 sm:$0xff]   ;;  %v9966_v59 = vld [vmem:[#allocation8 + $0x880] ss:$16 sps:$4 sm:$0xff]   ;;  %v9969_v60 = vld [vmem:[#allocation8 + $0x888] ss:$16 sps:$4 sm:$0xff]  }
 0x34a   :  { %7543 = vmatpush1.bf16.msra.mxu0 %v9906_v28  ;;  %v9974_v12 = vld [vmem:[#allocation8 + $0x8a4] ss:$16 sps:$4 sm:$0xff]   ;;  %v9972_v28 = vld [vmem:[#allocation8 + $0x8a0] ss:$16 sps:$4 sm:$0xff]  }
 0x34b   :  { %7967 = vmatpush1.bf16.msra.mxu1 %v9909_v47  ;;  %7544 = vmatprep.subr.bf16.mxu0 %v9914_v56  ;;  %v9980_v47 = vld [vmem:[#allocation8 + $0x8c4] ss:$16 sps:$4 sm:$0xff]   ;;  %v9983_v56 = vld [vmem:[#allocation8 + $0x8cc] ss:$16 sps:$4 sm:$0xff]  }
 0x34c   :  { %7968 = vmatprep.subr.bf16.mxu1 %v9917_v41  ;;  %v9978_v41 = vld [vmem:[#allocation8 + $0x8c0] ss:$16 sps:$4 sm:$0xff]  }
 0x34e   :  { %7545 = vmatpush1.bf16.msra.mxu0 %v9912_v62  ;;  %v9981_v62 = vld [vmem:[#allocation8 + $0x8c8] ss:$16 sps:$4 sm:$0xff]  }
 0x34f   :  { %7969 = vmatpush1.bf16.msra.mxu1 %v9915_v2  ;;  %7546 = vmatprep.subr.bf16.mxu0 %v9920_v27  ;;  %v9986_v2 = vld [vmem:[#allocation8 + $0x8e4] ss:$16 sps:$4 sm:$0xff]   ;;  %v9989_v27 = vld [vmem:[#allocation8 + $0x8ec] ss:$16 sps:$4 sm:$0xff]  }
 0x350   :  { %7970 = vmatprep.subr.bf16.mxu1 %v9923_v9  ;;  %v9984_v9 = vld [vmem:[#allocation8 + $0x8e0] ss:$16 sps:$4 sm:$0xff]  }
 0x352   :  { %7547 = vmatpush1.bf16.msra.mxu0 %v9918_v11  ;;  %v9987_v11 = vld [vmem:[#allocation8 + $0x8e8] ss:$16 sps:$4 sm:$0xff]  }
 0x353   :  { %7971 = vmatpush1.bf16.msra.mxu1 %v9921_v19  ;;  %7548 = vmatprep.subr.bf16.mxu0 %v9926_v20  ;;  %v9992_v19 = vld [vmem:[#allocation8 + $0x904] ss:$16 sps:$4 sm:$0xff]   ;;  %v9995_v20 = vld [vmem:[#allocation8 + $0x90c] ss:$16 sps:$4 sm:$0xff]  }
 0x354   :  { %7972 = vmatprep.subr.bf16.mxu1 %v9929_v10  ;;  %v9990_v10 = vld [vmem:[#allocation8 + $0x900] ss:$16 sps:$4 sm:$0xff]  }
 0x356   :  { %7549 = vmatpush1.bf16.msra.mxu0 %v9924_v24  ;;  %v9993_v24 = vld [vmem:[#allocation8 + $0x908] ss:$16 sps:$4 sm:$0xff]  }
 0x357   :  { %7973 = vmatpush1.bf16.msra.mxu1 %v9927_v25  ;;  %7550 = vmatprep.subr.bf16.mxu0 %v9932_v13  ;;  %v9998_v25 = vld [vmem:[#allocation8 + $0x924] ss:$16 sps:$4 sm:$0xff]   ;;  %v10001_v13 = vld [vmem:[#allocation8 + $0x92c] ss:$16 sps:$4 sm:$0xff]  }
 0x358   :  { %7974 = vmatprep.subr.bf16.mxu1 %v9935_v40  ;;  %v9996_v40 = vld [vmem:[#allocation8 + $0x920] ss:$16 sps:$4 sm:$0xff]  }
 0x35a   :  { %7551 = vmatpush1.bf16.msra.mxu0 %v9930_v42  ;;  %v9999_v42 = vld [vmem:[#allocation8 + $0x928] ss:$16 sps:$4 sm:$0xff]  }
 0x35b   :  { %7975 = vmatpush1.bf16.msra.mxu1 %v9933_v55  ;;  %7552 = vmatprep.subr.bf16.mxu0 %v9938_v1  ;;  %v10004_v55 = vld [vmem:[#allocation8 + $0x944] ss:$16 sps:$4 sm:$0xff]   ;;  %v10007_v1 = vld [vmem:[#allocation8 + $0x94c] ss:$16 sps:$4 sm:$0xff]  }
 0x35c   :  { %7976 = vmatprep.subr.bf16.mxu1 %v9941_v43  ;;  %v10002_v43 = vld [vmem:[#allocation8 + $0x940] ss:$16 sps:$4 sm:$0xff]  }
 0x35e   :  { %7553 = vmatpush1.bf16.msra.mxu0 %v9936_v52  ;;  %v10005_v52 = vld [vmem:[#allocation8 + $0x948] ss:$16 sps:$4 sm:$0xff]  }
 0x35f   :  { %7977 = vmatpush1.bf16.msra.mxu1 %v9939_v34  ;;  %7575 = vmatprep.subr.bf16.mxu0 %v9944_v8  ;;  %v10010_v34 = vld [vmem:[#allocation8 + $0x964] ss:$16 sps:$4 sm:$0xff]   ;;  %v10013_v8 = vld [vmem:[#allocation8 + $0x96c] ss:$16 sps:$4 sm:$0xff]  }
 0x360   :  { %7999 = vmatprep.subr.bf16.mxu1 %v9947_v54  ;;  %v10008_v54 = vld [vmem:[#allocation8 + $0x960] ss:$16 sps:$4 sm:$0xff]  }
 0x361   :  { %7555 = vmatmul.mubr.bf16.vlgmr.msra.gmra.mrb[32].mxu0 %v10757_v21 }
 0x362   :  { %7979 = vmatmul.mubr.bf16.vlgmr.msra.gmra.mrb[32].mxu1 %v10757_v21  ;;  %7564 = vmatprep.mubr.bf16.mxu0 %v10779_v31  ;;  %v9965_v21 = vld [vmem:[#allocation8 + $0x86c] ss:$16 sps:$4 sm:$0xff]  }
 0x363   :  { %7576 = vmatpush1.bf16.msra.mxu0 %v9942_v61  ;;  %7988 = vmatprep.mubr.bf16.mxu1 %v10779_v31  ;;  %v9960_v31 = vld [vmem:[#allocation8 + $0x860] ss:$16 sps:$4 sm:$0xff]   ;;  %v10011_v61 = vld [vmem:[#allocation8 + $0x968] ss:$16 sps:$4 sm:$0xff]  }
 0x364   :  { %8000 = vmatpush1.bf16.msra.mxu1 %v9945_v53  ;;  %7577 = vmatprep.subr.bf16.mxu0 %v9950_v36  ;;  %v10016_v53 = vld [vmem:[#allocation8 + $0x984] ss:$16 sps:$4 sm:$0xff]   ;;  %v10019_v36 = vld [vmem:[#allocation8 + $0x98c] ss:$16 sps:$4 sm:$0xff]  }
 0x365   :  { %8001 = vmatprep.subr.bf16.mxu1 %v9953_v38  ;;  %v10014_v38 = vld [vmem:[#allocation8 + $0x980] ss:$16 sps:$4 sm:$0xff]  }
 0x367   :  { %7578 = vmatpush1.bf16.msra.mxu0 %v9948_v16  ;;  %v10017_v16 = vld [vmem:[#allocation8 + $0x988] ss:$16 sps:$4 sm:$0xff]  }
 0x368   :  { %8002 = vmatpush1.bf16.msra.mxu1 %v9951_v17  ;;  %7579 = vmatprep.subr.bf16.mxu0 %v9956_v46  ;;  %v10022_v17 = vld [vmem:[#allocation8 + $0x9a4] ss:$16 sps:$4 sm:$0xff]   ;;  %v10025_v46 = vld [vmem:[#allocation8 + $0x9ac] ss:$16 sps:$4 sm:$0xff]  }
 0x369   :  { %7565 = vmatmul.mubr.bf16.gmra.mrb[36].mxu0 %v10775_v26  ;;  %8003 = vmatprep.subr.bf16.mxu1 %v9959_v49  ;;  %v10020_v49 = vld [vmem:[#allocation8 + $0x9a0] ss:$16 sps:$4 sm:$0xff]  }
 0x36a   :  { %7989 = vmatmul.mubr.bf16.gmra.mrb[36].mxu1 %v10775_v26  ;;  %7607 = vmatprep.mubr.bf16.mxu0 %v10827_v37  ;;  %v9977_v26 = vld [vmem:[#allocation8 + $0x8ac] ss:$16 sps:$4 sm:$0xff]  }
 0x36b   :  { %7580 = vmatpush1.bf16.msra.mxu0 %v9954_v39  ;;  %8031 = vmatprep.mubr.bf16.mxu1 %v10827_v37  ;;  %v9975_v37 = vld [vmem:[#allocation8 + $0x8a8] ss:$16 sps:$4 sm:$0xff]  }
 0x36c   :  { %8004 = vmatpush1.bf16.msra.mxu1 %v9957_v50  ;;  %7581 = vmatprep.subr.bf16.mxu0 %v9962_v57  ;;  %v10023_v39 = vld [vmem:[#allocation8 + $0x9a8] ss:$16 sps:$4 sm:$0xff]   ;;  %v10028_v50 = vld [vmem:[#allocation8 + $0x9c4] ss:$16 sps:$4 sm:$0xff]   ;;  %v10031_v57 = vld [vmem:[#allocation8 + $0x9cc] ss:$16 sps:$4 sm:$0xff]  }
 0x36d   :  { %8005 = vmatprep.subr.bf16.mxu1 %v9965_v21  ;;  %v10026_v21 = vld [vmem:[#allocation8 + $0x9c0] ss:$16 sps:$4 sm:$0xff]  }
 0x36f   :  { %7582 = vmatpush1.bf16.msra.mxu0 %v9960_v31  ;;  %v10029_v31 = vld [vmem:[#allocation8 + $0x9c8] ss:$16 sps:$4 sm:$0xff]  }
 0x370   :  { %8006 = vmatpush1.bf16.msra.mxu1 %v9963_v29  ;;  %7583 = vmatprep.subr.bf16.mxu0 %v9968_v6  ;;  %v10034_v29 = vld [vmem:[#allocation8 + $0x9e4] ss:$16 sps:$4 sm:$0xff]   ;;  %v10037_v6 = vld [vmem:[#allocation8 + $0x9ec] ss:$16 sps:$4 sm:$0xff]  }
 0x371   :  { %8007 = vmatprep.subr.bf16.mxu1 %v9971_v22  ;;  %v10032_v22 = vld [vmem:[#allocation8 + $0x9e0] ss:$16 sps:$4 sm:$0xff]  }
 0x373   :  { %7584 = vmatpush1.bf16.msra.mxu0 %v9966_v59  ;;  %v10035_v59 = vld [vmem:[#allocation8 + $0x9e8] ss:$16 sps:$4 sm:$0xff]  }
 0x374   :  { %8008 = vmatpush1.bf16.msra.mxu1 %v9969_v60  ;;  %7585 = vmatprep.subr.bf16.mxu0 %v9974_v12  ;;  %v10040_v60 = vld [vmem:[#allocation8 + $0xa04] ss:$16 sps:$4 sm:$0xff]   ;;  %v10043_v12 = vld [vmem:[#allocation8 + $0xa0c] ss:$16 sps:$4 sm:$0xff]  }
 0x375   :  { %8009 = vmatprep.subr.bf16.mxu1 %v9977_v26  ;;  %v10038_v26 = vld [vmem:[#allocation8 + $0xa00] ss:$16 sps:$4 sm:$0xff]  }
 0x377   :  { %7586 = vmatpush1.bf16.msra.mxu0 %v9972_v28  ;;  %v10041_v28 = vld [vmem:[#allocation8 + $0xa08] ss:$16 sps:$4 sm:$0xff]  }
 0x378   :  { %8010 = vmatpush1.bf16.msra.mxu1 %v9975_v37  ;;  %7587 = vmatprep.subr.bf16.mxu0 %v9980_v47  ;;  %v10046_v37 = vld [vmem:[#allocation8 + $0xa24] ss:$16 sps:$4 sm:$0xff]   ;;  %v10049_v47 = vld [vmem:[#allocation8 + $0xa2c] ss:$16 sps:$4 sm:$0xff]  }
 0x379   :  { %8011 = vmatprep.subr.bf16.mxu1 %v9983_v56  ;;  %v10044_v56 = vld [vmem:[#allocation8 + $0xa20] ss:$16 sps:$4 sm:$0xff]  }
 0x37b   :  { %7588 = vmatpush1.bf16.msra.mxu0 %v9978_v41  ;;  %v10047_v41 = vld [vmem:[#allocation8 + $0xa28] ss:$16 sps:$4 sm:$0xff]  }
 0x37c   :  { %8012 = vmatpush1.bf16.msra.mxu1 %v9981_v62  ;;  %7589 = vmatprep.subr.bf16.mxu0 %v9986_v2  ;;  %v10052_v62 = vld [vmem:[#allocation8 + $0xa44] ss:$16 sps:$4 sm:$0xff]   ;;  %v10055_v2 = vld [vmem:[#allocation8 + $0xa4c] ss:$16 sps:$4 sm:$0xff]  }
 0x37d   :  { %8013 = vmatprep.subr.bf16.mxu1 %v9989_v27  ;;  %v10050_v27 = vld [vmem:[#allocation8 + $0xa40] ss:$16 sps:$4 sm:$0xff]  }
 0x37f   :  { %7590 = vmatpush1.bf16.msra.mxu0 %v9984_v9  ;;  %v10053_v9 = vld [vmem:[#allocation8 + $0xa48] ss:$16 sps:$4 sm:$0xff]  }
 0x380   :  { %8014 = vmatpush1.bf16.msra.mxu1 %v9987_v11  ;;  %7591 = vmatprep.subr.bf16.mxu0 %v9992_v19  ;;  %v10058_v11 = vld [vmem:[#allocation8 + $0xa64] ss:$16 sps:$4 sm:$0xff]   ;;  %v10059_v19 = vld [vmem:[#allocation8 + $0xa68] ss:$16 sps:$4 sm:$0xff]  }
 0x381   :  { %8015 = vmatprep.subr.bf16.mxu1 %v9995_v20  ;;  %v10064_v20 = vld [vmem:[#allocation8 + $0xa84] ss:$16 sps:$4 sm:$0xff]  }
 0x383   :  { %7592 = vmatpush1.bf16.msra.mxu0 %v9990_v10  ;;  %v10067_v10 = vld [vmem:[#allocation8 + $0xa8c] ss:$16 sps:$4 sm:$0xff]  }
 0x384   :  { %8016 = vmatpush1.bf16.msra.mxu1 %v9993_v24  ;;  %7593 = vmatprep.subr.bf16.mxu0 %v9998_v25  ;;  %v10062_v24 = vld [vmem:[#allocation8 + $0xa80] ss:$16 sps:$4 sm:$0xff]   ;;  %v10065_v25 = vld [vmem:[#allocation8 + $0xa88] ss:$16 sps:$4 sm:$0xff]  }
 0x385   :  { %8017 = vmatprep.subr.bf16.mxu1 %v10001_v13  ;;  %v10070_v13 = vld [vmem:[#allocation8 + $0xaa4] ss:$16 sps:$4 sm:$0xff]  }
 0x387   :  { %7594 = vmatpush1.bf16.msra.mxu0 %v9996_v40  ;;  %v10068_v40 = vld [vmem:[#allocation8 + $0xaa0] ss:$16 sps:$4 sm:$0xff]  }
 0x388   :  { %8018 = vmatpush1.bf16.msra.mxu1 %v9999_v42  ;;  %7595 = vmatprep.subr.bf16.mxu0 %v10004_v55  ;;  %v10076_v42 = vld [vmem:[#allocation8 + $0xac4] ss:$16 sps:$4 sm:$0xff]   ;;  %v10079_v55 = vld [vmem:[#allocation8 + $0xacc] ss:$16 sps:$4 sm:$0xff]  }
 0x389   :  { %8019 = vmatprep.subr.bf16.mxu1 %v10007_v1  ;;  %v10074_v1 = vld [vmem:[#allocation8 + $0xac0] ss:$16 sps:$4 sm:$0xff]  }
 0x38b   :  { %7596 = vmatpush1.bf16.msra.mxu0 %v10002_v43  ;;  %v10077_v43 = vld [vmem:[#allocation8 + $0xac8] ss:$16 sps:$4 sm:$0xff]  }
 0x38c   :  { %8020 = vmatpush1.bf16.msra.mxu1 %v10005_v52  ;;  %7597 = vmatprep.subr.bf16.mxu0 %v10010_v34  ;;  %v10082_v52 = vld [vmem:[#allocation8 + $0xae4] ss:$16 sps:$4 sm:$0xff]   ;;  %v10085_v34 = vld [vmem:[#allocation8 + $0xaec] ss:$16 sps:$4 sm:$0xff]  }
 0x38d   :  { %8021 = vmatprep.subr.bf16.mxu1 %v10013_v8  ;;  %v10080_v8 = vld [vmem:[#allocation8 + $0xae0] ss:$16 sps:$4 sm:$0xff]  }
 0x38f   :  { %7598 = vmatpush1.bf16.msra.mxu0 %v10008_v54  ;;  %v10083_v54 = vld [vmem:[#allocation8 + $0xae8] ss:$16 sps:$4 sm:$0xff]  }
 0x390   :  { %8022 = vmatpush1.bf16.msra.mxu1 %v10011_v61  ;;  %7599 = vmatprep.subr.bf16.mxu0 %v10016_v53  ;;  %v10088_v61 = vld [vmem:[#allocation8 + $0xb04] ss:$16 sps:$4 sm:$0xff]   ;;  %v10091_v53 = vld [vmem:[#allocation8 + $0xb0c] ss:$16 sps:$4 sm:$0xff]  }
 0x391   :  { %8023 = vmatprep.subr.bf16.mxu1 %v10019_v36  ;;  %v10086_v36 = vld [vmem:[#allocation8 + $0xb00] ss:$16 sps:$4 sm:$0xff]  }
 0x393   :  { %7600 = vmatpush1.bf16.msra.mxu0 %v10014_v38  ;;  %v10089_v38 = vld [vmem:[#allocation8 + $0xb08] ss:$16 sps:$4 sm:$0xff]  }
 0x394   :  { %8024 = vmatpush1.bf16.msra.mxu1 %v10017_v16  ;;  %7601 = vmatprep.subr.bf16.mxu0 %v10022_v17  ;;  %v10094_v16 = vld [vmem:[#allocation8 + $0xb24] ss:$16 sps:$4 sm:$0xff]   ;;  %v10097_v17 = vld [vmem:[#allocation8 + $0xb2c] ss:$16 sps:$4 sm:$0xff]  }
 0x395   :  { %8025 = vmatprep.subr.bf16.mxu1 %v10025_v46  ;;  %v10092_v46 = vld [vmem:[#allocation8 + $0xb20] ss:$16 sps:$4 sm:$0xff]  }
 0x397   :  { %7602 = vmatpush1.bf16.msra.mxu0 %v10020_v49  ;;  %v10095_v49 = vld [vmem:[#allocation8 + $0xb28] ss:$16 sps:$4 sm:$0xff]  }
 0x398   :  { %8026 = vmatpush1.bf16.msra.mxu1 %v10023_v39  ;;  %7603 = vmatprep.subr.bf16.mxu0 %v10028_v50  ;;  %v10100_v39 = vld [vmem:[#allocation8 + $0xb44] ss:$16 sps:$4 sm:$0xff]   ;;  %v10103_v50 = vld [vmem:[#allocation8 + $0xb4c] ss:$16 sps:$4 sm:$0xff]  }
 0x399   :  { %8027 = vmatprep.subr.bf16.mxu1 %v10031_v57  ;;  %v10098_v57 = vld [vmem:[#allocation8 + $0xb40] ss:$16 sps:$4 sm:$0xff]  }
 0x39b   :  { %7604 = vmatpush1.bf16.msra.mxu0 %v10026_v21  ;;  %v10101_v21 = vld [vmem:[#allocation8 + $0xb48] ss:$16 sps:$4 sm:$0xff]  }
 0x39c   :  { %8028 = vmatpush1.bf16.msra.mxu1 %v10029_v31  ;;  %7605 = vmatprep.subr.bf16.mxu0 %v10034_v29  ;;  %v10106_v31 = vld [vmem:[#allocation8 + $0xb64] ss:$16 sps:$4 sm:$0xff]   ;;  %v10109_v29 = vld [vmem:[#allocation8 + $0xb6c] ss:$16 sps:$4 sm:$0xff]  }
 0x39d   :  { %8029 = vmatprep.subr.bf16.mxu1 %v10037_v6  ;;  %v10104_v6 = vld [vmem:[#allocation8 + $0xb60] ss:$16 sps:$4 sm:$0xff]  }
 0x39f   :  { %7606 = vmatpush1.bf16.msra.mxu0 %v10032_v22  ;;  %v10107_v22 = vld [vmem:[#allocation8 + $0xb68] ss:$16 sps:$4 sm:$0xff]  }
 0x3a0   :  { %8030 = vmatpush1.bf16.msra.mxu1 %v10035_v59  ;;  %7628 = vmatprep.subr.bf16.mxu0 %v10040_v60  ;;  %v10112_v59 = vld [vmem:[#allocation8 + $0xb84] ss:$16 sps:$4 sm:$0xff]   ;;  %v10115_v60 = vld [vmem:[#allocation8 + $0xb8c] ss:$16 sps:$4 sm:$0xff]  }
 0x3a1   :  { %8052 = vmatprep.subr.bf16.mxu1 %v10043_v12  ;;  %v10110_v12 = vld [vmem:[#allocation8 + $0xb80] ss:$16 sps:$4 sm:$0xff]  }
 0x3a2   :  { %7608 = vmatmul.mubr.bf16.vlgmr.msra.gmra.mrb[32].mxu0 %v10823_v58 }
 0x3a3   :  { %8032 = vmatmul.mubr.bf16.vlgmr.msra.gmra.mrb[32].mxu1 %v10823_v58  ;;  %7617 = vmatprep.mubr.bf16.mxu0 %v10843_v32  ;;  %v10061_v58 = vld [vmem:[#allocation8 + $0xa6c] ss:$16 sps:$4 sm:$0xff]  }
 0x3a4   :  { %7629 = vmatpush1.bf16.msra.mxu0 %v10038_v26  ;;  %8041 = vmatprep.mubr.bf16.mxu1 %v10843_v32  ;;  %v10056_v32 = vld [vmem:[#allocation8 + $0xa60] ss:$16 sps:$4 sm:$0xff]   ;;  %v10113_v26 = vld [vmem:[#allocation8 + $0xb88] ss:$16 sps:$4 sm:$0xff]  }
 0x3a5   :  { %8053 = vmatpush1.bf16.msra.mxu1 %v10041_v28  ;;  %7630 = vmatprep.subr.bf16.mxu0 %v10046_v37  ;;  %v10118_v28 = vld [vmem:[#allocation8 + $0xba4] ss:$16 sps:$4 sm:$0xff]   ;;  %v10121_v37 = vld [vmem:[#allocation8 + $0xbac] ss:$16 sps:$4 sm:$0xff]  }
 0x3a6   :  { %8054 = vmatprep.subr.bf16.mxu1 %v10049_v47  ;;  %v10116_v47 = vld [vmem:[#allocation8 + $0xba0] ss:$16 sps:$4 sm:$0xff]  }
 0x3a8   :  { %7631 = vmatpush1.bf16.msra.mxu0 %v10044_v56  ;;  %v10119_v56 = vld [vmem:[#allocation8 + $0xba8] ss:$16 sps:$4 sm:$0xff]  }
 0x3a9   :  { %8055 = vmatpush1.bf16.msra.mxu1 %v10047_v41  ;;  %7632 = vmatprep.subr.bf16.mxu0 %v10052_v62  ;;  %v10124_v41 = vld [vmem:[#allocation8 + $0xbc4] ss:$16 sps:$4 sm:$0xff]   ;;  %v10127_v62 = vld [vmem:[#allocation8 + $0xbcc] ss:$16 sps:$4 sm:$0xff]  }
 0x3aa   :  { %7618 = vmatmul.mubr.bf16.gmra.mrb[36].mxu0 %v10839_v30  ;;  %8056 = vmatprep.subr.bf16.mxu1 %v10055_v2  ;;  %v10122_v2 = vld [vmem:[#allocation8 + $0xbc0] ss:$16 sps:$4 sm:$0xff]  }
 0x3ab   :  { %8042 = vmatmul.mubr.bf16.gmra.mrb[36].mxu1 %v10839_v30  ;;  %7660 = vmatprep.mubr.bf16.mxu0 %v10829_v44  ;;  %v10073_v30 = vld [vmem:[#allocation8 + $0xaac] ss:$16 sps:$4 sm:$0xff]  }
 0x3ac   :  { %7633 = vmatpush1.bf16.msra.mxu0 %v10050_v27  ;;  %8084 = vmatprep.mubr.bf16.mxu1 %v10829_v44  ;;  %v10071_v44 = vld [vmem:[#allocation8 + $0xaa8] ss:$16 sps:$4 sm:$0xff]  }
 0x3ad   :  { %8057 = vmatpush1.bf16.msra.mxu1 %v10053_v9  ;;  %7634 = vmatprep.subr.bf16.mxu0 %v10058_v11  ;;  %v10125_v27 = vld [vmem:[#allocation8 + $0xbc8] ss:$16 sps:$4 sm:$0xff]   ;;  %v10130_v9 = vld [vmem:[#allocation8 + $0xbe4] ss:$16 sps:$4 sm:$0xff]   ;;  %v10133_v11 = vld [vmem:[#allocation8 + $0xbec] ss:$16 sps:$4 sm:$0xff]  }
 0x3ae   :  { %8058 = vmatprep.subr.bf16.mxu1 %v10061_v58  ;;  %v10128_v58 = vld [vmem:[#allocation8 + $0xbe0] ss:$16 sps:$4 sm:$0xff]  }
 0x3b0   :  { %7635 = vmatpush1.bf16.msra.mxu0 %v10056_v32  ;;  %v10131_v32 = vld [vmem:[#allocation8 + $0xbe8] ss:$16 sps:$4 sm:$0xff]  }
 0x3b1   :  { %8059 = vmatpush1.bf16.msra.mxu1 %v10059_v19  ;;  %7636 = vmatprep.subr.bf16.mxu0 %v10064_v20  ;;  %v10136_v19 = vld [vmem:[#allocation8 + $0xc04] ss:$16 sps:$4 sm:$0xff]   ;;  %v10139_v20 = vld [vmem:[#allocation8 + $0xc0c] ss:$16 sps:$4 sm:$0xff]  }
 0x3b2   :  { %8060 = vmatprep.subr.bf16.mxu1 %v10067_v10  ;;  %v10134_v10 = vld [vmem:[#allocation8 + $0xc00] ss:$16 sps:$4 sm:$0xff]  }
 0x3b4   :  { %7637 = vmatpush1.bf16.msra.mxu0 %v10062_v24  ;;  %v10137_v24 = vld [vmem:[#allocation8 + $0xc08] ss:$16 sps:$4 sm:$0xff]  }
 0x3b5   :  { %8061 = vmatpush1.bf16.msra.mxu1 %v10065_v25  ;;  %7638 = vmatprep.subr.bf16.mxu0 %v10070_v13  ;;  %v10142_v25 = vld [vmem:[#allocation8 + $0xc24] ss:$16 sps:$4 sm:$0xff]   ;;  %v10145_v13 = vld [vmem:[#allocation8 + $0xc2c] ss:$16 sps:$4 sm:$0xff]  }
 0x3b6   :  { %8062 = vmatprep.subr.bf16.mxu1 %v10073_v30  ;;  %v10140_v30 = vld [vmem:[#allocation8 + $0xc20] ss:$16 sps:$4 sm:$0xff]  }
 0x3b8   :  { %7639 = vmatpush1.bf16.msra.mxu0 %v10068_v40  ;;  %v10143_v40 = vld [vmem:[#allocation8 + $0xc28] ss:$16 sps:$4 sm:$0xff]  }
 0x3b9   :  { %8063 = vmatpush1.bf16.msra.mxu1 %v10071_v44  ;;  %7640 = vmatprep.subr.bf16.mxu0 %v10076_v42  ;;  %v10148_v44 = vld [vmem:[#allocation8 + $0xc44] ss:$16 sps:$4 sm:$0xff]   ;;  %v10151_v42 = vld [vmem:[#allocation8 + $0xc4c] ss:$16 sps:$4 sm:$0xff]  }
 0x3ba   :  { %8064 = vmatprep.subr.bf16.mxu1 %v10079_v55  ;;  %v10146_v55 = vld [vmem:[#allocation8 + $0xc40] ss:$16 sps:$4 sm:$0xff]  }
 0x3bc   :  { %7641 = vmatpush1.bf16.msra.mxu0 %v10074_v1  ;;  %v10149_v1 = vld [vmem:[#allocation8 + $0xc48] ss:$16 sps:$4 sm:$0xff]  }
 0x3bd   :  { %8065 = vmatpush1.bf16.msra.mxu1 %v10077_v43  ;;  %7642 = vmatprep.subr.bf16.mxu0 %v10082_v52  ;;  %v10154_v43 = vld [vmem:[#allocation8 + $0xc64] ss:$16 sps:$4 sm:$0xff]   ;;  %v10155_v52 = vld [vmem:[#allocation8 + $0xc68] ss:$16 sps:$4 sm:$0xff]  }
 0x3be   :  { %8066 = vmatprep.subr.bf16.mxu1 %v10085_v34  ;;  %v10160_v34 = vld [vmem:[#allocation8 + $0xc84] ss:$16 sps:$4 sm:$0xff]  }
 0x3c0   :  { %7643 = vmatpush1.bf16.msra.mxu0 %v10080_v8  ;;  %v10163_v8 = vld [vmem:[#allocation8 + $0xc8c] ss:$16 sps:$4 sm:$0xff]  }
 0x3c1   :  { %8067 = vmatpush1.bf16.msra.mxu1 %v10083_v54  ;;  %7644 = vmatprep.subr.bf16.mxu0 %v10088_v61  ;;  %v10158_v54 = vld [vmem:[#allocation8 + $0xc80] ss:$16 sps:$4 sm:$0xff]   ;;  %v10161_v61 = vld [vmem:[#allocation8 + $0xc88] ss:$16 sps:$4 sm:$0xff]  }
 0x3c2   :  { %8068 = vmatprep.subr.bf16.mxu1 %v10091_v53  ;;  %v10166_v53 = vld [vmem:[#allocation8 + $0xca4] ss:$16 sps:$4 sm:$0xff]  }
 0x3c4   :  { %7645 = vmatpush1.bf16.msra.mxu0 %v10086_v36  ;;  %v10164_v36 = vld [vmem:[#allocation8 + $0xca0] ss:$16 sps:$4 sm:$0xff]  }
 0x3c5   :  { %8069 = vmatpush1.bf16.msra.mxu1 %v10089_v38  ;;  %7646 = vmatprep.subr.bf16.mxu0 %v10094_v16  ;;  %v10172_v38 = vld [vmem:[#allocation8 + $0xcc4] ss:$16 sps:$4 sm:$0xff]   ;;  %v10175_v16 = vld [vmem:[#allocation8 + $0xccc] ss:$16 sps:$4 sm:$0xff]  }
 0x3c6   :  { %8070 = vmatprep.subr.bf16.mxu1 %v10097_v17  ;;  %v10170_v17 = vld [vmem:[#allocation8 + $0xcc0] ss:$16 sps:$4 sm:$0xff]  }
 0x3c8   :  { %7647 = vmatpush1.bf16.msra.mxu0 %v10092_v46  ;;  %v10173_v46 = vld [vmem:[#allocation8 + $0xcc8] ss:$16 sps:$4 sm:$0xff]  }
 0x3c9   :  { %8071 = vmatpush1.bf16.msra.mxu1 %v10095_v49  ;;  %7648 = vmatprep.subr.bf16.mxu0 %v10100_v39  ;;  %v10178_v49 = vld [vmem:[#allocation8 + $0xce4] ss:$16 sps:$4 sm:$0xff]   ;;  %v10181_v39 = vld [vmem:[#allocation8 + $0xcec] ss:$16 sps:$4 sm:$0xff]  }
 0x3ca   :  { %8072 = vmatprep.subr.bf16.mxu1 %v10103_v50  ;;  %v10176_v50 = vld [vmem:[#allocation8 + $0xce0] ss:$16 sps:$4 sm:$0xff]  }
 0x3cc   :  { %7649 = vmatpush1.bf16.msra.mxu0 %v10098_v57  ;;  %v10179_v57 = vld [vmem:[#allocation8 + $0xce8] ss:$16 sps:$4 sm:$0xff]  }
 0x3cd   :  { %8073 = vmatpush1.bf16.msra.mxu1 %v10101_v21  ;;  %7650 = vmatprep.subr.bf16.mxu0 %v10106_v31  ;;  %v10184_v21 = vld [vmem:[#allocation8 + $0xd04] ss:$16 sps:$4 sm:$0xff]   ;;  %v10187_v31 = vld [vmem:[#allocation8 + $0xd0c] ss:$16 sps:$4 sm:$0xff]  }
 0x3ce   :  { %8074 = vmatprep.subr.bf16.mxu1 %v10109_v29  ;;  %v10182_v29 = vld [vmem:[#allocation8 + $0xd00] ss:$16 sps:$4 sm:$0xff]  }
 0x3d0   :  { %7651 = vmatpush1.bf16.msra.mxu0 %v10104_v6  ;;  %v10185_v6 = vld [vmem:[#allocation8 + $0xd08] ss:$16 sps:$4 sm:$0xff]  }
 0x3d1   :  { %8075 = vmatpush1.bf16.msra.mxu1 %v10107_v22  ;;  %7652 = vmatprep.subr.bf16.mxu0 %v10112_v59  ;;  %v10190_v22 = vld [vmem:[#allocation8 + $0xd24] ss:$16 sps:$4 sm:$0xff]   ;;  %v10193_v59 = vld [vmem:[#allocation8 + $0xd2c] ss:$16 sps:$4 sm:$0xff]  }
 0x3d2   :  { %8076 = vmatprep.subr.bf16.mxu1 %v10115_v60  ;;  %v10188_v60 = vld [vmem:[#allocation8 + $0xd20] ss:$16 sps:$4 sm:$0xff]  }
 0x3d4   :  { %7653 = vmatpush1.bf16.msra.mxu0 %v10110_v12  ;;  %v10191_v12 = vld [vmem:[#allocation8 + $0xd28] ss:$16 sps:$4 sm:$0xff]  }
 0x3d5   :  { %8077 = vmatpush1.bf16.msra.mxu1 %v10113_v26  ;;  %7654 = vmatprep.subr.bf16.mxu0 %v10118_v28  ;;  %v10196_v26 = vld [vmem:[#allocation8 + $0xd44] ss:$16 sps:$4 sm:$0xff]   ;;  %v10199_v28 = vld [vmem:[#allocation8 + $0xd4c] ss:$16 sps:$4 sm:$0xff]  }
 0x3d6   :  { %8078 = vmatprep.subr.bf16.mxu1 %v10121_v37  ;;  %v10194_v37 = vld [vmem:[#allocation8 + $0xd40] ss:$16 sps:$4 sm:$0xff]  }
 0x3d8   :  { %7655 = vmatpush1.bf16.msra.mxu0 %v10116_v47  ;;  %v10197_v47 = vld [vmem:[#allocation8 + $0xd48] ss:$16 sps:$4 sm:$0xff]  }
 0x3d9   :  { %8079 = vmatpush1.bf16.msra.mxu1 %v10119_v56  ;;  %7656 = vmatprep.subr.bf16.mxu0 %v10124_v41  ;;  %v10202_v56 = vld [vmem:[#allocation8 + $0xd64] ss:$16 sps:$4 sm:$0xff]   ;;  %v10205_v41 = vld [vmem:[#allocation8 + $0xd6c] ss:$16 sps:$4 sm:$0xff]  }
 0x3da   :  { %8080 = vmatprep.subr.bf16.mxu1 %v10127_v62  ;;  %v10200_v62 = vld [vmem:[#allocation8 + $0xd60] ss:$16 sps:$4 sm:$0xff]  }
 0x3dc   :  { %7657 = vmatpush1.bf16.msra.mxu0 %v10122_v2  ;;  %v10203_v2 = vld [vmem:[#allocation8 + $0xd68] ss:$16 sps:$4 sm:$0xff]  }
 0x3dd   :  { %8081 = vmatpush1.bf16.msra.mxu1 %v10125_v27  ;;  %7658 = vmatprep.subr.bf16.mxu0 %v10130_v9  ;;  %v10208_v27 = vld [vmem:[#allocation8 + $0xd84] ss:$16 sps:$4 sm:$0xff]   ;;  %v10211_v9 = vld [vmem:[#allocation8 + $0xd8c] ss:$16 sps:$4 sm:$0xff]  }
 0x3de   :  { %8082 = vmatprep.subr.bf16.mxu1 %v10133_v11  ;;  %v10206_v11 = vld [vmem:[#allocation8 + $0xd80] ss:$16 sps:$4 sm:$0xff]  }
 0x3e0   :  { %7659 = vmatpush1.bf16.msra.mxu0 %v10128_v58  ;;  %v10209_v58 = vld [vmem:[#allocation8 + $0xd88] ss:$16 sps:$4 sm:$0xff]  }
 0x3e1   :  { %8083 = vmatpush1.bf16.msra.mxu1 %v10131_v32  ;;  %7681 = vmatprep.subr.bf16.mxu0 %v10136_v19  ;;  %v10214_v32 = vld [vmem:[#allocation8 + $0xda4] ss:$16 sps:$4 sm:$0xff]   ;;  %v10217_v19 = vld [vmem:[#allocation8 + $0xdac] ss:$16 sps:$4 sm:$0xff]  }
 0x3e2   :  { %8105 = vmatprep.subr.bf16.mxu1 %v10139_v20  ;;  %v10212_v20 = vld [vmem:[#allocation8 + $0xda0] ss:$16 sps:$4 sm:$0xff]  }
 0x3e3   :  { %7661 = vmatmul.mubr.bf16.vlgmr.msra.gmra.mrb[32].mxu0 %v10825_v35 }
 0x3e4   :  { %8085 = vmatmul.mubr.bf16.vlgmr.msra.gmra.mrb[32].mxu1 %v10825_v35  ;;  %7670 = vmatprep.mubr.bf16.mxu0 %v10845_v33  ;;  %v10157_v35 = vld [vmem:[#allocation8 + $0xc6c] ss:$16 sps:$4 sm:$0xff]  }
 0x3e5   :  { %7682 = vmatpush1.bf16.msra.mxu0 %v10134_v10  ;;  %8094 = vmatprep.mubr.bf16.mxu1 %v10845_v33  ;;  %v10152_v33 = vld [vmem:[#allocation8 + $0xc60] ss:$16 sps:$4 sm:$0xff]   ;;  %v10215_v10 = vld [vmem:[#allocation8 + $0xda8] ss:$16 sps:$4 sm:$0xff]  }
 0x3e6   :  { %8106 = vmatpush1.bf16.msra.mxu1 %v10137_v24  ;;  %7683 = vmatprep.subr.bf16.mxu0 %v10142_v25  ;;  %v10220_v24 = vld [vmem:[#allocation8 + $0xdc4] ss:$16 sps:$4 sm:$0xff]   ;;  %v10223_v25 = vld [vmem:[#allocation8 + $0xdcc] ss:$16 sps:$4 sm:$0xff]  }
 0x3e7   :  { %8107 = vmatprep.subr.bf16.mxu1 %v10145_v13  ;;  %v10218_v13 = vld [vmem:[#allocation8 + $0xdc0] ss:$16 sps:$4 sm:$0xff]  }
 0x3e9   :  { %7684 = vmatpush1.bf16.msra.mxu0 %v10140_v30  ;;  %v10221_v30 = vld [vmem:[#allocation8 + $0xdc8] ss:$16 sps:$4 sm:$0xff]  }
 0x3ea   :  { %8108 = vmatpush1.bf16.msra.mxu1 %v10143_v40  ;;  %7685 = vmatprep.subr.bf16.mxu0 %v10148_v44  ;;  %v10226_v40 = vld [vmem:[#allocation8 + $0xde4] ss:$16 sps:$4 sm:$0xff]   ;;  %v10229_v44 = vld [vmem:[#allocation8 + $0xdec] ss:$16 sps:$4 sm:$0xff]  }
 0x3eb   :  { %7671 = vmatmul.mubr.bf16.gmra.mrb[36].mxu0 %v10841_v3  ;;  %8109 = vmatprep.subr.bf16.mxu1 %v10151_v42  ;;  %v10224_v42 = vld [vmem:[#allocation8 + $0xde0] ss:$16 sps:$4 sm:$0xff]  }
 0x3ec   :  { %8095 = vmatmul.mubr.bf16.gmra.mrb[36].mxu1 %v10841_v3  ;;  %7713 = vmatprep.mubr.bf16.mxu0 %v10895_v15  ;;  %v10169_v3 = vld [vmem:[#allocation8 + $0xcac] ss:$16 sps:$4 sm:$0xff]  }
 0x3ed   :  { %7686 = vmatpush1.bf16.msra.mxu0 %v10146_v55  ;;  %8137 = vmatprep.mubr.bf16.mxu1 %v10895_v15  ;;  %v10167_v15 = vld [vmem:[#allocation8 + $0xca8] ss:$16 sps:$4 sm:$0xff]  }
 0x3ee   :  { %8110 = vmatpush1.bf16.msra.mxu1 %v10149_v1  ;;  %7687 = vmatprep.subr.bf16.mxu0 %v10154_v43  ;;  %v10227_v55 = vld [vmem:[#allocation8 + $0xde8] ss:$16 sps:$4 sm:$0xff]   ;;  %v10232_v1 = vld [vmem:[#allocation8 + $0xe04] ss:$16 sps:$4 sm:$0xff]   ;;  %v10235_v43 = vld [vmem:[#allocation8 + $0xe0c] ss:$16 sps:$4 sm:$0xff]  }
 0x3ef   :  { %8111 = vmatprep.subr.bf16.mxu1 %v10157_v35  ;;  %v10230_v35 = vld [vmem:[#allocation8 + $0xe00] ss:$16 sps:$4 sm:$0xff]  }
 0x3f1   :  { %7688 = vmatpush1.bf16.msra.mxu0 %v10152_v33  ;;  %v10233_v33 = vld [vmem:[#allocation8 + $0xe08] ss:$16 sps:$4 sm:$0xff]  }
 0x3f2   :  { %8112 = vmatpush1.bf16.msra.mxu1 %v10155_v52  ;;  %7689 = vmatprep.subr.bf16.mxu0 %v10160_v34  ;;  %v10238_v52 = vld [vmem:[#allocation8 + $0xe24] ss:$16 sps:$4 sm:$0xff]   ;;  %v10241_v34 = vld [vmem:[#allocation8 + $0xe2c] ss:$16 sps:$4 sm:$0xff]  }
 0x3f3   :  { %8113 = vmatprep.subr.bf16.mxu1 %v10163_v8  ;;  %v10236_v8 = vld [vmem:[#allocation8 + $0xe20] ss:$16 sps:$4 sm:$0xff]  }
 0x3f5   :  { %7690 = vmatpush1.bf16.msra.mxu0 %v10158_v54  ;;  %v10239_v54 = vld [vmem:[#allocation8 + $0xe28] ss:$16 sps:$4 sm:$0xff]  }
 0x3f6   :  { %8114 = vmatpush1.bf16.msra.mxu1 %v10161_v61  ;;  %7691 = vmatprep.subr.bf16.mxu0 %v10166_v53  ;;  %v10244_v61 = vld [vmem:[#allocation8 + $0xe44] ss:$16 sps:$4 sm:$0xff]   ;;  %v10247_v53 = vld [vmem:[#allocation8 + $0xe4c] ss:$16 sps:$4 sm:$0xff]  }
 0x3f7   :  { %8115 = vmatprep.subr.bf16.mxu1 %v10169_v3  ;;  %v10242_v3 = vld [vmem:[#allocation8 + $0xe40] ss:$16 sps:$4 sm:$0xff]  }
 0x3f9   :  { %7692 = vmatpush1.bf16.msra.mxu0 %v10164_v36  ;;  %v10245_v36 = vld [vmem:[#allocation8 + $0xe48] ss:$16 sps:$4 sm:$0xff]  }
 0x3fa   :  { %8116 = vmatpush1.bf16.msra.mxu1 %v10167_v15  ;;  %7693 = vmatprep.subr.bf16.mxu0 %v10172_v38  ;;  %v10250_v15 = vld [vmem:[#allocation8 + $0xe64] ss:$16 sps:$4 sm:$0xff]   ;;  %v10251_v38 = vld [vmem:[#allocation8 + $0xe68] ss:$16 sps:$4 sm:$0xff]  }
 0x3fb   :  { %8117 = vmatprep.subr.bf16.mxu1 %v10175_v16  ;;  %v10256_v16 = vld [vmem:[#allocation8 + $0xe84] ss:$16 sps:$4 sm:$0xff]  }
 0x3fd   :  { %7694 = vmatpush1.bf16.msra.mxu0 %v10170_v17  ;;  %v10259_v17 = vld [vmem:[#allocation8 + $0xe8c] ss:$16 sps:$4 sm:$0xff]  }
 0x3fe   :  { %8118 = vmatpush1.bf16.msra.mxu1 %v10173_v46  ;;  %7695 = vmatprep.subr.bf16.mxu0 %v10178_v49  ;;  %v10254_v46 = vld [vmem:[#allocation8 + $0xe80] ss:$16 sps:$4 sm:$0xff]   ;;  %v10257_v49 = vld [vmem:[#allocation8 + $0xe88] ss:$16 sps:$4 sm:$0xff]  }
 0x3ff   :  { %8119 = vmatprep.subr.bf16.mxu1 %v10181_v39  ;;  %v10262_v39 = vld [vmem:[#allocation8 + $0xea4] ss:$16 sps:$4 sm:$0xff]  }
 0x401   :  { %7696 = vmatpush1.bf16.msra.mxu0 %v10176_v50  ;;  %v10260_v50 = vld [vmem:[#allocation8 + $0xea0] ss:$16 sps:$4 sm:$0xff]  }
 0x402   :  { %8120 = vmatpush1.bf16.msra.mxu1 %v10179_v57  ;;  %7697 = vmatprep.subr.bf16.mxu0 %v10184_v21  ;;  %v10268_v57 = vld [vmem:[#allocation8 + $0xec4] ss:$16 sps:$4 sm:$0xff]   ;;  %v10271_v21 = vld [vmem:[#allocation8 + $0xecc] ss:$16 sps:$4 sm:$0xff]  }
 0x403   :  { %8121 = vmatprep.subr.bf16.mxu1 %v10187_v31  ;;  %v10266_v31 = vld [vmem:[#allocation8 + $0xec0] ss:$16 sps:$4 sm:$0xff]  }
 0x405   :  { %7698 = vmatpush1.bf16.msra.mxu0 %v10182_v29  ;;  %v10269_v29 = vld [vmem:[#allocation8 + $0xec8] ss:$16 sps:$4 sm:$0xff]  }
 0x406   :  { %8122 = vmatpush1.bf16.msra.mxu1 %v10185_v6  ;;  %7699 = vmatprep.subr.bf16.mxu0 %v10190_v22  ;;  %v10274_v6 = vld [vmem:[#allocation8 + $0xee4] ss:$16 sps:$4 sm:$0xff]   ;;  %v10277_v22 = vld [vmem:[#allocation8 + $0xeec] ss:$16 sps:$4 sm:$0xff]  }
 0x407   :  { %8123 = vmatprep.subr.bf16.mxu1 %v10193_v59  ;;  %v10272_v59 = vld [vmem:[#allocation8 + $0xee0] ss:$16 sps:$4 sm:$0xff]  }
 0x409   :  { %7700 = vmatpush1.bf16.msra.mxu0 %v10188_v60  ;;  %v10275_v60 = vld [vmem:[#allocation8 + $0xee8] ss:$16 sps:$4 sm:$0xff]  }
 0x40a   :  { %8124 = vmatpush1.bf16.msra.mxu1 %v10191_v12  ;;  %7701 = vmatprep.subr.bf16.mxu0 %v10196_v26  ;;  %v10280_v12 = vld [vmem:[#allocation8 + $0xf04] ss:$16 sps:$4 sm:$0xff]   ;;  %v10283_v26 = vld [vmem:[#allocation8 + $0xf0c] ss:$16 sps:$4 sm:$0xff]  }
 0x40b   :  { %8125 = vmatprep.subr.bf16.mxu1 %v10199_v28  ;;  %v10278_v28 = vld [vmem:[#allocation8 + $0xf00] ss:$16 sps:$4 sm:$0xff]  }
 0x40d   :  { %7702 = vmatpush1.bf16.msra.mxu0 %v10194_v37  ;;  %v10281_v37 = vld [vmem:[#allocation8 + $0xf08] ss:$16 sps:$4 sm:$0xff]  }
 0x40e   :  { %8126 = vmatpush1.bf16.msra.mxu1 %v10197_v47  ;;  %7703 = vmatprep.subr.bf16.mxu0 %v10202_v56  ;;  %v10286_v47 = vld [vmem:[#allocation8 + $0xf24] ss:$16 sps:$4 sm:$0xff]   ;;  %v10289_v56 = vld [vmem:[#allocation8 + $0xf2c] ss:$16 sps:$4 sm:$0xff]  }
 0x40f   :  { %8127 = vmatprep.subr.bf16.mxu1 %v10205_v41  ;;  %v10284_v41 = vld [vmem:[#allocation8 + $0xf20] ss:$16 sps:$4 sm:$0xff]  }
 0x411   :  { %7704 = vmatpush1.bf16.msra.mxu0 %v10200_v62  ;;  %v10287_v62 = vld [vmem:[#allocation8 + $0xf28] ss:$16 sps:$4 sm:$0xff]  }
 0x412   :  { %8128 = vmatpush1.bf16.msra.mxu1 %v10203_v2  ;;  %7705 = vmatprep.subr.bf16.mxu0 %v10208_v27  ;;  %v10292_v2 = vld [vmem:[#allocation8 + $0xf44] ss:$16 sps:$4 sm:$0xff]   ;;  %v10295_v27 = vld [vmem:[#allocation8 + $0xf4c] ss:$16 sps:$4 sm:$0xff]  }
 0x413   :  { %8129 = vmatprep.subr.bf16.mxu1 %v10211_v9  ;;  %v10290_v9 = vld [vmem:[#allocation8 + $0xf40] ss:$16 sps:$4 sm:$0xff]  }
 0x415   :  { %7706 = vmatpush1.bf16.msra.mxu0 %v10206_v11  ;;  %v10293_v11 = vld [vmem:[#allocation8 + $0xf48] ss:$16 sps:$4 sm:$0xff]  }
 0x416   :  { %8130 = vmatpush1.bf16.msra.mxu1 %v10209_v58  ;;  %7707 = vmatprep.subr.bf16.mxu0 %v10214_v32  ;;  %v10298_v58 = vld [vmem:[#allocation8 + $0xf64] ss:$16 sps:$4 sm:$0xff]   ;;  %v10301_v32 = vld [vmem:[#allocation8 + $0xf6c] ss:$16 sps:$4 sm:$0xff]  }
 0x417   :  { %8131 = vmatprep.subr.bf16.mxu1 %v10217_v19  ;;  %v10296_v19 = vld [vmem:[#allocation8 + $0xf60] ss:$16 sps:$4 sm:$0xff]  }
 0x419   :  { %7708 = vmatpush1.bf16.msra.mxu0 %v10212_v20  ;;  %v10299_v20 = vld [vmem:[#allocation8 + $0xf68] ss:$16 sps:$4 sm:$0xff]  }
 0x41a   :  { %8132 = vmatpush1.bf16.msra.mxu1 %v10215_v10  ;;  %7709 = vmatprep.subr.bf16.mxu0 %v10220_v24  ;;  %v10304_v10 = vld [vmem:[#allocation8 + $0xf84] ss:$16 sps:$4 sm:$0xff]   ;;  %v10307_v24 = vld [vmem:[#allocation8 + $0xf8c] ss:$16 sps:$4 sm:$0xff]  }
 0x41b   :  { %8133 = vmatprep.subr.bf16.mxu1 %v10223_v25  ;;  %v10302_v25 = vld [vmem:[#allocation8 + $0xf80] ss:$16 sps:$4 sm:$0xff]  }
 0x41d   :  { %7710 = vmatpush1.bf16.msra.mxu0 %v10218_v13  ;;  %v10305_v13 = vld [vmem:[#allocation8 + $0xf88] ss:$16 sps:$4 sm:$0xff]  }
 0x41e   :  { %8134 = vmatpush1.bf16.msra.mxu1 %v10221_v30  ;;  %7711 = vmatprep.subr.bf16.mxu0 %v10226_v40  ;;  %v10310_v30 = vld [vmem:[#allocation8 + $0xfa4] ss:$16 sps:$4 sm:$0xff]   ;;  %v10313_v40 = vld [vmem:[#allocation8 + $0xfac] ss:$16 sps:$4 sm:$0xff]  }
 0x41f   :  { %8135 = vmatprep.subr.bf16.mxu1 %v10229_v44  ;;  %v10308_v44 = vld [vmem:[#allocation8 + $0xfa0] ss:$16 sps:$4 sm:$0xff]  }
 0x421   :  { %7712 = vmatpush1.bf16.msra.mxu0 %v10224_v42  ;;  %v10311_v42 = vld [vmem:[#allocation8 + $0xfa8] ss:$16 sps:$4 sm:$0xff]  }
 0x422   :  { %8136 = vmatpush1.bf16.msra.mxu1 %v10227_v55  ;;  %7734 = vmatprep.subr.bf16.mxu0 %v10232_v1  ;;  %v10316_v55 = vld [vmem:[#allocation8 + $0xfc4] ss:$16 sps:$4 sm:$0xff]   ;;  %v10319_v1 = vld [vmem:[#allocation8 + $0xfcc] ss:$16 sps:$4 sm:$0xff]  }
 0x423   :  { %8158 = vmatprep.subr.bf16.mxu1 %v10235_v43  ;;  %v10314_v43 = vld [vmem:[#allocation8 + $0xfc0] ss:$16 sps:$4 sm:$0xff]  }
 0x424   :  { %7714 = vmatmul.mubr.bf16.vlgmr.msra.gmra.mrb[32].mxu0 %v10891_v18 }
 0x425   :  { %8138 = vmatmul.mubr.bf16.vlgmr.msra.gmra.mrb[32].mxu1 %v10891_v18  ;;  %7723 = vmatprep.mubr.bf16.mxu0 %v10911_v45  ;;  %v10253_v18 = vld [vmem:[#allocation8 + $0xe6c] ss:$16 sps:$4 sm:$0xff]  }
 0x426   :  { %7735 = vmatpush1.bf16.msra.mxu0 %v10230_v35  ;;  %8147 = vmatprep.mubr.bf16.mxu1 %v10911_v45  ;;  %v10248_v45 = vld [vmem:[#allocation8 + $0xe60] ss:$16 sps:$4 sm:$0xff]   ;;  %v10317_v35 = vld [vmem:[#allocation8 + $0xfc8] ss:$16 sps:$4 sm:$0xff]  }
 0x427   :  { %8159 = vmatpush1.bf16.msra.mxu1 %v10233_v33  ;;  %7736 = vmatprep.subr.bf16.mxu0 %v10238_v52  ;;  %v10322_v33 = vld [vmem:[#allocation8 + $0xfe4] ss:$16 sps:$4 sm:$0xff]   ;;  %v10325_v52 = vld [vmem:[#allocation8 + $0xfec] ss:$16 sps:$4 sm:$0xff]  }
 0x428   :  { %8160 = vmatprep.subr.bf16.mxu1 %v10241_v34  ;;  %v10320_v34 = vld [vmem:[#allocation8 + $0xfe0] ss:$16 sps:$4 sm:$0xff]  }
 0x42a   :  { %7737 = vmatpush1.bf16.msra.mxu0 %v10236_v8  ;;  %v10323_v8 = vld [vmem:[#allocation8 + $0xfe8] ss:$16 sps:$4 sm:$0xff]  }
 0x42b   :  { %8161 = vmatpush1.bf16.msra.mxu1 %v10239_v54  ;;  %7738 = vmatprep.subr.bf16.mxu0 %v10244_v61  ;;  %v89_v54 = vld [vmem:[#allocation10] sm:$0xf] }
 0x42c   :  { %7724 = vmatmul.mubr.bf16.gmra.mrb[36].mxu0 %v10907_v51  ;;  %8162 = vmatprep.subr.bf16.mxu1 %v10247_v53  ;;  %v94_v61 = vrot.slane %v89_v54, %v10603_v63  ;;  %v102_v53 = vrot.slane %v89_v54, %v10609_v4 }
 0x42d   :  { %8148 = vmatmul.mubr.bf16.gmra.mrb[36].mxu1 %v10907_v51  ;;  %7766 = vmatprep.mubr.bf16.mxu0 %v10897_v14  ;;  %v10265_v51 = vld [vmem:[#allocation8 + $0xeac] ss:$16 sps:$4 sm:$0xff]  }
 0x42e   :  { %7739 = vmatpush1.bf16.msra.mxu0 %v10242_v3  ;;  %8190 = vmatprep.mubr.bf16.mxu1 %v10897_v14  ;;  %v10263_v14 = vld [vmem:[#allocation8 + $0xea8] ss:$16 sps:$4 sm:$0xff]   ;;  %v98_v3 = vrot.slane %v89_v54, %v10612_v5 }
 0x42f   :  { %8163 = vmatpush1.bf16.msra.mxu1 %v10245_v36  ;;  %7740 = vmatprep.subr.bf16.mxu0 %v10250_v15  ;;  %v106_v36 = vrot.slane %v89_v54, %v10615_v7 }
 0x430   :  { %8164 = vmatprep.subr.bf16.mxu1 %v10253_v18 }
 0x432   :  { %7741 = vmatpush1.bf16.msra.mxu0 %v10248_v45 }
 0x433   :  { %8165 = vmatpush1.bf16.msra.mxu1 %v10251_v38  ;;  %7742 = vmatprep.subr.bf16.mxu0 %v10256_v16 }
 0x434   :  { %8166 = vmatprep.subr.bf16.mxu1 %v10259_v17 }
 0x436   :  { %7743 = vmatpush1.bf16.msra.mxu0 %v10254_v46 }
 0x437   :  { %8167 = vmatpush1.bf16.msra.mxu1 %v10257_v49  ;;  %7744 = vmatprep.subr.bf16.mxu0 %v10262_v39 }
 0x438   :  { %8168 = vmatprep.subr.bf16.mxu1 %v10265_v51 }
 0x43a   :  { %7745 = vmatpush1.bf16.msra.mxu0 %v10260_v50 }
 0x43b   :  { %8169 = vmatpush1.bf16.msra.mxu1 %v10263_v14  ;;  %7746 = vmatprep.subr.bf16.mxu0 %v10268_v57 }
 0x43c   :  { %8170 = vmatprep.subr.bf16.mxu1 %v10271_v21 }
 0x43e   :  { %7747 = vmatpush1.bf16.msra.mxu0 %v10266_v31 }
 0x43f   :  { %8171 = vmatpush1.bf16.msra.mxu1 %v10269_v29  ;;  %7748 = vmatprep.subr.bf16.mxu0 %v10274_v6 }
 0x440   :  { %8172 = vmatprep.subr.bf16.mxu1 %v10277_v22 }
 0x442   :  { %7749 = vmatpush1.bf16.msra.mxu0 %v10272_v59 }
 0x443   :  { %8173 = vmatpush1.bf16.msra.mxu1 %v10275_v60  ;;  %7750 = vmatprep.subr.bf16.mxu0 %v10280_v12 }
 0x444   :  { %8174 = vmatprep.subr.bf16.mxu1 %v10283_v26 }
 0x446   :  { %7751 = vmatpush1.bf16.msra.mxu0 %v10278_v28 }
 0x447   :  { %8175 = vmatpush1.bf16.msra.mxu1 %v10281_v37  ;;  %7752 = vmatprep.subr.bf16.mxu0 %v10286_v47 }
 0x448   :  { %8176 = vmatprep.subr.bf16.mxu1 %v10289_v56 }
 0x44a   :  { %7753 = vmatpush1.bf16.msra.mxu0 %v10284_v41 }
 0x44b   :  { %8177 = vmatpush1.bf16.msra.mxu1 %v10287_v62  ;;  %7754 = vmatprep.subr.bf16.mxu0 %v10292_v2 }
 0x44c   :  { %8178 = vmatprep.subr.bf16.mxu1 %v10295_v27 }
 0x44e   :  { %7755 = vmatpush1.bf16.msra.mxu0 %v10290_v9 }
 0x44f   :  { %8179 = vmatpush1.bf16.msra.mxu1 %v10293_v11  ;;  %7756 = vmatprep.subr.bf16.mxu0 %v10298_v58 }
 0x450   :  { %8180 = vmatprep.subr.bf16.mxu1 %v10301_v32 }
 0x452   :  { %7757 = vmatpush1.bf16.msra.mxu0 %v10296_v19 }
 0x453   :  { %8181 = vmatpush1.bf16.msra.mxu1 %v10299_v20  ;;  %7758 = vmatprep.subr.bf16.mxu0 %v10304_v10 }
 0x454   :  { %8182 = vmatprep.subr.bf16.mxu1 %v10307_v24 }
 0x456   :  { %7759 = vmatpush1.bf16.msra.mxu0 %v10302_v25 }
 0x457   :  { %8183 = vmatpush1.bf16.msra.mxu1 %v10305_v13  ;;  %7760 = vmatprep.subr.bf16.mxu0 %v10310_v30 }
 0x458   :  { %8184 = vmatprep.subr.bf16.mxu1 %v10313_v40 }
 0x45a   :  { %7761 = vmatpush1.bf16.msra.mxu0 %v10308_v44 }
 0x45b   :  { %8185 = vmatpush1.bf16.msra.mxu1 %v10311_v42  ;;  %7762 = vmatprep.subr.bf16.mxu0 %v10316_v55 }
 0x45c   :  { %8186 = vmatprep.subr.bf16.mxu1 %v10319_v1 }
 0x45e   :  { %7763 = vmatpush1.bf16.msra.mxu0 %v10314_v43 }
 0x45f   :  { %8187 = vmatpush1.bf16.msra.mxu1 %v10317_v35  ;;  %7764 = vmatprep.subr.bf16.mxu0 %v10322_v33 }
 0x460   :  { %8188 = vmatprep.subr.bf16.mxu1 %v10325_v52 }
 0x462   :  { %7765 = vmatpush1.bf16.msra.mxu0 %v10320_v34 }
 0x463   :  { %8189 = vmatpush1.bf16.msra.mxu1 %v10323_v8 }
 0x465   :  { %7767 = vmatmul.mubr.bf16.vlgmr.msra.gmra.mrb[32].mxu0 %v10893_v0 }
 0x466   :  { %8191 = vmatmul.mubr.bf16.vlgmr.msra.gmra.mrb[32].mxu1 %v10893_v0  ;;  %7776 = vmatprep.mubr.bf16.mxu0 %v10913_v48 }
 0x467   :  { %8200 = vmatprep.mubr.bf16.mxu1 %v10913_v48 }
 0x46d   :  { %7777 = vmatmul.mubr.bf16.gmra.mrb[36].mxu0 %v10909_v23 }
 0x46e   :  { %8201 = vmatmul.mubr.bf16.gmra.mrb[36].mxu1 %v10909_v23 }
 0x538   :  { %v7768_v15 = vpop.f32.mrb[32].mxu0 }
 0x539   :  { %v8211_v18 = vadd.f32 %v7768_v15, %v94_v61  ;;  %v8192_v0 = vpop.f32.mrb[32].mxu1  ;;  %v7770_v45 = vpop.f32.mrb[33].mxu0 }
 0x53a   :  { %v8213_v38 = vadd.f32 %v8192_v0, %v102_v53  ;;  %v8212_v16 = vadd.f32 %v7770_v45, %v98_v3  ;;  %v8194_v48 = vpop.f32.mrb[33].mxu1  ;;  %v7772_v17 = vpop.f32.mrb[34].mxu0 }
 0x53b   :  { %8227 = vst [vmem:[#allocation11] sm:$0xff] %v8211_v18  ;;  %v8214_v46 = vadd.f32 %v8194_v48, %v106_v36  ;;  %v8215_v23 = vadd.f32 %v7772_v17, %v94_v61  ;;  %v8196_v49 = vpop.f32.mrb[34].mxu1  ;;  %v7774_v39 = vpop.f32.mrb[35].mxu0 }
 0x53c   :  { %8229 = vst [vmem:[#allocation11 + $0x10] sm:$0xff] %v8213_v38  ;;  %8228 = vst [vmem:[#allocation11 + $0x8] sm:$0xff] %v8212_v16  ;;  %v8217_v63 = vadd.f32 %v8196_v49, %v102_v53  ;;  %v8216_v4 = vadd.f32 %v7774_v39, %v98_v3  ;;  %v8198_v5 = vpop.f32.mrb[35].mxu1 }
 0x53d   :  { %8230 = vst [vmem:[#allocation11 + $0x18] sm:$0xff] %v8214_v46  ;;  %8231 = vst [vmem:[#allocation11 + $0x20] sm:$0xff] %v8215_v23  ;;  %v8218_v7 = vadd.f32 %v8198_v5, %v106_v36 }
 0x53e   :  { %8233 = vst [vmem:[#allocation11 + $0x30] sm:$0xff] %v8217_v63  ;;  %8232 = vst [vmem:[#allocation11 + $0x28] sm:$0xff] %v8216_v4 }
 0x53f   :  { %8234 = vst [vmem:[#allocation11 + $0x38] sm:$0xff] %v8218_v7 }
 0x540   :  { %v7778_v51 = vpop.f32.mrb[36].mxu0 }
 0x541   :  { %v8219_v50 = vadd.f32 %v7778_v51, %v94_v61  ;;  %v8202_v14 = vpop.f32.mrb[36].mxu1  ;;  %v7780_v57 = vpop.f32.mrb[37].mxu0 }
 0x542   :  { %v8221_v21 = vadd.f32 %v8202_v14, %v102_v53  ;;  %v8220_v31 = vadd.f32 %v7780_v57, %v98_v3  ;;  %v8204_v29 = vpop.f32.mrb[37].mxu1  ;;  %v7782_v6 = vpop.f32.mrb[38].mxu0 }
 0x543   :  { %8235 = vst [vmem:[#allocation11 + $0x40] sm:$0xff] %v8219_v50  ;;  %v8222_v22 = vadd.f32 %v8204_v29, %v106_v36  ;;  %v8223_v59 = vadd.f32 %v7782_v6, %v94_v61  ;;  %v8206_v60 = vpop.f32.mrb[38].mxu1  ;;  %v7784_v12 = vpop.f32.mrb[39].mxu0 }
 0x544   :  { %8237 = vst [vmem:[#allocation11 + $0x50] sm:$0xff] %v8221_v21  ;;  %8236 = vst [vmem:[#allocation11 + $0x48] sm:$0xff] %v8220_v31  ;;  %v8225_v26 = vadd.f32 %v8206_v60, %v102_v53  ;;  %v8224_v28 = vadd.f32 %v7784_v12, %v98_v3  ;;  %v8208_v37 = vpop.f32.mrb[39].mxu1 }
 0x545   :  { %8238 = vst [vmem:[#allocation11 + $0x58] sm:$0xff] %v8222_v22  ;;  %8239 = vst [vmem:[#allocation11 + $0x60] sm:$0xff] %v8223_v59  ;;  %v8226_v47 = vadd.f32 %v8208_v37, %v106_v36 }
 0x546   :  { %8241 = vst [vmem:[#allocation11 + $0x70] sm:$0xff] %v8225_v26  ;;  %8240 = vst [vmem:[#allocation11 + $0x68] sm:$0xff] %v8224_v28 }
 0x547   :  { %8242 = vst [vmem:[#allocation11 + $0x78] sm:$0xff] %v8226_v47 }
 0x548   :  { %10464 = shalt.err (!%p10461_p2)
}
 0x549   :  { %s10465_s30 = scalar_lea.hbm %s10974_s5, 2048 }
 0x54a   :  { %p10466_p3 = scmp.ne.s32.totalorder %s10974_s5, %s10465_s30  ;;  %p10469_p4 = scmp.lt.u32.totalorder %s10465_s30, %s10974_s5 }
 0x54c   :  { %p10471_p5 = pnand %p10469_p4, %p10466_p3 }
 0x54e   :  { %10474 = shalt.err (!%p10471_p5)
}
 0x54f   :  { %s10493_s11 = smov 512   ;;  %s10494_s12 = smov 32  }
 0x550   :  { %8254 = dma.vmem_to_hbm [thread:$0]  %s8249_s27, 2048, %s10974_s5, [#allocation4], %s10493_s11, %s10493_s11, %s10494_s12  }
 0x551   :  { %10481 = dma.done.wait [#allocation4], 2048  }
 0x552   :  { %10482 = vsyncadd [#allocation4], 4294965248 }
 0x553   :  { %8258 = vsyncpa [#allocation3], 1 }
 0x554   :  { %8259 = vsyncpa [#allocation6], 1 }
 0x555   :  { %8260 = vsyncpa [#allocation9], 1 }
 0x556   :  { %8261 = vsyncpa [#allocation4], 1 }

</bundles_post_ra>
